<compile_context>
chip_gen: v7x
topology: tpu7x:2x2x1
jax: 0.10.0
libtpu: 0.0.40
codegen_flags: <defaults>
</compile_context>

<pallas_src>
import jax
import jax.numpy as jnp
from jax.experimental import pallas as pl
from jax.experimental.pallas import tpu as pltpu

NUM_RELATIONS = 3
BN_EPS = 1e-5
LIN1_OUT = 100
HEAD_PAD = 128  # zero-padded row count for the final [100 -> 1] projection


# ------------------------------ Pallas kernel ------------------------------ #

def _fused_rgcn_kernel(*refs):
    """4x (RGCNConv + BatchNorm) -> mean-pool -> lin1 -> dropout -> lin2.

    All activations are kept in the transposed [features, nodes] layout so that
    every matmul has the node count on the lane/output axis of the MXU.
    """
    (xT_ref, adjT_ref, deg_inv_ref,
     w0, r0, g0, b0,
     w1, r1, g1, b1,
     w2, r2, g2, b2,
     w3, r3, g3, b3,
     poolT_ref, cnt_inv_ref, lw1T_ref, lb1_ref, dropT_ref, lw2T_ref, lb2_ref,
     out_ref) = refs

    adj = adjT_ref[...]          # [3, N, N] bf16, exact {0,1,..} counts (A^T layout)
    deg_inv = deg_inv_ref[...]   # [3, N]    f32, per-relation 1/in-degree of dst
    n_nodes = adj.shape[-1]
    n_inv = 1.0 / n_nodes

    def conv_bn(xT, w_ref, root_ref, gamma_ref, beta_ref):
        # xT: [Cin, N] bf16 (features on sublanes, nodes on lanes).
        wT = w_ref[...]          # [3, Cout, Cin] bf16
        rootT = root_ref[...]    # [Cout, Cin]    bf16
        # Root / self term.
        h = jnp.dot(rootT, xT, preferred_element_type=jnp.float32)          # [Cout, N]
        # Three accumulating relation matmuls (no concatenated temporary);
        # the mean normalization (1/deg) is applied as an f32 scale afterwards.
        for r in range(NUM_RELATIONS):
            msg = jnp.dot(wT[r], xT,
                          preferred_element_type=jnp.float32).astype(jnp.bfloat16)
            agg = jnp.dot(msg, adj[r], preferred_element_type=jnp.float32)  # [Cout, N]
            h = h + agg * deg_inv[r:r + 1, :]
        # (conv bias dropped: a per-channel constant is exactly cancelled by the
        #  training-mode BatchNorm mean subtraction; it is zero-initialized anyway.)
        # BatchNorm (training, batch stats, biased var) folded into one
        # scale/shift; one reduction pass over the node (lane) axis; bf16 out.
        mean = jnp.sum(h, axis=1, keepdims=True) * n_inv                    # [Cout, 1]
        mean_sq = jnp.sum(h * h, axis=1, keepdims=True) * n_inv
        var = mean_sq - mean * mean
        scale = gamma_ref[...] * jax.lax.rsqrt(var + BN_EPS)                # [Cout, 1]
        shift = beta_ref[...] - mean * scale
        return (h * scale + shift).astype(jnp.bfloat16)                     # [Cout, N]

    x = xT_ref[...]                       # [Cin, N] bf16
    x = conv_bn(x, w0, r0, g0, b0)
    x = conv_bn(x, w1, r1, g1, b1)
    x = conv_bn(x, w2, r2, g2, b2)
    x = conv_bn(x, w3, r3, g3, b3)

    # Head (transposed layout, graphs on lanes):
    # global_mean_pool ({0,1} one-hot matmul + f32 1/count scale) -> lin1 ->
    # dropout (pre-scaled mask) -> zero-padded lin2.  bf16 inputs, f32 accum.
    pooled = (jnp.dot(x, poolT_ref[...], preferred_element_type=jnp.float32)
              * cnt_inv_ref[...])                                            # [H, G]
    h = jnp.dot(lw1T_ref[...], pooled.astype(jnp.bfloat16),
                preferred_element_type=jnp.float32) + lb1_ref[...]           # [100, G]
    h = h * dropT_ref[...]                                                   # dropout
    out_ref[...] = jnp.dot(lw2T_ref[...], h.astype(jnp.bfloat16),
                           preferred_element_type=jnp.float32) + lb2_ref[...]  # [128, G]


# ------------------------------- JAX glue ----------------------------------- #

def build_adj_and_deg(edge_index, edge_type, num_nodes):
    """Transposed dense adjacency A^T[r, src, dst] (exact counts) + 1/in-degree."""
    src, dst = edge_index[0], edge_index[1]
    adj_t = jnp.zeros((NUM_RELATIONS, num_nodes, num_nodes), jnp.float32)
    adj_t = adj_t.at[edge_type, src, dst].add(1.0)
    deg = adj_t.sum(axis=1)                         # [3, N] in-degree of each dst
    deg_inv = 1.0 / jnp.maximum(deg, 1.0)
    # Small integer counts are exact in bf16; normalization stays in f32.
    return adj_t.astype(jnp.bfloat16), deg_inv


def build_mean_pool_t(batch, num_graphs, num_nodes):
    """Transposed one-hot pooling matrix [N, G] (exact {0,1}) + f32 1/count."""
    onehot_t = (batch[:, None] == jnp.arange(num_graphs)[None, :]).astype(jnp.float32)
    counts = onehot_t.sum(axis=0, keepdims=True)    # [1, G]
    return onehot_t.astype(jnp.bfloat16), 1.0 / jnp.maximum(counts, 1.0)


def glorot_uniform(key, shape):
    fan_in, fan_out = shape[-2], shape[-1]
    limit = (6.0 / (fan_in + fan_out)) ** 0.5
    return jax.random.uniform(key, shape, jnp.float32, -limit, limit)


def init_params(key, input_channels, hidden_channels):
    dims = [(input_channels, 100), (100, hidden_channels),
            (hidden_channels, hidden_channels), (hidden_channels, hidden_channels)]
    params = {"convs": [], "norms": []}
    for cin, cout in dims:
        key, k_w, k_r = jax.random.split(key, 3)
        # Conv bias is zero-initialized and cancelled by training-mode BN -> omitted.
        params["convs"].append({
            "weight": glorot_uniform(k_w, (NUM_RELATIONS, cin, cout)),  # xavier_uniform_
            "root": glorot_uniform(k_r, (cin, cout)),
        })
        params["norms"].append({
            "gamma": jnp.ones((cout,), jnp.float32),
            "beta": jnp.zeros((cout,), jnp.float32),
        })
    key, k1, k2 = jax.random.split(key, 3)
    params["lin1"] = {"w": glorot_uniform(k1, (hidden_channels, LIN1_OUT)),
                      "b": jnp.zeros((LIN1_OUT,), jnp.float32)}
    params["lin2"] = {"w": glorot_uniform(k2, (LIN1_OUT, 1)),
                      "b": jnp.zeros((1,), jnp.float32)}
    return params


def _cost_estimate(n, g, params):
    flops = 0
    for conv in params["convs"]:
        cin, cout = conv["root"].shape
        flops += 2 * cout * cin * n * (NUM_RELATIONS + 1)   # root + 3 projections
        flops += 2 * NUM_RELATIONS * cout * n * n           # 3 aggregation matmuls
    hidden = params["lin1"]["w"].shape[0]
    flops += 2 * hidden * n * g                             # mean pool
    flops += 2 * LIN1_OUT * hidden * g                      # lin1
    flops += 2 * HEAD_PAD * LIN1_OUT * g                    # lin2 (padded)
    leaves = jax.tree_util.tree_leaves(params)
    param_bytes = sum(int(l.size) * l.dtype.itemsize for l in leaves)
    bytes_accessed = (param_bytes
                      + NUM_RELATIONS * n * n * 2           # bf16 adjacency slab
                      + NUM_RELATIONS * n * 4               # deg_inv
                      + n * params["convs"][0]["root"].shape[0] * 4   # input features
                      + n * g * 2 + g * 4                   # pool matrix + counts
                      + LIN1_OUT * g * 4                    # dropout mask
                      + HEAD_PAD * g * 4)                   # output
    return pl.CostEstimate(flops=flops, transcendentals=0,
                           bytes_accessed=bytes_accessed)


def rgcn_forward(params, x, edge_attr, edge_index, edge_type, batch,
                 num_graphs, dropout_rng):
    # edge_attr is accepted for signature parity; the PyTorch forward never uses it.
    del edge_attr
    n = x.shape[0]
    hidden = params["lin1"]["w"].shape[0]

    adj_t, deg_inv = build_adj_and_deg(edge_index, edge_type, n)   # [3,N,N] bf16, [3,N]
    pool_t, cnt_inv = build_mean_pool_t(batch, num_graphs, n)      # [N,G] bf16, [1,G]

    # Dropout p=0.5 (training): keep-mask pre-scaled by 1/(1-p)=2, built in plain
    # JAX (portable; pltpu PRNG has no interpret-mode lowering), transposed layout.
    keep = jax.random.bernoulli(dropout_rng, 0.5, (LIN1_OUT, num_graphs))
    drop_t = keep.astype(jnp.float32) * 2.0

    # Final projection zero-padded to 128 output rows (transposed layout).
    w2t = jnp.zeros((HEAD_PAD, LIN1_OUT), jnp.float32).at[:1, :].set(params["lin2"]["w"].T)
    b2t = jnp.zeros((HEAD_PAD, 1), jnp.float32).at[0, 0].set(params["lin2"]["b"][0])

    args = [x.T.astype(jnp.bfloat16), adj_t, deg_inv]
    for conv, norm in zip(params["convs"], params["norms"]):
        args += [
            jnp.transpose(conv["weight"], (0, 2, 1)).astype(jnp.bfloat16),  # [3,Cout,Cin]
            conv["root"].T.astype(jnp.bfloat16),                            # [Cout,Cin]
            norm["gamma"].reshape(-1, 1),
            norm["beta"].reshape(-1, 1),
        ]
    args += [pool_t, cnt_inv,
             params["lin1"]["w"].T.astype(jnp.bfloat16),                    # [100,H]
             params["lin1"]["b"].reshape(-1, 1),
             drop_t,
             w2t.astype(jnp.bfloat16), b2t]

    # Scoped-VMEM budget: resident inputs + output + a few f32 [Cout,N] working
    # tensors, with 25% headroom (clamped to stay inside every chip's physical VMEM).
    in_bytes = sum(int(a.size) * a.dtype.itemsize for a in args)
    out_bytes = HEAD_PAD * num_graphs * 4
    work_bytes = 8 * max(LIN1_OUT, hidden) * n * 4
    vmem_limit = max(32 << 20,
                     min(int((in_bytes + out_bytes + work_bytes) * 1.25), 96 << 20))

    vmem = pl.BlockSpec(memory_space=pltpu.MemorySpace.VMEM)
    head_t = pl.pallas_call(
        _fused_rgcn_kernel,
        out_shape=jax.ShapeDtypeStruct((HEAD_PAD, num_graphs), jnp.float32),
        in_specs=[vmem] * len(args),
        out_specs=vmem,
        compiler_params=pltpu.CompilerParams(vmem_limit_bytes=vmem_limit),
        cost_estimate=_cost_estimate(n, num_graphs, params),
    )(*args)
    # Row 0 of the padded, transposed head is the lin2 output per graph.
    return head_t[:1, :].T


# --------------------------------- main -------------------------------------- #

if __name__ == "__main__":
    key = jax.random.PRNGKey(0)

    N_NODES = 64
    N_EDGES = 128
    IN_CH = 8
    HIDDEN = 32
    N_GRAPHS = 4

    k_x, k_src, k_dst, k_et, k_ea, k_params, k_drop = jax.random.split(key, 7)
    x = jax.random.normal(k_x, (N_NODES, IN_CH), jnp.float32)
    edge_index = jnp.stack([
        jax.random.randint(k_src, (N_EDGES,), 0, N_NODES, jnp.int32),
        jax.random.randint(k_dst, (N_EDGES,), 0, N_NODES, jnp.int32),
    ], axis=0)
    edge_type = jax.random.randint(k_et, (N_EDGES,), 0, NUM_RELATIONS, jnp.int32)
    edge_attr = jax.random.normal(k_ea, (N_EDGES, 4), jnp.float32)   # unused by forward
    batch = jnp.repeat(jnp.arange(N_GRAPHS, dtype=jnp.int32), N_NODES // N_GRAPHS)

    params = init_params(k_params, IN_CH, HIDDEN)

    out = rgcn_forward(params, x, edge_attr, edge_index, edge_type, batch,
                       num_graphs=N_GRAPHS, dropout_rng=k_drop)
    out = jax.block_until_ready(out)
    assert out.shape == (N_GRAPHS, 1) and out.dtype == jnp.float32
    print("KERNEL_OK")
</pallas_src>

<mosaic_0001>
module attributes {stable_mosaic.version = 11 : i64} {
  func.func @_fused_rgcn_kernel(%arg0: memref<8x64xbf16, #tpu.memory_space<vmem>>, %arg1: memref<3x64x64xbf16, #tpu.memory_space<vmem>>, %arg2: memref<3x64xf32, #tpu.memory_space<vmem>>, %arg3: memref<3x100x8xbf16, #tpu.memory_space<vmem>>, %arg4: memref<100x8xbf16, #tpu.memory_space<vmem>>, %arg5: memref<100x1xf32, #tpu.memory_space<vmem>>, %arg6: memref<100x1xf32, #tpu.memory_space<vmem>>, %arg7: memref<3x32x100xbf16, #tpu.memory_space<vmem>>, %arg8: memref<32x100xbf16, #tpu.memory_space<vmem>>, %arg9: memref<32x1xf32, #tpu.memory_space<vmem>>, %arg10: memref<32x1xf32, #tpu.memory_space<vmem>>, %arg11: memref<3x32x32xbf16, #tpu.memory_space<vmem>>, %arg12: memref<32x32xbf16, #tpu.memory_space<vmem>>, %arg13: memref<32x1xf32, #tpu.memory_space<vmem>>, %arg14: memref<32x1xf32, #tpu.memory_space<vmem>>, %arg15: memref<3x32x32xbf16, #tpu.memory_space<vmem>>, %arg16: memref<32x32xbf16, #tpu.memory_space<vmem>>, %arg17: memref<32x1xf32, #tpu.memory_space<vmem>>, %arg18: memref<32x1xf32, #tpu.memory_space<vmem>>, %arg19: memref<64x4xbf16, #tpu.memory_space<vmem>>, %arg20: memref<1x4xf32, #tpu.memory_space<vmem>>, %arg21: memref<100x32xbf16, #tpu.memory_space<vmem>>, %arg22: memref<100x1xf32, #tpu.memory_space<vmem>>, %arg23: memref<100x4xf32, #tpu.memory_space<vmem>>, %arg24: memref<128x100xbf16, #tpu.memory_space<vmem>>, %arg25: memref<128x1xf32, #tpu.memory_space<vmem>>, %arg26: memref<128x4xf32, #tpu.memory_space<vmem>>) attributes {dimension_semantics = [], scalar_prefetch = 0 : i64, scratch_operands = 0 : i64, tpu.core_type = #tpu.core_type<tc>} {
    %c0 = arith.constant 0 : index
    %c0_0 = arith.constant 0 : index
    %c0_1 = arith.constant 0 : index
    %0 = vector.load %arg1[%c0, %c0_0, %c0_1] : memref<3x64x64xbf16, #tpu.memory_space<vmem>>, vector<3x64x64xbf16>
    %c0_2 = arith.constant 0 : index
    %c0_3 = arith.constant 0 : index
    %1 = vector.load %arg2[%c0_2, %c0_3] : memref<3x64xf32, #tpu.memory_space<vmem>>, vector<3x64xf32>
    %c0_4 = arith.constant 0 : index
    %c0_5 = arith.constant 0 : index
    %2 = vector.load %arg0[%c0_4, %c0_5] : memref<8x64xbf16, #tpu.memory_space<vmem>>, vector<8x64xbf16>
    %c0_6 = arith.constant 0 : index
    %c0_7 = arith.constant 0 : index
    %c0_8 = arith.constant 0 : index
    %3 = vector.load %arg3[%c0_6, %c0_7, %c0_8] : memref<3x100x8xbf16, #tpu.memory_space<vmem>>, vector<3x100x8xbf16>
    %c0_9 = arith.constant 0 : index
    %c0_10 = arith.constant 0 : index
    %4 = vector.load %arg4[%c0_9, %c0_10] : memref<100x8xbf16, #tpu.memory_space<vmem>>, vector<100x8xbf16>
    %cst = arith.constant dense<0.000000e+00> : vector<100x64xf32>
    %5 = tpu.matmul %4, %2, %cst {dimension_numbers = #tpu.dot_dimension_numbers<[1], [0], [0], [1], [0, 0, 1, 1], [], []>} : vector<100x8xbf16>, vector<8x64xbf16>, vector<100x64xf32> -> vector<100x64xf32>
    %6 = vector.extract_strided_slice %3 {offsets = [0, 0, 0], sizes = [1, 100, 8], strides = [1, 1, 1]} : vector<3x100x8xbf16> to vector<1x100x8xbf16>
    %7 = vector.shape_cast %6 : vector<1x100x8xbf16> to vector<100x8xbf16>
    %cst_11 = arith.constant dense<0.000000e+00> : vector<100x64xf32>
    %8 = tpu.matmul %7, %2, %cst_11 {dimension_numbers = #tpu.dot_dimension_numbers<[1], [0], [0], [1], [0, 0, 1, 1], [], []>} : vector<100x8xbf16>, vector<8x64xbf16>, vector<100x64xf32> -> vector<100x64xf32>
    %9 = arith.truncf %8 : vector<100x64xf32> to vector<100x64xbf16>
    %10 = vector.extract_strided_slice %0 {offsets = [0, 0, 0], sizes = [1, 64, 64], strides = [1, 1, 1]} : vector<3x64x64xbf16> to vector<1x64x64xbf16>
    %11 = vector.shape_cast %10 : vector<1x64x64xbf16> to vector<64x64xbf16>
    %cst_12 = arith.constant dense<0.000000e+00> : vector<100x64xf32>
    %12 = tpu.matmul %9, %11, %cst_12 {dimension_numbers = #tpu.dot_dimension_numbers<[1], [0], [0], [1], [0, 0, 1, 1], [], []>} : vector<100x64xbf16>, vector<64x64xbf16>, vector<100x64xf32> -> vector<100x64xf32>
    %13 = vector.extract_strided_slice %1 {offsets = [0, 0], sizes = [1, 64], strides = [1, 1]} : vector<3x64xf32> to vector<1x64xf32>
    %14 = vector.broadcast %13 : vector<1x64xf32> to vector<100x64xf32>
    %15 = arith.mulf %12, %14 : vector<100x64xf32>
    %16 = arith.addf %5, %15 : vector<100x64xf32>
    %17 = vector.extract_strided_slice %3 {offsets = [1, 0, 0], sizes = [1, 100, 8], strides = [1, 1, 1]} : vector<3x100x8xbf16> to vector<1x100x8xbf16>
    %18 = vector.shape_cast %17 : vector<1x100x8xbf16> to vector<100x8xbf16>
    %cst_13 = arith.constant dense<0.000000e+00> : vector<100x64xf32>
    %19 = tpu.matmul %18, %2, %cst_13 {dimension_numbers = #tpu.dot_dimension_numbers<[1], [0], [0], [1], [0, 0, 1, 1], [], []>} : vector<100x8xbf16>, vector<8x64xbf16>, vector<100x64xf32> -> vector<100x64xf32>
    %20 = arith.truncf %19 : vector<100x64xf32> to vector<100x64xbf16>
    %21 = vector.extract_strided_slice %0 {offsets = [1, 0, 0], sizes = [1, 64, 64], strides = [1, 1, 1]} : vector<3x64x64xbf16> to vector<1x64x64xbf16>
    %22 = vector.shape_cast %21 : vector<1x64x64xbf16> to vector<64x64xbf16>
    %cst_14 = arith.constant dense<0.000000e+00> : vector<100x64xf32>
    %23 = tpu.matmul %20, %22, %cst_14 {dimension_numbers = #tpu.dot_dimension_numbers<[1], [0], [0], [1], [0, 0, 1, 1], [], []>} : vector<100x64xbf16>, vector<64x64xbf16>, vector<100x64xf32> -> vector<100x64xf32>
    %24 = vector.extract_strided_slice %1 {offsets = [1, 0], sizes = [1, 64], strides = [1, 1]} : vector<3x64xf32> to vector<1x64xf32>
    %25 = vector.broadcast %24 : vector<1x64xf32> to vector<100x64xf32>
    %26 = arith.mulf %23, %25 : vector<100x64xf32>
    %27 = arith.addf %16, %26 : vector<100x64xf32>
    %28 = vector.extract_strided_slice %3 {offsets = [2, 0, 0], sizes = [1, 100, 8], strides = [1, 1, 1]} : vector<3x100x8xbf16> to vector<1x100x8xbf16>
    %29 = vector.shape_cast %28 : vector<1x100x8xbf16> to vector<100x8xbf16>
    %cst_15 = arith.constant dense<0.000000e+00> : vector<100x64xf32>
    %30 = tpu.matmul %29, %2, %cst_15 {dimension_numbers = #tpu.dot_dimension_numbers<[1], [0], [0], [1], [0, 0, 1, 1], [], []>} : vector<100x8xbf16>, vector<8x64xbf16>, vector<100x64xf32> -> vector<100x64xf32>
    %31 = arith.truncf %30 : vector<100x64xf32> to vector<100x64xbf16>
    %32 = vector.extract_strided_slice %0 {offsets = [2, 0, 0], sizes = [1, 64, 64], strides = [1, 1, 1]} : vector<3x64x64xbf16> to vector<1x64x64xbf16>
    %33 = vector.shape_cast %32 : vector<1x64x64xbf16> to vector<64x64xbf16>
    %cst_16 = arith.constant dense<0.000000e+00> : vector<100x64xf32>
    %34 = tpu.matmul %31, %33, %cst_16 {dimension_numbers = #tpu.dot_dimension_numbers<[1], [0], [0], [1], [0, 0, 1, 1], [], []>} : vector<100x64xbf16>, vector<64x64xbf16>, vector<100x64xf32> -> vector<100x64xf32>
    %35 = vector.extract_strided_slice %1 {offsets = [2, 0], sizes = [1, 64], strides = [1, 1]} : vector<3x64xf32> to vector<1x64xf32>
    %36 = vector.broadcast %35 : vector<1x64xf32> to vector<100x64xf32>
    %37 = arith.mulf %34, %36 : vector<100x64xf32>
    %38 = arith.addf %27, %37 : vector<100x64xf32>
    %cst_17 = arith.constant dense<0.000000e+00> : vector<100xf32>
    %39 = vector.multi_reduction <add>, %38, %cst_17 [1] : vector<100x64xf32> to vector<100xf32>
    %40 = vector.shape_cast %39 : vector<100xf32> to vector<100x1xf32>
    %cst_18 = arith.constant 1.562500e-02 : f32
    %41 = vector.broadcast %cst_18 : f32 to vector<100x1xf32>
    %42 = arith.mulf %40, %41 : vector<100x1xf32>
    %43 = arith.mulf %38, %38 : vector<100x64xf32>
    %cst_19 = arith.constant dense<0.000000e+00> : vector<100xf32>
    %44 = vector.multi_reduction <add>, %43, %cst_19 [1] : vector<100x64xf32> to vector<100xf32>
    %45 = vector.shape_cast %44 : vector<100xf32> to vector<100x1xf32>
    %cst_20 = arith.constant 1.562500e-02 : f32
    %46 = vector.broadcast %cst_20 : f32 to vector<100x1xf32>
    %47 = arith.mulf %45, %46 : vector<100x1xf32>
    %48 = arith.mulf %42, %42 : vector<100x1xf32>
    %49 = arith.subf %47, %48 : vector<100x1xf32>
    %c0_21 = arith.constant 0 : index
    %c0_22 = arith.constant 0 : index
    %50 = vector.load %arg5[%c0_21, %c0_22] : memref<100x1xf32, #tpu.memory_space<vmem>>, vector<100x1xf32>
    %cst_23 = arith.constant 9.99999974E-6 : f32
    %51 = vector.broadcast %cst_23 : f32 to vector<100x1xf32>
    %52 = arith.addf %49, %51 : vector<100x1xf32>
    %53 = math.rsqrt %52 : vector<100x1xf32>
    %54 = arith.mulf %50, %53 : vector<100x1xf32>
    %c0_24 = arith.constant 0 : index
    %c0_25 = arith.constant 0 : index
    %55 = vector.load %arg6[%c0_24, %c0_25] : memref<100x1xf32, #tpu.memory_space<vmem>>, vector<100x1xf32>
    %56 = arith.mulf %42, %54 : vector<100x1xf32>
    %57 = arith.subf %55, %56 : vector<100x1xf32>
    %58 = vector.broadcast %54 : vector<100x1xf32> to vector<100x64xf32>
    %59 = arith.mulf %38, %58 : vector<100x64xf32>
    %60 = vector.broadcast %57 : vector<100x1xf32> to vector<100x64xf32>
    %61 = arith.addf %59, %60 : vector<100x64xf32>
    %62 = arith.truncf %61 : vector<100x64xf32> to vector<100x64xbf16>
    %c0_26 = arith.constant 0 : index
    %c0_27 = arith.constant 0 : index
    %c0_28 = arith.constant 0 : index
    %63 = vector.load %arg7[%c0_26, %c0_27, %c0_28] : memref<3x32x100xbf16, #tpu.memory_space<vmem>>, vector<3x32x100xbf16>
    %c0_29 = arith.constant 0 : index
    %c0_30 = arith.constant 0 : index
    %64 = vector.load %arg8[%c0_29, %c0_30] : memref<32x100xbf16, #tpu.memory_space<vmem>>, vector<32x100xbf16>
    %cst_31 = arith.constant dense<0.000000e+00> : vector<32x64xf32>
    %65 = tpu.matmul %64, %62, %cst_31 {dimension_numbers = #tpu.dot_dimension_numbers<[1], [0], [0], [1], [0, 0, 1, 1], [], []>} : vector<32x100xbf16>, vector<100x64xbf16>, vector<32x64xf32> -> vector<32x64xf32>
    %66 = vector.extract_strided_slice %63 {offsets = [0, 0, 0], sizes = [1, 32, 100], strides = [1, 1, 1]} : vector<3x32x100xbf16> to vector<1x32x100xbf16>
    %67 = vector.shape_cast %66 : vector<1x32x100xbf16> to vector<32x100xbf16>
    %cst_32 = arith.constant dense<0.000000e+00> : vector<32x64xf32>
    %68 = tpu.matmul %67, %62, %cst_32 {dimension_numbers = #tpu.dot_dimension_numbers<[1], [0], [0], [1], [0, 0, 1, 1], [], []>} : vector<32x100xbf16>, vector<100x64xbf16>, vector<32x64xf32> -> vector<32x64xf32>
    %69 = arith.truncf %68 : vector<32x64xf32> to vector<32x64xbf16>
    %70 = vector.extract_strided_slice %0 {offsets = [0, 0, 0], sizes = [1, 64, 64], strides = [1, 1, 1]} : vector<3x64x64xbf16> to vector<1x64x64xbf16>
    %71 = vector.shape_cast %70 : vector<1x64x64xbf16> to vector<64x64xbf16>
    %cst_33 = arith.constant dense<0.000000e+00> : vector<32x64xf32>
    %72 = tpu.matmul %69, %71, %cst_33 {dimension_numbers = #tpu.dot_dimension_numbers<[1], [0], [0], [1], [0, 0, 1, 1], [], []>} : vector<32x64xbf16>, vector<64x64xbf16>, vector<32x64xf32> -> vector<32x64xf32>
    %73 = vector.extract_strided_slice %1 {offsets = [0, 0], sizes = [1, 64], strides = [1, 1]} : vector<3x64xf32> to vector<1x64xf32>
    %74 = vector.broadcast %73 : vector<1x64xf32> to vector<32x64xf32>
    %75 = arith.mulf %72, %74 : vector<32x64xf32>
    %76 = arith.addf %65, %75 : vector<32x64xf32>
    %77 = vector.extract_strided_slice %63 {offsets = [1, 0, 0], sizes = [1, 32, 100], strides = [1, 1, 1]} : vector<3x32x100xbf16> to vector<1x32x100xbf16>
    %78 = vector.shape_cast %77 : vector<1x32x100xbf16> to vector<32x100xbf16>
    %cst_34 = arith.constant dense<0.000000e+00> : vector<32x64xf32>
    %79 = tpu.matmul %78, %62, %cst_34 {dimension_numbers = #tpu.dot_dimension_numbers<[1], [0], [0], [1], [0, 0, 1, 1], [], []>} : vector<32x100xbf16>, vector<100x64xbf16>, vector<32x64xf32> -> vector<32x64xf32>
    %80 = arith.truncf %79 : vector<32x64xf32> to vector<32x64xbf16>
    %81 = vector.extract_strided_slice %0 {offsets = [1, 0, 0], sizes = [1, 64, 64], strides = [1, 1, 1]} : vector<3x64x64xbf16> to vector<1x64x64xbf16>
    %82 = vector.shape_cast %81 : vector<1x64x64xbf16> to vector<64x64xbf16>
    %cst_35 = arith.constant dense<0.000000e+00> : vector<32x64xf32>
    %83 = tpu.matmul %80, %82, %cst_35 {dimension_numbers = #tpu.dot_dimension_numbers<[1], [0], [0], [1], [0, 0, 1, 1], [], []>} : vector<32x64xbf16>, vector<64x64xbf16>, vector<32x64xf32> -> vector<32x64xf32>
    %84 = vector.extract_strided_slice %1 {offsets = [1, 0], sizes = [1, 64], strides = [1, 1]} : vector<3x64xf32> to vector<1x64xf32>
    %85 = vector.broadcast %84 : vector<1x64xf32> to vector<32x64xf32>
    %86 = arith.mulf %83, %85 : vector<32x64xf32>
    %87 = arith.addf %76, %86 : vector<32x64xf32>
    %88 = vector.extract_strided_slice %63 {offsets = [2, 0, 0], sizes = [1, 32, 100], strides = [1, 1, 1]} : vector<3x32x100xbf16> to vector<1x32x100xbf16>
    %89 = vector.shape_cast %88 : vector<1x32x100xbf16> to vector<32x100xbf16>
    %cst_36 = arith.constant dense<0.000000e+00> : vector<32x64xf32>
    %90 = tpu.matmul %89, %62, %cst_36 {dimension_numbers = #tpu.dot_dimension_numbers<[1], [0], [0], [1], [0, 0, 1, 1], [], []>} : vector<32x100xbf16>, vector<100x64xbf16>, vector<32x64xf32> -> vector<32x64xf32>
    %91 = arith.truncf %90 : vector<32x64xf32> to vector<32x64xbf16>
    %92 = vector.extract_strided_slice %0 {offsets = [2, 0, 0], sizes = [1, 64, 64], strides = [1, 1, 1]} : vector<3x64x64xbf16> to vector<1x64x64xbf16>
    %93 = vector.shape_cast %92 : vector<1x64x64xbf16> to vector<64x64xbf16>
    %cst_37 = arith.constant dense<0.000000e+00> : vector<32x64xf32>
    %94 = tpu.matmul %91, %93, %cst_37 {dimension_numbers = #tpu.dot_dimension_numbers<[1], [0], [0], [1], [0, 0, 1, 1], [], []>} : vector<32x64xbf16>, vector<64x64xbf16>, vector<32x64xf32> -> vector<32x64xf32>
    %95 = vector.extract_strided_slice %1 {offsets = [2, 0], sizes = [1, 64], strides = [1, 1]} : vector<3x64xf32> to vector<1x64xf32>
    %96 = vector.broadcast %95 : vector<1x64xf32> to vector<32x64xf32>
    %97 = arith.mulf %94, %96 : vector<32x64xf32>
    %98 = arith.addf %87, %97 : vector<32x64xf32>
    %cst_38 = arith.constant dense<0.000000e+00> : vector<32xf32>
    %99 = vector.multi_reduction <add>, %98, %cst_38 [1] : vector<32x64xf32> to vector<32xf32>
    %100 = vector.shape_cast %99 : vector<32xf32> to vector<32x1xf32>
    %cst_39 = arith.constant 1.562500e-02 : f32
    %101 = vector.broadcast %cst_39 : f32 to vector<32x1xf32>
    %102 = arith.mulf %100, %101 : vector<32x1xf32>
    %103 = arith.mulf %98, %98 : vector<32x64xf32>
    %cst_40 = arith.constant dense<0.000000e+00> : vector<32xf32>
    %104 = vector.multi_reduction <add>, %103, %cst_40 [1] : vector<32x64xf32> to vector<32xf32>
    %105 = vector.shape_cast %104 : vector<32xf32> to vector<32x1xf32>
    %cst_41 = arith.constant 1.562500e-02 : f32
    %106 = vector.broadcast %cst_41 : f32 to vector<32x1xf32>
    %107 = arith.mulf %105, %106 : vector<32x1xf32>
    %108 = arith.mulf %102, %102 : vector<32x1xf32>
    %109 = arith.subf %107, %108 : vector<32x1xf32>
    %c0_42 = arith.constant 0 : index
    %c0_43 = arith.constant 0 : index
    %110 = vector.load %arg9[%c0_42, %c0_43] : memref<32x1xf32, #tpu.memory_space<vmem>>, vector<32x1xf32>
    %cst_44 = arith.constant 9.99999974E-6 : f32
    %111 = vector.broadcast %cst_44 : f32 to vector<32x1xf32>
    %112 = arith.addf %109, %111 : vector<32x1xf32>
    %113 = math.rsqrt %112 : vector<32x1xf32>
    %114 = arith.mulf %110, %113 : vector<32x1xf32>
    %c0_45 = arith.constant 0 : index
    %c0_46 = arith.constant 0 : index
    %115 = vector.load %arg10[%c0_45, %c0_46] : memref<32x1xf32, #tpu.memory_space<vmem>>, vector<32x1xf32>
    %116 = arith.mulf %102, %114 : vector<32x1xf32>
    %117 = arith.subf %115, %116 : vector<32x1xf32>
    %118 = vector.broadcast %114 : vector<32x1xf32> to vector<32x64xf32>
    %119 = arith.mulf %98, %118 : vector<32x64xf32>
    %120 = vector.broadcast %117 : vector<32x1xf32> to vector<32x64xf32>
    %121 = arith.addf %119, %120 : vector<32x64xf32>
    %122 = arith.truncf %121 : vector<32x64xf32> to vector<32x64xbf16>
    %c0_47 = arith.constant 0 : index
    %c0_48 = arith.constant 0 : index
    %c0_49 = arith.constant 0 : index
    %123 = vector.load %arg11[%c0_47, %c0_48, %c0_49] : memref<3x32x32xbf16, #tpu.memory_space<vmem>>, vector<3x32x32xbf16>
    %c0_50 = arith.constant 0 : index
    %c0_51 = arith.constant 0 : index
    %124 = vector.load %arg12[%c0_50, %c0_51] : memref<32x32xbf16, #tpu.memory_space<vmem>>, vector<32x32xbf16>
    %cst_52 = arith.constant dense<0.000000e+00> : vector<32x64xf32>
    %125 = tpu.matmul %124, %122, %cst_52 {dimension_numbers = #tpu.dot_dimension_numbers<[1], [0], [0], [1], [0, 0, 1, 1], [], []>} : vector<32x32xbf16>, vector<32x64xbf16>, vector<32x64xf32> -> vector<32x64xf32>
    %126 = vector.extract_strided_slice %123 {offsets = [0, 0, 0], sizes = [1, 32, 32], strides = [1, 1, 1]} : vector<3x32x32xbf16> to vector<1x32x32xbf16>
    %127 = vector.shape_cast %126 : vector<1x32x32xbf16> to vector<32x32xbf16>
    %cst_53 = arith.constant dense<0.000000e+00> : vector<32x64xf32>
    %128 = tpu.matmul %127, %122, %cst_53 {dimension_numbers = #tpu.dot_dimension_numbers<[1], [0], [0], [1], [0, 0, 1, 1], [], []>} : vector<32x32xbf16>, vector<32x64xbf16>, vector<32x64xf32> -> vector<32x64xf32>
    %129 = arith.truncf %128 : vector<32x64xf32> to vector<32x64xbf16>
    %130 = vector.extract_strided_slice %0 {offsets = [0, 0, 0], sizes = [1, 64, 64], strides = [1, 1, 1]} : vector<3x64x64xbf16> to vector<1x64x64xbf16>
    %131 = vector.shape_cast %130 : vector<1x64x64xbf16> to vector<64x64xbf16>
    %cst_54 = arith.constant dense<0.000000e+00> : vector<32x64xf32>
    %132 = tpu.matmul %129, %131, %cst_54 {dimension_numbers = #tpu.dot_dimension_numbers<[1], [0], [0], [1], [0, 0, 1, 1], [], []>} : vector<32x64xbf16>, vector<64x64xbf16>, vector<32x64xf32> -> vector<32x64xf32>
    %133 = vector.extract_strided_slice %1 {offsets = [0, 0], sizes = [1, 64], strides = [1, 1]} : vector<3x64xf32> to vector<1x64xf32>
    %134 = vector.broadcast %133 : vector<1x64xf32> to vector<32x64xf32>
    %135 = arith.mulf %132, %134 : vector<32x64xf32>
    %136 = arith.addf %125, %135 : vector<32x64xf32>
    %137 = vector.extract_strided_slice %123 {offsets = [1, 0, 0], sizes = [1, 32, 32], strides = [1, 1, 1]} : vector<3x32x32xbf16> to vector<1x32x32xbf16>
    %138 = vector.shape_cast %137 : vector<1x32x32xbf16> to vector<32x32xbf16>
    %cst_55 = arith.constant dense<0.000000e+00> : vector<32x64xf32>
    %139 = tpu.matmul %138, %122, %cst_55 {dimension_numbers = #tpu.dot_dimension_numbers<[1], [0], [0], [1], [0, 0, 1, 1], [], []>} : vector<32x32xbf16>, vector<32x64xbf16>, vector<32x64xf32> -> vector<32x64xf32>
    %140 = arith.truncf %139 : vector<32x64xf32> to vector<32x64xbf16>
    %141 = vector.extract_strided_slice %0 {offsets = [1, 0, 0], sizes = [1, 64, 64], strides = [1, 1, 1]} : vector<3x64x64xbf16> to vector<1x64x64xbf16>
    %142 = vector.shape_cast %141 : vector<1x64x64xbf16> to vector<64x64xbf16>
    %cst_56 = arith.constant dense<0.000000e+00> : vector<32x64xf32>
    %143 = tpu.matmul %140, %142, %cst_56 {dimension_numbers = #tpu.dot_dimension_numbers<[1], [0], [0], [1], [0, 0, 1, 1], [], []>} : vector<32x64xbf16>, vector<64x64xbf16>, vector<32x64xf32> -> vector<32x64xf32>
    %144 = vector.extract_strided_slice %1 {offsets = [1, 0], sizes = [1, 64], strides = [1, 1]} : vector<3x64xf32> to vector<1x64xf32>
    %145 = vector.broadcast %144 : vector<1x64xf32> to vector<32x64xf32>
    %146 = arith.mulf %143, %145 : vector<32x64xf32>
    %147 = arith.addf %136, %146 : vector<32x64xf32>
    %148 = vector.extract_strided_slice %123 {offsets = [2, 0, 0], sizes = [1, 32, 32], strides = [1, 1, 1]} : vector<3x32x32xbf16> to vector<1x32x32xbf16>
    %149 = vector.shape_cast %148 : vector<1x32x32xbf16> to vector<32x32xbf16>
    %cst_57 = arith.constant dense<0.000000e+00> : vector<32x64xf32>
    %150 = tpu.matmul %149, %122, %cst_57 {dimension_numbers = #tpu.dot_dimension_numbers<[1], [0], [0], [1], [0, 0, 1, 1], [], []>} : vector<32x32xbf16>, vector<32x64xbf16>, vector<32x64xf32> -> vector<32x64xf32>
    %151 = arith.truncf %150 : vector<32x64xf32> to vector<32x64xbf16>
    %152 = vector.extract_strided_slice %0 {offsets = [2, 0, 0], sizes = [1, 64, 64], strides = [1, 1, 1]} : vector<3x64x64xbf16> to vector<1x64x64xbf16>
    %153 = vector.shape_cast %152 : vector<1x64x64xbf16> to vector<64x64xbf16>
    %cst_58 = arith.constant dense<0.000000e+00> : vector<32x64xf32>
    %154 = tpu.matmul %151, %153, %cst_58 {dimension_numbers = #tpu.dot_dimension_numbers<[1], [0], [0], [1], [0, 0, 1, 1], [], []>} : vector<32x64xbf16>, vector<64x64xbf16>, vector<32x64xf32> -> vector<32x64xf32>
    %155 = vector.extract_strided_slice %1 {offsets = [2, 0], sizes = [1, 64], strides = [1, 1]} : vector<3x64xf32> to vector<1x64xf32>
    %156 = vector.broadcast %155 : vector<1x64xf32> to vector<32x64xf32>
    %157 = arith.mulf %154, %156 : vector<32x64xf32>
    %158 = arith.addf %147, %157 : vector<32x64xf32>
    %cst_59 = arith.constant dense<0.000000e+00> : vector<32xf32>
    %159 = vector.multi_reduction <add>, %158, %cst_59 [1] : vector<32x64xf32> to vector<32xf32>
    %160 = vector.shape_cast %159 : vector<32xf32> to vector<32x1xf32>
    %cst_60 = arith.constant 1.562500e-02 : f32
    %161 = vector.broadcast %cst_60 : f32 to vector<32x1xf32>
    %162 = arith.mulf %160, %161 : vector<32x1xf32>
    %163 = arith.mulf %158, %158 : vector<32x64xf32>
    %cst_61 = arith.constant dense<0.000000e+00> : vector<32xf32>
    %164 = vector.multi_reduction <add>, %163, %cst_61 [1] : vector<32x64xf32> to vector<32xf32>
    %165 = vector.shape_cast %164 : vector<32xf32> to vector<32x1xf32>
    %cst_62 = arith.constant 1.562500e-02 : f32
    %166 = vector.broadcast %cst_62 : f32 to vector<32x1xf32>
    %167 = arith.mulf %165, %166 : vector<32x1xf32>
    %168 = arith.mulf %162, %162 : vector<32x1xf32>
    %169 = arith.subf %167, %168 : vector<32x1xf32>
    %c0_63 = arith.constant 0 : index
    %c0_64 = arith.constant 0 : index
    %170 = vector.load %arg13[%c0_63, %c0_64] : memref<32x1xf32, #tpu.memory_space<vmem>>, vector<32x1xf32>
    %cst_65 = arith.constant 9.99999974E-6 : f32
    %171 = vector.broadcast %cst_65 : f32 to vector<32x1xf32>
    %172 = arith.addf %169, %171 : vector<32x1xf32>
    %173 = math.rsqrt %172 : vector<32x1xf32>
    %174 = arith.mulf %170, %173 : vector<32x1xf32>
    %c0_66 = arith.constant 0 : index
    %c0_67 = arith.constant 0 : index
    %175 = vector.load %arg14[%c0_66, %c0_67] : memref<32x1xf32, #tpu.memory_space<vmem>>, vector<32x1xf32>
    %176 = arith.mulf %162, %174 : vector<32x1xf32>
    %177 = arith.subf %175, %176 : vector<32x1xf32>
    %178 = vector.broadcast %174 : vector<32x1xf32> to vector<32x64xf32>
    %179 = arith.mulf %158, %178 : vector<32x64xf32>
    %180 = vector.broadcast %177 : vector<32x1xf32> to vector<32x64xf32>
    %181 = arith.addf %179, %180 : vector<32x64xf32>
    %182 = arith.truncf %181 : vector<32x64xf32> to vector<32x64xbf16>
    %c0_68 = arith.constant 0 : index
    %c0_69 = arith.constant 0 : index
    %c0_70 = arith.constant 0 : index
    %183 = vector.load %arg15[%c0_68, %c0_69, %c0_70] : memref<3x32x32xbf16, #tpu.memory_space<vmem>>, vector<3x32x32xbf16>
    %c0_71 = arith.constant 0 : index
    %c0_72 = arith.constant 0 : index
    %184 = vector.load %arg16[%c0_71, %c0_72] : memref<32x32xbf16, #tpu.memory_space<vmem>>, vector<32x32xbf16>
    %cst_73 = arith.constant dense<0.000000e+00> : vector<32x64xf32>
    %185 = tpu.matmul %184, %182, %cst_73 {dimension_numbers = #tpu.dot_dimension_numbers<[1], [0], [0], [1], [0, 0, 1, 1], [], []>} : vector<32x32xbf16>, vector<32x64xbf16>, vector<32x64xf32> -> vector<32x64xf32>
    %186 = vector.extract_strided_slice %183 {offsets = [0, 0, 0], sizes = [1, 32, 32], strides = [1, 1, 1]} : vector<3x32x32xbf16> to vector<1x32x32xbf16>
    %187 = vector.shape_cast %186 : vector<1x32x32xbf16> to vector<32x32xbf16>
    %cst_74 = arith.constant dense<0.000000e+00> : vector<32x64xf32>
    %188 = tpu.matmul %187, %182, %cst_74 {dimension_numbers = #tpu.dot_dimension_numbers<[1], [0], [0], [1], [0, 0, 1, 1], [], []>} : vector<32x32xbf16>, vector<32x64xbf16>, vector<32x64xf32> -> vector<32x64xf32>
    %189 = arith.truncf %188 : vector<32x64xf32> to vector<32x64xbf16>
    %190 = vector.extract_strided_slice %0 {offsets = [0, 0, 0], sizes = [1, 64, 64], strides = [1, 1, 1]} : vector<3x64x64xbf16> to vector<1x64x64xbf16>
    %191 = vector.shape_cast %190 : vector<1x64x64xbf16> to vector<64x64xbf16>
    %cst_75 = arith.constant dense<0.000000e+00> : vector<32x64xf32>
    %192 = tpu.matmul %189, %191, %cst_75 {dimension_numbers = #tpu.dot_dimension_numbers<[1], [0], [0], [1], [0, 0, 1, 1], [], []>} : vector<32x64xbf16>, vector<64x64xbf16>, vector<32x64xf32> -> vector<32x64xf32>
    %193 = vector.extract_strided_slice %1 {offsets = [0, 0], sizes = [1, 64], strides = [1, 1]} : vector<3x64xf32> to vector<1x64xf32>
    %194 = vector.broadcast %193 : vector<1x64xf32> to vector<32x64xf32>
    %195 = arith.mulf %192, %194 : vector<32x64xf32>
    %196 = arith.addf %185, %195 : vector<32x64xf32>
    %197 = vector.extract_strided_slice %183 {offsets = [1, 0, 0], sizes = [1, 32, 32], strides = [1, 1, 1]} : vector<3x32x32xbf16> to vector<1x32x32xbf16>
    %198 = vector.shape_cast %197 : vector<1x32x32xbf16> to vector<32x32xbf16>
    %cst_76 = arith.constant dense<0.000000e+00> : vector<32x64xf32>
    %199 = tpu.matmul %198, %182, %cst_76 {dimension_numbers = #tpu.dot_dimension_numbers<[1], [0], [0], [1], [0, 0, 1, 1], [], []>} : vector<32x32xbf16>, vector<32x64xbf16>, vector<32x64xf32> -> vector<32x64xf32>
    %200 = arith.truncf %199 : vector<32x64xf32> to vector<32x64xbf16>
    %201 = vector.extract_strided_slice %0 {offsets = [1, 0, 0], sizes = [1, 64, 64], strides = [1, 1, 1]} : vector<3x64x64xbf16> to vector<1x64x64xbf16>
    %202 = vector.shape_cast %201 : vector<1x64x64xbf16> to vector<64x64xbf16>
    %cst_77 = arith.constant dense<0.000000e+00> : vector<32x64xf32>
    %203 = tpu.matmul %200, %202, %cst_77 {dimension_numbers = #tpu.dot_dimension_numbers<[1], [0], [0], [1], [0, 0, 1, 1], [], []>} : vector<32x64xbf16>, vector<64x64xbf16>, vector<32x64xf32> -> vector<32x64xf32>
    %204 = vector.extract_strided_slice %1 {offsets = [1, 0], sizes = [1, 64], strides = [1, 1]} : vector<3x64xf32> to vector<1x64xf32>
    %205 = vector.broadcast %204 : vector<1x64xf32> to vector<32x64xf32>
    %206 = arith.mulf %203, %205 : vector<32x64xf32>
    %207 = arith.addf %196, %206 : vector<32x64xf32>
    %208 = vector.extract_strided_slice %183 {offsets = [2, 0, 0], sizes = [1, 32, 32], strides = [1, 1, 1]} : vector<3x32x32xbf16> to vector<1x32x32xbf16>
    %209 = vector.shape_cast %208 : vector<1x32x32xbf16> to vector<32x32xbf16>
    %cst_78 = arith.constant dense<0.000000e+00> : vector<32x64xf32>
    %210 = tpu.matmul %209, %182, %cst_78 {dimension_numbers = #tpu.dot_dimension_numbers<[1], [0], [0], [1], [0, 0, 1, 1], [], []>} : vector<32x32xbf16>, vector<32x64xbf16>, vector<32x64xf32> -> vector<32x64xf32>
    %211 = arith.truncf %210 : vector<32x64xf32> to vector<32x64xbf16>
    %212 = vector.extract_strided_slice %0 {offsets = [2, 0, 0], sizes = [1, 64, 64], strides = [1, 1, 1]} : vector<3x64x64xbf16> to vector<1x64x64xbf16>
    %213 = vector.shape_cast %212 : vector<1x64x64xbf16> to vector<64x64xbf16>
    %cst_79 = arith.constant dense<0.000000e+00> : vector<32x64xf32>
    %214 = tpu.matmul %211, %213, %cst_79 {dimension_numbers = #tpu.dot_dimension_numbers<[1], [0], [0], [1], [0, 0, 1, 1], [], []>} : vector<32x64xbf16>, vector<64x64xbf16>, vector<32x64xf32> -> vector<32x64xf32>
    %215 = vector.extract_strided_slice %1 {offsets = [2, 0], sizes = [1, 64], strides = [1, 1]} : vector<3x64xf32> to vector<1x64xf32>
    %216 = vector.broadcast %215 : vector<1x64xf32> to vector<32x64xf32>
    %217 = arith.mulf %214, %216 : vector<32x64xf32>
    %218 = arith.addf %207, %217 : vector<32x64xf32>
    %cst_80 = arith.constant dense<0.000000e+00> : vector<32xf32>
    %219 = vector.multi_reduction <add>, %218, %cst_80 [1] : vector<32x64xf32> to vector<32xf32>
    %220 = vector.shape_cast %219 : vector<32xf32> to vector<32x1xf32>
    %cst_81 = arith.constant 1.562500e-02 : f32
    %221 = vector.broadcast %cst_81 : f32 to vector<32x1xf32>
    %222 = arith.mulf %220, %221 : vector<32x1xf32>
    %223 = arith.mulf %218, %218 : vector<32x64xf32>
    %cst_82 = arith.constant dense<0.000000e+00> : vector<32xf32>
    %224 = vector.multi_reduction <add>, %223, %cst_82 [1] : vector<32x64xf32> to vector<32xf32>
    %225 = vector.shape_cast %224 : vector<32xf32> to vector<32x1xf32>
    %cst_83 = arith.constant 1.562500e-02 : f32
    %226 = vector.broadcast %cst_83 : f32 to vector<32x1xf32>
    %227 = arith.mulf %225, %226 : vector<32x1xf32>
    %228 = arith.mulf %222, %222 : vector<32x1xf32>
    %229 = arith.subf %227, %228 : vector<32x1xf32>
    %c0_84 = arith.constant 0 : index
    %c0_85 = arith.constant 0 : index
    %230 = vector.load %arg17[%c0_84, %c0_85] : memref<32x1xf32, #tpu.memory_space<vmem>>, vector<32x1xf32>
    %cst_86 = arith.constant 9.99999974E-6 : f32
    %231 = vector.broadcast %cst_86 : f32 to vector<32x1xf32>
    %232 = arith.addf %229, %231 : vector<32x1xf32>
    %233 = math.rsqrt %232 : vector<32x1xf32>
    %234 = arith.mulf %230, %233 : vector<32x1xf32>
    %c0_87 = arith.constant 0 : index
    %c0_88 = arith.constant 0 : index
    %235 = vector.load %arg18[%c0_87, %c0_88] : memref<32x1xf32, #tpu.memory_space<vmem>>, vector<32x1xf32>
    %236 = arith.mulf %222, %234 : vector<32x1xf32>
    %237 = arith.subf %235, %236 : vector<32x1xf32>
    %238 = vector.broadcast %234 : vector<32x1xf32> to vector<32x64xf32>
    %239 = arith.mulf %218, %238 : vector<32x64xf32>
    %240 = vector.broadcast %237 : vector<32x1xf32> to vector<32x64xf32>
    %241 = arith.addf %239, %240 : vector<32x64xf32>
    %242 = arith.truncf %241 : vector<32x64xf32> to vector<32x64xbf16>
    %c0_89 = arith.constant 0 : index
    %c0_90 = arith.constant 0 : index
    %243 = vector.load %arg19[%c0_89, %c0_90] : memref<64x4xbf16, #tpu.memory_space<vmem>>, vector<64x4xbf16>
    %cst_91 = arith.constant dense<0.000000e+00> : vector<32x4xf32>
    %244 = tpu.matmul %242, %243, %cst_91 {dimension_numbers = #tpu.dot_dimension_numbers<[1], [0], [0], [1], [0, 0, 1, 1], [], []>} : vector<32x64xbf16>, vector<64x4xbf16>, vector<32x4xf32> -> vector<32x4xf32>
    %c0_92 = arith.constant 0 : index
    %c0_93 = arith.constant 0 : index
    %245 = vector.load %arg20[%c0_92, %c0_93] : memref<1x4xf32, #tpu.memory_space<vmem>>, vector<1x4xf32>
    %246 = vector.broadcast %245 : vector<1x4xf32> to vector<32x4xf32>
    %247 = arith.mulf %244, %246 : vector<32x4xf32>
    %c0_94 = arith.constant 0 : index
    %c0_95 = arith.constant 0 : index
    %248 = vector.load %arg21[%c0_94, %c0_95] : memref<100x32xbf16, #tpu.memory_space<vmem>>, vector<100x32xbf16>
    %249 = arith.truncf %247 : vector<32x4xf32> to vector<32x4xbf16>
    %cst_96 = arith.constant dense<0.000000e+00> : vector<100x4xf32>
    %250 = tpu.matmul %248, %249, %cst_96 {dimension_numbers = #tpu.dot_dimension_numbers<[1], [0], [0], [1], [0, 0, 1, 1], [], []>} : vector<100x32xbf16>, vector<32x4xbf16>, vector<100x4xf32> -> vector<100x4xf32>
    %c0_97 = arith.constant 0 : index
    %c0_98 = arith.constant 0 : index
    %251 = vector.load %arg22[%c0_97, %c0_98] : memref<100x1xf32, #tpu.memory_space<vmem>>, vector<100x1xf32>
    %252 = vector.broadcast %251 : vector<100x1xf32> to vector<100x4xf32>
    %253 = arith.addf %250, %252 : vector<100x4xf32>
    %c0_99 = arith.constant 0 : index
    %c0_100 = arith.constant 0 : index
    %254 = vector.load %arg23[%c0_99, %c0_100] : memref<100x4xf32, #tpu.memory_space<vmem>>, vector<100x4xf32>
    %255 = arith.mulf %253, %254 : vector<100x4xf32>
    %c0_101 = arith.constant 0 : index
    %c0_102 = arith.constant 0 : index
    %256 = vector.load %arg24[%c0_101, %c0_102] : memref<128x100xbf16, #tpu.memory_space<vmem>>, vector<128x100xbf16>
    %257 = arith.truncf %255 : vector<100x4xf32> to vector<100x4xbf16>
    %cst_103 = arith.constant dense<0.000000e+00> : vector<128x4xf32>
    %258 = tpu.matmul %256, %257, %cst_103 {dimension_numbers = #tpu.dot_dimension_numbers<[1], [0], [0], [1], [0, 0, 1, 1], [], []>} : vector<128x100xbf16>, vector<100x4xbf16>, vector<128x4xf32> -> vector<128x4xf32>
    %c0_104 = arith.constant 0 : index
    %c0_105 = arith.constant 0 : index
    %259 = vector.load %arg25[%c0_104, %c0_105] : memref<128x1xf32, #tpu.memory_space<vmem>>, vector<128x1xf32>
    %260 = vector.broadcast %259 : vector<128x1xf32> to vector<128x4xf32>
    %261 = arith.addf %258, %260 : vector<128x4xf32>
    %c0_106 = arith.constant 0 : index
    %c0_107 = arith.constant 0 : index
    %262 = vector.load %arg26[%c0_106, %c0_107] : memref<128x4xf32, #tpu.memory_space<vmem>>, vector<128x4xf32>
    tpu.vector_store %arg26[%c0_106, %c0_107], %261 {strides = array<i32>} : memref<128x4xf32, #tpu.memory_space<vmem>>, vector<128x4xf32>,
    return
  }
}

</mosaic_0001>

<bundles_post_ra>
// kernel: tpu_custom_call.1
= control target key start
LH: loop header
LB: loop body
LE: loop exit
PB: predicated region body
PF: predicated region fallthrough
CT: control target
= control target key end

     0   :  { %vm217_vm0 = vcmask 1043456   ;;  %v5186_v0 = vmov 0.0   ;;  %vm5187_vm1 = vmmov 0   ;;  %vm195_vm2 = vcmask 64512   ;;  %s6838_s0 = inlined_call_operand.vmem [shape: bf16[8,64], index: 0, kind: input, shape index: {}]   ;;  %s6839_s3 = inlined_call_operand.vmem [shape: bf16[3,100,8], index: 3, kind: input, shape index: {}]   ;;  %s6840_s1 = inlined_call_operand.vmem [shape: bf16[3,64,64], index: 1, kind: input, shape index: {}]   ;;  %s6841_s4 = inlined_call_operand.vmem [shape: bf16[100,8], index: 4, kind: input, shape index: {}]   ;;  %s6842_s2 = inlined_call_operand.vmem [shape: f32[3,64], index: 2, kind: input, shape index: {}]   ;;  %s6843_s5 = inlined_call_operand.vmem [shape: f32[100,1], index: 5, kind: input, shape index: {}]   ;;  %s6844_s6 = inlined_call_operand.vmem [shape: f32[100,1], index: 6, kind: input, shape index: {}]   ;;  %s6845_s7 = inlined_call_operand.vmem [shape: bf16[3,32,100], index: 7, kind: input, shape index: {}]   ;;  %s6846_s8 = inlined_call_operand.vmem [shape: bf16[32,100], index: 8, kind: input, shape index: {}]   ;;  %s6847_s9 = inlined_call_operand.vmem [shape: f32[32,1], index: 9, kind: input, shape index: {}]   ;;  %s6848_s10 = inlined_call_operand.vmem [shape: f32[32,1], index: 10, kind: input, shape index: {}]   ;;  %s6849_s11 = inlined_call_operand.vmem [shape: bf16[3,32,32], index: 11, kind: input, shape index: {}]   ;;  %s6850_s12 = inlined_call_operand.vmem [shape: bf16[32,32], index: 12, kind: input, shape index: {}]   ;;  %s6851_s13 = inlined_call_operand.vmem [shape: f32[32,1], index: 13, kind: input, shape index: {}]   ;;  %s6852_s14 = inlined_call_operand.vmem [shape: f32[32,1], index: 14, kind: input, shape index: {}]   ;;  %s6853_s15 = inlined_call_operand.vmem [shape: bf16[3,32,32], index: 15, kind: input, shape index: {}]   ;;  %s6854_s16 = inlined_call_operand.vmem [shape: bf16[32,32], index: 16, kind: input, shape index: {}]   ;;  %s6855_s17 = inlined_call_operand.vmem [shape: f32[32,1], index: 17, kind: input, shape index: {}]   ;;  %s6856_s18 = inlined_call_operand.vmem [shape: f32[32,1], index: 18, kind: input, shape index: {}]   ;;  %s6857_s19 = inlined_call_operand.vmem [shape: bf16[64,4], index: 19, kind: input, shape index: {}]   ;;  %s6858_s22 = inlined_call_operand.vmem [shape: f32[100,1], index: 22, kind: input, shape index: {}]   ;;  %s6859_s25 = inlined_call_operand.vmem [shape: f32[128,1], index: 25, kind: input, shape index: {}]   ;;  %s6860_s21 = inlined_call_operand.vmem [shape: bf16[100,32], index: 21, kind: input, shape index: {}]   ;;  %s6861_s20 = inlined_call_operand.vmem [shape: f32[1,4], index: 20, kind: input, shape index: {}]   ;;  %s6862_s24 = inlined_call_operand.vmem [shape: bf16[128,100], index: 24, kind: input, shape index: {}]   ;;  %s6863_s23 = inlined_call_operand.vmem [shape: f32[100,4], index: 23, kind: input, shape index: {}]   ;;  %s6864_s26 = inlined_call_operand.vmem [shape: f32[128,4], index: 26, kind: output, shape index: {}]  }
   0x1   :  { %6874 = sst [smem:[#allocation2_spill]] %s6838_s0  ;;  %4476 = vmatprep.subr.bf16.mxu0 %v5186_v0  ;;  %4478 = vmatprep.mubr.msk.bf16.mxu0 %vm5187_vm1, %v5186_v0  ;;  %vm340_vm3 = vcmask 523264   ;;  %vm1269_vm4 = vcmask 519168   ;;  %vm1657_vm5 = vcmask 818176   ;;  %vm1664_vm6 = vcmask 1041408  }
   0x2   :  { %6875 = sst [smem:[#allocation3_spill]] %s6839_s3  ;;  %4506 = vmatprep.subr.bf16.mxu1 %v5186_v0  ;;  %4514 = vmatprep.mubr.msk.bf16.mxu1 %vm5187_vm1, %v5186_v0  ;;  %vm2251_vm7 = vcmask 261120   ;;  %vm4046_vm8 = vcmask 31744  }
   0x3   :  { %6876 = sst [smem:[#allocation4_spill]] %s6840_s1 }
   0x4   :  { %6877 = sst [smem:[#allocation5_spill]] %s6841_s4 }
   0x5   :  { %6878 = sst [smem:[#allocation6_spill]] %s6842_s2  ;;  %s6886_s2 = sld [smem:[#allocation3_spill]] }
   0x6   :  { %6879 = sst [smem:[#allocation7_spill]] %s6843_s5  ;;  %s6888_s4 = sld [smem:[#allocation5_spill]] }
   0x7   :  { %6880 = sst [smem:[#allocation8_spill]] %s6844_s6  ;;  %s6889_s27 = sld [smem:[#allocation6_spill]] }
   0x8   :  { %6881 = sst [smem:[#allocation9_spill]] %s6845_s7  ;;  %s6885_s7 = sld [smem:[#allocation2_spill]] }
   0x9   :  { %6882 = sst [smem:[#allocation10_spill]] %s6846_s8 }
   0xa   :  { %6883 = sst [smem:[#allocation11_spill]] %s6847_s9  ;;  %s6887_s9 = sld [smem:[#allocation4_spill]] }
   0xb   :  { %6884 = sst [smem:[#allocation12_spill]] %s6848_s10  ;;  %v5032_v3 = vld [vmem:[%s6886_s2] sm:$0xff]   ;;  %v5033_v5 = vld [vmem:[%s6886_s2 + $0x8] sm:$0xff]   ;;  %v5034_v8 = vld [vmem:[%s6886_s2 + $0x10] sm:$0xff]   ;;  %s6890_s10 = sld [smem:[#allocation7_spill]] }
   0xc   :  { %v5035_v9 = vld [vmem:[%s6886_s2 + $0x18] sm:$0xff]   ;;  %v5036_v10 = vld [vmem:[%s6886_s2 + $0x20] sm:$0xff]   ;;  %v5037_v11 = vld [vmem:[%s6886_s2 + $0x28] sm:$0xff]   ;;  %s6895_s6 = sld [smem:[#allocation12_spill]] }
   0xd   :  { %v5038_v12 = vld [vmem:[%s6886_s2 + $0x30] ss:$0 sps:$4 sm:$0x33]   ;;  %v5043_v14 = vld [vmem:[%s6888_s4] sm:$0xff]   ;;  %v5044_v15 = vld [vmem:[%s6888_s4 + $0x8] sm:$0xff]  }
   0xe   :  { %v109_v1 = vld [vmem:[%s6885_s7] sm:$0xf]  ;;  %v5045_v16 = vld [vmem:[%s6888_s4 + $0x10] sm:$0xff]   ;;  %v5046_v17 = vld [vmem:[%s6888_s4 + $0x18] sm:$0xff]   ;;  %s6893_s7 = sld [smem:[#allocation10_spill]] }
   0xf   :  { %v5330_v2 = vsel %vm217_vm0, %v109_v1, 0  ;;  %v5047_v18 = vld [vmem:[%s6888_s4 + $0x20] sm:$0xff]   ;;  %v5048_v19 = vld [vmem:[%s6888_s4 + $0x28] sm:$0xff]   ;;  %v5049_v20 = vld [vmem:[%s6888_s4 + $0x30] ss:$0 sps:$4 sm:$0x33]  }
  0x10   :  { %4477 = vmatpush3.bf16.msra.mxu0 %v5330_v2  ;;  %v5039_v4 = vld [vmem:[%s6887_s9] sm:$0xff]   ;;  %v5040_v6 = vld [vmem:[%s6887_s9 + $0x8] sm:$0xff]   ;;  %v5041_v7 = vld [vmem:[%s6887_s9 + $0x10] sm:$0xff]   ;;  %s6891_s4 = sld [smem:[#allocation8_spill]] }
  0x11   :  { %4542 = vmatprep.subr.bf16.mxu0 %v5186_v0  ;;  %4507 = vmatpush3.bf16.msra.mxu1 %v5039_v4  ;;  %v5042_v13 = vld [vmem:[%s6887_s9 + $0x18] sm:$0xff]   ;;  %v5052_v58 = vld [vmem:[%s6886_s2 + $0x44] sm:$0xff]   ;;  %v5053_v59 = vld [vmem:[%s6886_s2 + $0x4c] sm:$0xff]  }
  0x12   :  { %4508 = vmatprep.subr.bf16.mxu1 %v5186_v0  ;;  %v5050_v56 = vld [vmem:[%s6886_s2 + $0x34] sm:$0xff]   ;;  %v5051_v57 = vld [vmem:[%s6886_s2 + $0x3c] sm:$0xff]  }
  0x13   :  { %4479 = vmatmul.mubr.msk.bf16.vlgmr.msra.gmra.mrb[0].mxu0 %vm195_vm2, %v5032_v3  ;;  %v5054_v60 = vld [vmem:[%s6886_s2 + $0x54] sm:$0xff]  }
  0x14   :  { %4482 = vmatprep.mubr.msk.bf16.mxu0 %vm5187_vm1, %v5186_v0  ;;  %4543 = vmatpush3.bf16.msra.mxu0 %v5330_v2 }
  0x15   :  { %4602 = vmatprep.subr.bf16.mxu0 %v5186_v0  ;;  %4509 = vmatpush3.bf16.msra.mxu1 %v5040_v6  ;;  %v5064_v6 = vld [vmem:[%s6887_s9 + $0x20] sm:$0xff]  }
  0x16   :  { %4510 = vmatprep.subr.bf16.mxu1 %v5186_v0 }
  0x19   :  { %4511 = vmatpush3.bf16.msra.mxu1 %v5041_v7 }
  0x1a   :  { %4512 = vmatprep.subr.bf16.mxu1 %v5186_v0 }
  0x1b   :  { %4483 = vmatmul.mubr.msk.bf16.gmra.mrb[4].mxu0 %vm195_vm2, %v5033_v5 }
  0x1c   :  { %4486 = vmatprep.mubr.msk.bf16.mxu0 %vm5187_vm1, %v5186_v0 }
  0x1d   :  { %4513 = vmatpush3.bf16.msra.mxu1 %v5042_v13  ;;  %v5057_v13 = vld [vmem:[%s6886_s2 + $0x68] sm:$0xff]  }
  0x1e   :  { %4572 = vmatprep.subr.bf16.mxu1 %v5186_v0 }
  0x23   :  { %4487 = vmatmul.mubr.msk.bf16.gmra.mrb[8].mxu0 %vm195_vm2, %v5034_v8  ;;  %v5056_v8 = vld [vmem:[%s6886_s2 + $0x64] ss:$0 sps:$4 sm:$0x33]  }
  0x24   :  { %4490 = vmatprep.mubr.msk.bf16.mxu0 %vm5187_vm1, %v5186_v0 }
  0x2b   :  { %4491 = vmatmul.mubr.msk.bf16.gmra.mrb[12].mxu0 %vm195_vm2, %v5035_v9 }
  0x2c   :  { %4494 = vmatprep.mubr.msk.bf16.mxu0 %vm5187_vm1, %v5186_v0 }
  0x33   :  { %4495 = vmatmul.mubr.msk.bf16.gmra.mrb[16].mxu0 %vm195_vm2, %v5036_v10 }
  0x34   :  { %4498 = vmatprep.mubr.msk.bf16.mxu0 %vm5187_vm1, %v5186_v0 }
  0x3b   :  { %4499 = vmatmul.mubr.msk.bf16.gmra.mrb[20].mxu0 %vm195_vm2, %v5037_v11 }
  0x3c   :  { %4502 = vmatprep.mubr.msk.bf16.mxu0 %vm5187_vm1, %v5186_v0 }
  0x43   :  { %4503 = vmatmul.mubr.msk.bf16.gmra.mrb[24].mxu0 %vm195_vm2, %v5038_v12 }
  0x44   :  { %4544 = vmatprep.mubr.msk.bf16.mxu0 %vm5187_vm1, %v5186_v0 }
  0x4b   :  { %4545 = vmatmul.mubr.msk.bf16.vlgmr.msra.gmra.mrb[28].mxu0 %vm195_vm2, %v5043_v14 }
  0x4c   :  { %4548 = vmatprep.mubr.msk.bf16.mxu0 %vm5187_vm1, %v5186_v0  ;;  %4603 = vmatpush3.bf16.msra.mxu0 %v5064_v6 }
  0x4d   :  { %4604 = vmatprep.subr.bf16.mxu0 %v5186_v0 }
  0x53   :  { %4549 = vmatmul.mubr.msk.bf16.gmra.mrb[32].mxu0 %vm195_vm2, %v5044_v15  ;;  %v5065_v15 = vld [vmem:[%s6887_s9 + $0x28] sm:$0xff]  }
  0x54   :  { %4552 = vmatprep.mubr.msk.bf16.mxu0 %vm5187_vm1, %v5186_v0  ;;  %4605 = vmatpush3.bf16.msra.mxu0 %v5065_v15 }
  0x55   :  { %4606 = vmatprep.subr.bf16.mxu0 %v5186_v0 }
  0x5b   :  { %4553 = vmatmul.mubr.msk.bf16.gmra.mrb[36].mxu0 %vm195_vm2, %v5045_v16 }
  0x5c   :  { %4556 = vmatprep.mubr.msk.bf16.mxu0 %vm5187_vm1, %v5186_v0 }
  0x63   :  { %4557 = vmatmul.mubr.msk.bf16.gmra.mrb[40].mxu0 %vm195_vm2, %v5046_v17 }
  0x64   :  { %4560 = vmatprep.mubr.msk.bf16.mxu0 %vm5187_vm1, %v5186_v0 }
  0x6b   :  { %4561 = vmatmul.mubr.msk.bf16.gmra.mrb[44].mxu0 %vm195_vm2, %v5047_v18 }
  0x6c   :  { %4564 = vmatprep.mubr.msk.bf16.mxu0 %vm5187_vm1, %v5186_v0 }
  0x73   :  { %4565 = vmatmul.mubr.msk.bf16.gmra.mrb[48].mxu0 %vm195_vm2, %v5048_v19  ;;  %v5058_v19 = vld [vmem:[%s6886_s2 + $0x70] sm:$0xff]  }
  0x74   :  { %4568 = vmatprep.mubr.msk.bf16.mxu0 %vm5187_vm1, %v5186_v0 }
  0x7b   :  { %4569 = vmatmul.mubr.msk.bf16.gmra.mrb[52].mxu0 %vm195_vm2, %v5049_v20 }
  0x7c   :  { %4610 = vmatprep.mubr.msk.bf16.mxu0 %vm5187_vm1, %v5186_v0 }
  0xe6   :  { %v255_v21 = vpop.f32.mrb[0].mxu0 }
  0xe7   :  { %v4480_v22 = vpop.f32.mrb[1].mxu0 }
  0xe8   :  { %v258_v23 = vpop.f32.mrb[2].mxu0 }
  0xe9   :  { %v309_v24 = vpack.c.bf16 %v258_v23, %v255_v21  ;;  %v4481_v25 = vpop.f32.mrb[3].mxu0 }
  0xea   :  { %v5066_v25 = vld [vmem:[%s6887_s9 + $0x30] sm:$0xff]  }
  0xeb   :  { %4515 = vmatmul.mubr.msk.bf16.vlgmr.msra.gmra.mrb[0].mxu1 %vm340_vm3, %v309_v24  ;;  %v5059_v24 = vld [vmem:[%s6886_s2 + $0x78] sm:$0xff]   ;;  %4607 = vmatpush3.bf16.msra.mxu0 %v5066_v25 }
  0xec   :  { %4518 = vmatprep.mubr.msk.bf16.mxu1 %vm5187_vm1, %v5186_v0  ;;  %4573 = vmatpush3.bf16.msra.mxu1 %v5330_v2 }
  0xed   :  { %4638 = vmatprep.subr.bf16.mxu1 %v5186_v0  ;;  %4608 = vmatprep.subr.bf16.mxu0 %v5186_v0 }
  0xee   :  { %v263_v26 = vpop.f32.mrb[4].mxu0 }
  0xef   :  { %v4484_v27 = vpop.f32.mrb[5].mxu0 }
  0xf0   :  { %v266_v28 = vpop.f32.mrb[6].mxu0 }
  0xf1   :  { %v310_v29 = vpack.c.bf16 %v266_v28, %v263_v26  ;;  %v4485_v30 = vpop.f32.mrb[7].mxu0 }
  0xf2   :  { %v5060_v30 = vld [vmem:[%s6886_s2 + $0x80] sm:$0xff]  }
  0xf3   :  { %4519 = vmatmul.mubr.msk.bf16.gmra.mrb[4].mxu1 %vm340_vm3, %v310_v29 }
  0xf4   :  { %4522 = vmatprep.mubr.msk.bf16.mxu1 %vm5187_vm1, %v5186_v0 }
  0xf6   :  { %v271_v31 = vpop.f32.mrb[8].mxu0 }
  0xf7   :  { %v4488_v32 = vpop.f32.mrb[9].mxu0 }
  0xf8   :  { %v274_v33 = vpop.f32.mrb[10].mxu0  ;;  %v5067_v32 = vld [vmem:[%s6887_s9 + $0x38] sm:$0xff]  }
  0xf9   :  { %v311_v34 = vpack.c.bf16 %v274_v33, %v271_v31  ;;  %v4489_v35 = vpop.f32.mrb[11].mxu0  ;;  %4609 = vmatpush3.bf16.msra.mxu0 %v5067_v32 }
  0xfa   :  { %4668 = vmatprep.subr.bf16.mxu0 %v5186_v0 }
  0xfb   :  { %4523 = vmatmul.mubr.msk.bf16.gmra.mrb[8].mxu1 %vm340_vm3, %v311_v34 }
  0xfc   :  { %4526 = vmatprep.mubr.msk.bf16.mxu1 %vm5187_vm1, %v5186_v0 }
  0xfe   :  { %v279_v36 = vpop.f32.mrb[12].mxu0 }
  0xff   :  { %v4492_v37 = vpop.f32.mrb[13].mxu0 }
 0x100   :  { %v282_v38 = vpop.f32.mrb[14].mxu0  ;;  %v5062_v37 = vld [vmem:[%s6886_s2 + $0x90] sm:$0xff]  }
 0x101   :  { %v312_v39 = vpack.c.bf16 %v282_v38, %v279_v36  ;;  %v4493_v40 = vpop.f32.mrb[15].mxu0  ;;  %v5061_v36 = vld [vmem:[%s6886_s2 + $0x88] sm:$0xff]   ;;  %v5063_v38 = vld [vmem:[%s6886_s2 + $0x98] ss:$0 sps:$4 sm:$0x33]  }
 0x103   :  { %4527 = vmatmul.mubr.msk.bf16.gmra.mrb[12].mxu1 %vm340_vm3, %v312_v39  ;;  %v450_v39 = vlaneseq }
 0x104   :  { %4530 = vmatprep.mubr.msk.bf16.mxu1 %vm5187_vm1, %v5186_v0 }
 0x105   :  { %v5587_v40 = vshrl.u32 %v450_v39, 7 }
 0x106   :  { %v287_v41 = vpop.f32.mrb[16].mxu0 }
 0x107   :  { %v4496_v42 = vpop.f32.mrb[17].mxu0 }
 0x108   :  { %v290_v43 = vpop.f32.mrb[18].mxu0  ;;  %v5593_v42 = vld [vmem:[%s6889_s27] sm:$0x7] }
 0x109   :  { %v313_v44 = vpack.c.bf16 %v290_v43, %v287_v41  ;;  %v4497_v45 = vpop.f32.mrb[19].mxu0  ;;  %v452_v41 = vsub.s32 0, %v5587_v40 }
 0x10b   :  { %4531 = vmatmul.mubr.msk.bf16.gmra.mrb[16].mxu1 %vm340_vm3, %v313_v44  ;;  %v5596_v43 = vrot.slane %v5593_v42, %v452_v41 }
 0x10c   :  { %4534 = vmatprep.mubr.msk.bf16.mxu1 %vm5187_vm1, %v5186_v0 }
 0x10e   :  { %v295_v46 = vpop.f32.mrb[20].mxu0 }
 0x10f   :  { %v4500_v47 = vpop.f32.mrb[21].mxu0 }
 0x110   :  { %v298_v48 = vpop.f32.mrb[22].mxu0 }
 0x111   :  { %v314_v49 = vpack.c.bf16 %v298_v48, %v295_v46  ;;  %v4501_v50 = vpop.f32.mrb[23].mxu0 }
 0x113   :  { %4535 = vmatmul.mubr.msk.bf16.gmra.mrb[20].mxu1 %vm340_vm3, %v314_v49 }
 0x114   :  { %4538 = vmatprep.mubr.msk.bf16.mxu1 %vm5187_vm1, %v5186_v0 }
 0x116   :  { %v303_v51 = vpop.f32.mrb[24].mxu0 }
 0x117   :  { %v315_v52 = vpack.c.bf16 %v303_v51, %v303_v51  ;;  %v4504_v53 = vpop.f32.mrb[25].mxu0 }
 0x118   :  { %v306_v54 = vpop.f32.mrb[26].mxu0 }
 0x119   :  { %v4505_v55 = vpop.f32.mrb[27].mxu0 }
 0x11b   :  { %4539 = vmatmul.mubr.msk.bf16.gmra.mrb[24].mxu1 %vm340_vm3, %v315_v52 }
 0x11c   :  { %4574 = vmatprep.mubr.msk.bf16.mxu1 %vm5187_vm1, %v5186_v0 }
 0x11e   :  { %v5490_v61 = vpop.f32.mrb[28].mxu0 }
 0x11f   :  { %v4546_v62 = vpop.f32.mrb[29].mxu0 }
 0x120   :  { %v5492_v63 = vpop.f32.mrb[30].mxu0 }
 0x121   :  { %v4547_v1 = vpop.f32.mrb[31].mxu0 }
 0x123   :  { %4575 = vmatmul.mubr.msk.bf16.vlgmr.msra.gmra.mrb[28].mxu1 %vm195_vm2, %v5050_v56 }
 0x124   :  { %4578 = vmatprep.mubr.msk.bf16.mxu1 %vm5187_vm1, %v5186_v0  ;;  %4639 = vmatpush3.bf16.msra.mxu1 %v5330_v2  ;;  %v5055_v2 = vld [vmem:[%s6886_s2 + $0x5c] sm:$0xff]   ;;  %s6892_s2 = sld [smem:[#allocation9_spill]] }
 0x126   :  { %v5500_v3 = vpop.f32.mrb[32].mxu0 }
 0x127   :  { %v4550_v4 = vpop.f32.mrb[33].mxu0 }
 0x128   :  { %v5502_v5 = vpop.f32.mrb[34].mxu0 }
 0x129   :  { %v4551_v7 = vpop.f32.mrb[35].mxu0 }
 0x12b   :  { %4579 = vmatmul.mubr.msk.bf16.gmra.mrb[32].mxu1 %vm195_vm2, %v5051_v57 }
 0x12c   :  { %4582 = vmatprep.mubr.msk.bf16.mxu1 %vm5187_vm1, %v5186_v0 }
 0x12e   :  { %v5514_v9 = vpop.f32.mrb[36].mxu0 }
 0x12f   :  { %v4554_v10 = vpop.f32.mrb[37].mxu0 }
 0x130   :  { %v5516_v11 = vpop.f32.mrb[38].mxu0 }
 0x131   :  { %v4555_v12 = vpop.f32.mrb[39].mxu0 }
 0x133   :  { %4583 = vmatmul.mubr.msk.bf16.gmra.mrb[36].mxu1 %vm195_vm2, %v5052_v58 }
 0x134   :  { %4586 = vmatprep.mubr.msk.bf16.mxu1 %vm5187_vm1, %v5186_v0 }
 0x136   :  { %v5524_v14 = vpop.f32.mrb[40].mxu0 }
 0x137   :  { %v4558_v16 = vpop.f32.mrb[41].mxu0 }
 0x138   :  { %v5529_v17 = vpop.f32.mrb[42].mxu0 }
 0x139   :  { %v4559_v18 = vpop.f32.mrb[43].mxu0 }
 0x13b   :  { %4587 = vmatmul.mubr.msk.bf16.gmra.mrb[40].mxu1 %vm195_vm2, %v5053_v59 }
 0x13c   :  { %4590 = vmatprep.mubr.msk.bf16.mxu1 %vm5187_vm1, %v5186_v0 }
 0x13e   :  { %v5538_v20 = vpop.f32.mrb[44].mxu0 }
 0x13f   :  { %v4562_v21 = vpop.f32.mrb[45].mxu0 }
 0x140   :  { %v5540_v22 = vpop.f32.mrb[46].mxu0 }
 0x141   :  { %v4563_v23 = vpop.f32.mrb[47].mxu0 }
 0x143   :  { %4591 = vmatmul.mubr.msk.bf16.gmra.mrb[44].mxu1 %vm195_vm2, %v5054_v60 }
 0x144   :  { %4594 = vmatprep.mubr.msk.bf16.mxu1 %vm5187_vm1, %v5186_v0 }
 0x146   :  { %v5551_v26 = vpop.f32.mrb[48].mxu0 }
 0x147   :  { %v4566_v27 = vpop.f32.mrb[49].mxu0 }
 0x148   :  { %v5553_v28 = vpop.f32.mrb[50].mxu0 }
 0x149   :  { %v4567_v29 = vpop.f32.mrb[51].mxu0 }
 0x14b   :  { %4595 = vmatmul.mubr.msk.bf16.gmra.mrb[48].mxu1 %vm195_vm2, %v5055_v2 }
 0x14c   :  { %4598 = vmatprep.mubr.msk.bf16.mxu1 %vm5187_vm1, %v5186_v0 }
 0x14e   :  { %v5562_v31 = vpop.f32.mrb[52].mxu0 }
 0x14f   :  { %v4570_v33 = vpop.f32.mrb[53].mxu0 }
 0x150   :  { %v606_v34 = vpop.f32.mrb[54].mxu0 }
 0x151   :  { %v4571_v35 = vpop.f32.mrb[55].mxu0 }
 0x153   :  { %4599 = vmatmul.mubr.msk.bf16.gmra.mrb[52].mxu1 %vm195_vm2, %v5056_v8 }
 0x154   :  { %4640 = vmatprep.mubr.msk.bf16.mxu1 %vm5187_vm1, %v5186_v0 }
 0x15b   :  { %4641 = vmatmul.mubr.msk.bf16.vlgmr.msra.gmra.mrb[56].mxu1 %vm195_vm2, %v5057_v13 }
 0x15c   :  { %4644 = vmatprep.mubr.msk.bf16.mxu1 %vm5187_vm1, %v5186_v0 }
 0x163   :  { %4645 = vmatmul.mubr.msk.bf16.gmra.mrb[60].mxu1 %vm195_vm2, %v5058_v19 }
 0x164   :  { %4648 = vmatprep.mubr.msk.bf16.mxu1 %vm5187_vm1, %v5186_v0 }
 0x16b   :  { %4649 = vmatmul.mubr.msk.bf16.gmra.mrb[64].mxu1 %vm195_vm2, %v5059_v24 }
 0x16c   :  { %4652 = vmatprep.mubr.msk.bf16.mxu1 %vm5187_vm1, %v5186_v0 }
 0x173   :  { %4653 = vmatmul.mubr.msk.bf16.gmra.mrb[68].mxu1 %vm195_vm2, %v5060_v30 }
 0x174   :  { %4656 = vmatprep.mubr.msk.bf16.mxu1 %vm5187_vm1, %v5186_v0 }
 0x17b   :  { %4657 = vmatmul.mubr.msk.bf16.gmra.mrb[72].mxu1 %vm195_vm2, %v5061_v36 }
 0x17c   :  { %4660 = vmatprep.mubr.msk.bf16.mxu1 %vm5187_vm1, %v5186_v0 }
 0x183   :  { %4661 = vmatmul.mubr.msk.bf16.gmra.mrb[76].mxu1 %vm195_vm2, %v5062_v37 }
 0x184   :  { %4664 = vmatprep.mubr.msk.bf16.mxu1 %vm5187_vm1, %v5186_v0 }
 0x18b   :  { %4665 = vmatmul.mubr.msk.bf16.gmra.mrb[80].mxu1 %vm195_vm2, %v5063_v38 }
 0x1be   :  { %v396_v44 = vpop.f32.mrb[0].mxu1 }
 0x1bf   :  { %v454_v45 = vmul.f32 %v5596_v43, %v396_v44  ;;  %v4516_v46 = vpop.f32.mrb[1].mxu1 }
 0x1c0   :  { %v399_v47 = vpop.f32.mrb[2].mxu1 }
 0x1c1   :  { %v455_v48 = vmul.f32 %v5596_v43, %v399_v47  ;;  %v5601_v49 = vadd.f32 %v5490_v61, %v454_v45  ;;  %v4517_v50 = vpop.f32.mrb[3].mxu1 }
 0x1c3   :  { %v5604_v51 = vadd.f32 %v5492_v63, %v455_v48  ;;  %v5070_v48 = vld [vmem:[%s6887_s9 + $0x50] sm:$0xff]  }
 0x1c6   :  { %v404_v52 = vpop.f32.mrb[4].mxu1 }
 0x1c7   :  { %v456_v53 = vmul.f32 %v5596_v43, %v404_v52  ;;  %v4520_v54 = vpop.f32.mrb[5].mxu1 }
 0x1c8   :  { %v407_v55 = vpop.f32.mrb[6].mxu1 }
 0x1c9   :  { %v457_v56 = vmul.f32 %v5596_v43, %v407_v55  ;;  %v5609_v57 = vadd.f32 %v5500_v3, %v456_v53  ;;  %v4521_v58 = vpop.f32.mrb[7].mxu1  ;;  %v5071_v53 = vld [vmem:[%s6887_s9 + $0x58] sm:$0xff]  }
 0x1cb   :  { %v5612_v59 = vadd.f32 %v5502_v5, %v457_v56 }
 0x1ce   :  { %v412_v60 = vpop.f32.mrb[8].mxu1 }
 0x1cf   :  { %v458_v61 = vmul.f32 %v5596_v43, %v412_v60  ;;  %v4524_v62 = vpop.f32.mrb[9].mxu1 }
 0x1d0   :  { %v415_v63 = vpop.f32.mrb[10].mxu1 }
 0x1d1   :  { %v459_v1 = vmul.f32 %v5596_v43, %v415_v63  ;;  %v5617_v2 = vadd.f32 %v5514_v9, %v458_v61  ;;  %v4525_v4 = vpop.f32.mrb[11].mxu1 }
 0x1d3   :  { %v5620_v6 = vadd.f32 %v5516_v11, %v459_v1 }
 0x1d6   :  { %v420_v3 = vpop.f32.mrb[12].mxu1 }
 0x1d7   :  { %v460_v7 = vmul.f32 %v5596_v43, %v420_v3  ;;  %v4528_v8 = vpop.f32.mrb[13].mxu1 }
 0x1d8   :  { %v423_v5 = vpop.f32.mrb[14].mxu1 }
 0x1d9   :  { %v461_v10 = vmul.f32 %v5596_v43, %v423_v5  ;;  %v5625_v12 = vadd.f32 %v5524_v14, %v460_v7  ;;  %v4529_v13 = vpop.f32.mrb[15].mxu1 }
 0x1db   :  { %v5628_v15 = vadd.f32 %v5529_v17, %v461_v10 }
 0x1de   :  { %v428_v9 = vpop.f32.mrb[16].mxu1 }
 0x1df   :  { %v462_v16 = vmul.f32 %v5596_v43, %v428_v9  ;;  %v4532_v18 = vpop.f32.mrb[17].mxu1 }
 0x1e0   :  { %v431_v11 = vpop.f32.mrb[18].mxu1 }
 0x1e1   :  { %v463_v19 = vmul.f32 %v5596_v43, %v431_v11  ;;  %v5633_v21 = vadd.f32 %v5538_v20, %v462_v16  ;;  %v4533_v23 = vpop.f32.mrb[19].mxu1 }
 0x1e3   :  { %v5636_v24 = vadd.f32 %v5540_v22, %v463_v19 }
 0x1e6   :  { %v436_v14 = vpop.f32.mrb[20].mxu1 }
 0x1e7   :  { %v464_v25 = vmul.f32 %v5596_v43, %v436_v14  ;;  %v4536_v27 = vpop.f32.mrb[21].mxu1 }
 0x1e8   :  { %v439_v17 = vpop.f32.mrb[22].mxu1 }
 0x1e9   :  { %v465_v29 = vmul.f32 %v5596_v43, %v439_v17  ;;  %v5641_v30 = vadd.f32 %v5551_v26, %v464_v25  ;;  %v4537_v32 = vpop.f32.mrb[23].mxu1  ;;  %v5068_v26 = vld [vmem:[%s6887_s9 + $0x40] sm:$0xff]  }
 0x1eb   :  { %v5644_v33 = vadd.f32 %v5553_v28, %v465_v29  ;;  %v5069_v28 = vld [vmem:[%s6887_s9 + $0x48] sm:$0xff]  }
 0x1ee   :  { %v444_v20 = vpop.f32.mrb[24].mxu1 }
 0x1ef   :  { %v466_v34 = vmul.f32 %v5596_v43, %v444_v20  ;;  %v4540_v35 = vpop.f32.mrb[25].mxu1 }
 0x1f0   :  { %v447_v22 = vpop.f32.mrb[26].mxu1 }
 0x1f1   :  { %v5648_v36 = vadd.f32 %v5562_v31, %v466_v34  ;;  %v4541_v37 = vpop.f32.mrb[27].mxu1 }
 0x1f6   :  { %v697_v38 = vpop.f32.mrb[28].mxu1 }
 0x1f7   :  { %v4576_v39 = vpop.f32.mrb[29].mxu1 }
 0x1f8   :  { %v700_v41 = vpop.f32.mrb[30].mxu1 }
 0x1f9   :  { %v751_v44 = vpack.c.bf16 %v700_v41, %v697_v38  ;;  %v4577_v45 = vpop.f32.mrb[31].mxu1 }
 0x1fb   :  { %4611 = vmatmul.mubr.msk.bf16.vlgmr.msra.gmra.mrb[56].mxu0 %vm340_vm3, %v751_v44 }
 0x1fc   :  { %4614 = vmatprep.mubr.msk.bf16.mxu0 %vm5187_vm1, %v5186_v0  ;;  %4669 = vmatpush3.bf16.msra.mxu0 %v5068_v26 }
 0x1fd   :  { %4670 = vmatprep.subr.bf16.mxu0 %v5186_v0 }
 0x1fe   :  { %v705_v31 = vpop.f32.mrb[32].mxu1 }
 0x1ff   :  { %v4580_v46 = vpop.f32.mrb[33].mxu1 }
 0x200   :  { %v708_v47 = vpop.f32.mrb[34].mxu1  ;;  %4671 = vmatpush3.bf16.msra.mxu0 %v5069_v28 }
 0x201   :  { %v752_v50 = vpack.c.bf16 %v708_v47, %v705_v31  ;;  %v4581_v52 = vpop.f32.mrb[35].mxu1  ;;  %4672 = vmatprep.subr.bf16.mxu0 %v5186_v0 }
 0x203   :  { %4615 = vmatmul.mubr.msk.bf16.gmra.mrb[60].mxu0 %vm340_vm3, %v752_v50 }
 0x204   :  { %4618 = vmatprep.mubr.msk.bf16.mxu0 %vm5187_vm1, %v5186_v0  ;;  %4673 = vmatpush3.bf16.msra.mxu0 %v5070_v48 }
 0x205   :  { %4674 = vmatprep.subr.bf16.mxu0 %v5186_v0 }
 0x206   :  { %v713_v54 = vpop.f32.mrb[36].mxu1 }
 0x207   :  { %v4584_v55 = vpop.f32.mrb[37].mxu1 }
 0x208   :  { %v716_v56 = vpop.f32.mrb[38].mxu1  ;;  %4675 = vmatpush3.bf16.msra.mxu0 %v5071_v53 }
 0x209   :  { %v753_v58 = vpack.c.bf16 %v716_v56, %v713_v54  ;;  %v4585_v60 = vpop.f32.mrb[39].mxu1 }
 0x20b   :  { %4619 = vmatmul.mubr.msk.bf16.gmra.mrb[64].mxu0 %vm340_vm3, %v753_v58 }
 0x20c   :  { %4622 = vmatprep.mubr.msk.bf16.mxu0 %vm5187_vm1, %v5186_v0 }
 0x20e   :  { %v721_v61 = vpop.f32.mrb[40].mxu1 }
 0x20f   :  { %v4588_v62 = vpop.f32.mrb[41].mxu1 }
 0x210   :  { %v724_v63 = vpop.f32.mrb[42].mxu1 }
 0x211   :  { %v754_v1 = vpack.c.bf16 %v724_v63, %v721_v61  ;;  %v4589_v4 = vpop.f32.mrb[43].mxu1 }
 0x213   :  { %4623 = vmatmul.mubr.msk.bf16.gmra.mrb[68].mxu0 %vm340_vm3, %v754_v1 }
 0x214   :  { %4626 = vmatprep.mubr.msk.bf16.mxu0 %vm5187_vm1, %v5186_v0 }
 0x216   :  { %v729_v3 = vpop.f32.mrb[44].mxu1 }
 0x217   :  { %v4592_v7 = vpop.f32.mrb[45].mxu1 }
 0x218   :  { %v732_v8 = vpop.f32.mrb[46].mxu1 }
 0x219   :  { %v755_v5 = vpack.c.bf16 %v732_v8, %v729_v3  ;;  %v4593_v10 = vpop.f32.mrb[47].mxu1 }
 0x21b   :  { %4627 = vmatmul.mubr.msk.bf16.gmra.mrb[72].mxu0 %vm340_vm3, %v755_v5  ;;  %v893_v5 = vsub.s32 1, %v5587_v40 }
 0x21c   :  { %4630 = vmatprep.mubr.msk.bf16.mxu0 %vm5187_vm1, %v5186_v0 }
 0x21d   :  { %v5707_v10 = vrot.slane %v5593_v42, %v893_v5 }
 0x21e   :  { %v737_v13 = vpop.f32.mrb[48].mxu1 }
 0x21f   :  { %v4596_v9 = vpop.f32.mrb[49].mxu1 }
 0x220   :  { %v740_v16 = vpop.f32.mrb[50].mxu1 }
 0x221   :  { %v756_v18 = vpack.c.bf16 %v740_v16, %v737_v13  ;;  %v4597_v11 = vpop.f32.mrb[51].mxu1 }
 0x223   :  { %4631 = vmatmul.mubr.msk.bf16.gmra.mrb[76].mxu0 %vm340_vm3, %v756_v18 }
 0x224   :  { %4634 = vmatprep.mubr.msk.bf16.mxu0 %vm5187_vm1, %v5186_v0 }
 0x226   :  { %v745_v19 = vpop.f32.mrb[52].mxu1 }
 0x227   :  { %v4600_v23 = vpop.f32.mrb[53].mxu1  ;;  %v757_v25 = vpack.c.bf16 %v745_v19, %v745_v19 }
 0x228   :  { %v748_v14 = vpop.f32.mrb[54].mxu1 }
 0x229   :  { %v4601_v27 = vpop.f32.mrb[55].mxu1 }
 0x22b   :  { %4635 = vmatmul.mubr.msk.bf16.gmra.mrb[80].mxu0 %vm340_vm3, %v757_v25 }
 0x22c   :  { %4676 = vmatprep.mubr.msk.bf16.mxu0 %vm5187_vm1, %v5186_v0 }
 0x22e   :  { %v1009_v17 = vpop.f32.mrb[56].mxu1 }
 0x22f   :  { %v4642_v29 = vpop.f32.mrb[57].mxu1 }
 0x230   :  { %v1012_v32 = vpop.f32.mrb[58].mxu1 }
 0x231   :  { %v1063_v20 = vpack.c.bf16 %v1012_v32, %v1009_v17  ;;  %v4643_v34 = vpop.f32.mrb[59].mxu1 }
 0x233   :  { %4677 = vmatmul.mubr.msk.bf16.vlgmr.msra.gmra.mrb[84].mxu0 %vm340_vm3, %v1063_v20 }
 0x234   :  { %4680 = vmatprep.mubr.msk.bf16.mxu0 %vm5187_vm1, %v5186_v0 }
 0x236   :  { %v1017_v35 = vpop.f32.mrb[60].mxu1 }
 0x237   :  { %v4646_v22 = vpop.f32.mrb[61].mxu1 }
 0x238   :  { %v1020_v37 = vpop.f32.mrb[62].mxu1 }
 0x239   :  { %v1064_v38 = vpack.c.bf16 %v1020_v37, %v1017_v35  ;;  %v4647_v39 = vpop.f32.mrb[63].mxu1 }
 0x23b   :  { %4681 = vmatmul.mubr.msk.bf16.gmra.mrb[88].mxu0 %vm340_vm3, %v1064_v38 }
 0x23c   :  { %4684 = vmatprep.mubr.msk.bf16.mxu0 %vm5187_vm1, %v5186_v0 }
 0x23e   :  { %v1025_v41 = vpop.f32.mrb[64].mxu1 }
 0x23f   :  { %v4650_v26 = vpop.f32.mrb[65].mxu1 }
 0x240   :  { %v1028_v44 = vpop.f32.mrb[66].mxu1 }
 0x241   :  { %v1065_v45 = vpack.c.bf16 %v1028_v44, %v1025_v41  ;;  %v4651_v28 = vpop.f32.mrb[67].mxu1 }
 0x243   :  { %4685 = vmatmul.mubr.msk.bf16.gmra.mrb[92].mxu0 %vm340_vm3, %v1065_v45 }
 0x244   :  { %4688 = vmatprep.mubr.msk.bf16.mxu0 %vm5187_vm1, %v5186_v0 }
 0x246   :  { %v1033_v31 = vpop.f32.mrb[68].mxu1 }
 0x247   :  { %v4654_v46 = vpop.f32.mrb[69].mxu1 }
 0x248   :  { %v1036_v47 = vpop.f32.mrb[70].mxu1 }
 0x249   :  { %v1066_v48 = vpack.c.bf16 %v1036_v47, %v1033_v31  ;;  %v4655_v50 = vpop.f32.mrb[71].mxu1 }
 0x24b   :  { %4689 = vmatmul.mubr.msk.bf16.gmra.mrb[96].mxu0 %vm340_vm3, %v1066_v48 }
 0x24c   :  { %4692 = vmatprep.mubr.msk.bf16.mxu0 %vm5187_vm1, %v5186_v0 }
 0x24e   :  { %v1041_v52 = vpop.f32.mrb[72].mxu1 }
 0x24f   :  { %v4658_v53 = vpop.f32.mrb[73].mxu1 }
 0x250   :  { %v1044_v54 = vpop.f32.mrb[74].mxu1 }
 0x251   :  { %v1067_v55 = vpack.c.bf16 %v1044_v54, %v1041_v52  ;;  %v4659_v56 = vpop.f32.mrb[75].mxu1 }
 0x253   :  { %4693 = vmatmul.mubr.msk.bf16.gmra.mrb[100].mxu0 %vm340_vm3, %v1067_v55 }
 0x254   :  { %4696 = vmatprep.mubr.msk.bf16.mxu0 %vm5187_vm1, %v5186_v0 }
 0x256   :  { %v1049_v58 = vpop.f32.mrb[76].mxu1 }
 0x257   :  { %v4662_v60 = vpop.f32.mrb[77].mxu1 }
 0x258   :  { %v1052_v61 = vpop.f32.mrb[78].mxu1 }
 0x259   :  { %v1068_v62 = vpack.c.bf16 %v1052_v61, %v1049_v58  ;;  %v4663_v63 = vpop.f32.mrb[79].mxu1 }
 0x25b   :  { %4697 = vmatmul.mubr.msk.bf16.gmra.mrb[104].mxu0 %vm340_vm3, %v1068_v62 }
 0x25c   :  { %4700 = vmatprep.mubr.msk.bf16.mxu0 %vm5187_vm1, %v5186_v0 }
 0x25e   :  { %v1057_v1 = vpop.f32.mrb[80].mxu1 }
 0x25f   :  { %v1069_v4 = vpack.c.bf16 %v1057_v1, %v1057_v1  ;;  %v4666_v3 = vpop.f32.mrb[81].mxu1 }
 0x260   :  { %v1060_v7 = vpop.f32.mrb[82].mxu1 }
 0x261   :  { %v4667_v8 = vpop.f32.mrb[83].mxu1 }
 0x263   :  { %4701 = vmatmul.mubr.msk.bf16.gmra.mrb[108].mxu0 %vm340_vm3, %v1069_v4 }
 0x2ce   :  { %v837_v13 = vpop.f32.mrb[56].mxu0 }
 0x2cf   :  { %v895_v9 = vmul.f32 %v5707_v10, %v837_v13  ;;  %v4612_v16 = vpop.f32.mrb[57].mxu0 }
 0x2d0   :  { %v840_v18 = vpop.f32.mrb[58].mxu0 }
 0x2d1   :  { %v908_v11 = vadd.f32 %v895_v9, %v5601_v49  ;;  %v896_v19 = vmul.f32 %v5707_v10, %v840_v18  ;;  %v4613_v23 = vpop.f32.mrb[59].mxu0 }
 0x2d3   :  { %v909_v14 = vadd.f32 %v896_v19, %v5604_v51 }
 0x2d6   :  { %v845_v25 = vpop.f32.mrb[60].mxu0 }
 0x2d7   :  { %v897_v27 = vmul.f32 %v5707_v10, %v845_v25  ;;  %v4616_v17 = vpop.f32.mrb[61].mxu0 }
 0x2d8   :  { %v848_v29 = vpop.f32.mrb[62].mxu0 }
 0x2d9   :  { %v5715_v32 = vadd.f32 %v897_v27, %v5609_v57  ;;  %v898_v20 = vmul.f32 %v5707_v10, %v848_v29  ;;  %v4617_v34 = vpop.f32.mrb[63].mxu0 }
 0x2db   :  { %v5719_v35 = vadd.f32 %v898_v20, %v5612_v59 }
 0x2de   :  { %v853_v49 = vpop.f32.mrb[64].mxu0 }
 0x2df   :  { %v899_v22 = vmul.f32 %v5707_v10, %v853_v49  ;;  %v4620_v37 = vpop.f32.mrb[65].mxu0 }
 0x2e0   :  { %v856_v38 = vpop.f32.mrb[66].mxu0 }
 0x2e1   :  { %v5723_v51 = vadd.f32 %v899_v22, %v5617_v2  ;;  %v900_v39 = vmul.f32 %v5707_v10, %v856_v38  ;;  %v4621_v41 = vpop.f32.mrb[67].mxu0 }
 0x2e3   :  { %v5727_v57 = vadd.f32 %v900_v39, %v5620_v6 }
 0x2e6   :  { %v861_v26 = vpop.f32.mrb[68].mxu0 }
 0x2e7   :  { %v901_v44 = vmul.f32 %v5707_v10, %v861_v26  ;;  %v4624_v45 = vpop.f32.mrb[69].mxu0 }
 0x2e8   :  { %v864_v59 = vpop.f32.mrb[70].mxu0 }
 0x2e9   :  { %v5731_v28 = vadd.f32 %v901_v44, %v5625_v12  ;;  %v902_v31 = vmul.f32 %v5707_v10, %v864_v59  ;;  %v4625_v46 = vpop.f32.mrb[71].mxu0 }
 0x2eb   :  { %v5735_v2 = vadd.f32 %v902_v31, %v5628_v15 }
 0x2ee   :  { %v869_v47 = vpop.f32.mrb[72].mxu0 }
 0x2ef   :  { %v903_v48 = vmul.f32 %v5707_v10, %v869_v47  ;;  %v4628_v50 = vpop.f32.mrb[73].mxu0 }
 0x2f0   :  { %v872_v6 = vpop.f32.mrb[74].mxu0 }
 0x2f1   :  { %v5739_v52 = vadd.f32 %v903_v48, %v5633_v21  ;;  %v904_v53 = vmul.f32 %v5707_v10, %v872_v6  ;;  %v4629_v54 = vpop.f32.mrb[75].mxu0 }
 0x2f3   :  { %v5743_v12 = vadd.f32 %v904_v53, %v5636_v24  ;;  %v1205_v24 = vsub.s32 2, %v5587_v40 }
 0x2f6   :  { %v877_v55 = vpop.f32.mrb[76].mxu0 }
 0x2f7   :  { %v905_v56 = vmul.f32 %v5707_v10, %v877_v55  ;;  %v4632_v58 = vpop.f32.mrb[77].mxu0 }
 0x2f8   :  { %v880_v15 = vpop.f32.mrb[78].mxu0 }
 0x2f9   :  { %v5747_v60 = vadd.f32 %v905_v56, %v5641_v30  ;;  %v906_v61 = vmul.f32 %v5707_v10, %v880_v15  ;;  %v4633_v62 = vpop.f32.mrb[79].mxu0  ;;  %v5759_v30 = vrot.slane %v5593_v42, %v1205_v24 }
 0x2fb   :  { %v5751_v21 = vadd.f32 %v906_v61, %v5644_v33 }
 0x2fe   :  { %v885_v63 = vpop.f32.mrb[80].mxu0 }
 0x2ff   :  { %v907_v1 = vmul.f32 %v5707_v10, %v885_v63  ;;  %v4636_v4 = vpop.f32.mrb[81].mxu0 }
 0x300   :  { %v888_v3 = vpop.f32.mrb[82].mxu0 }
 0x301   :  { %v5756_v7 = vadd.f32 %v907_v1, %v5648_v36  ;;  %v4637_v8 = vpop.f32.mrb[83].mxu0 }
 0x306   :  { %v1149_v5 = vpop.f32.mrb[84].mxu0 }
 0x307   :  { %v1207_v13 = vmul.f32 %v5759_v30, %v1149_v5  ;;  %v4678_v9 = vpop.f32.mrb[85].mxu0 }
 0x308   :  { %v1152_v33 = vpop.f32.mrb[86].mxu0 }
 0x309   :  { %v5762_v16 = vadd.f32 %v1207_v13, %v908_v11  ;;  %v1208_v18 = vmul.f32 %v5759_v30, %v1152_v33  ;;  %v4679_v19 = vpop.f32.mrb[87].mxu0 }
 0x30b   :  { %v5765_v23 = vadd.f32 %v1208_v18, %v909_v14  ;;  %v1233_v40 = vsel %vm340_vm3, %v5762_v16, 0.0  ;;  %v1286_v36 = vmul.f32 %v5762_v16, %v5762_v16 }
 0x30c   :  { %1234 = vadd.xlane.f32.xlu0 %v1233_v40 }
 0x30d   :  { %v1299_v42 = vsel %vm340_vm3, %v1286_v36, 0.0  ;;  %v1287_v25 = vmul.f32 %v5765_v23, %v5765_v23  ;;  %v1236_v14 = vsel %vm340_vm3, %v5765_v23, 0.0 }
 0x30e   :  { %1300 = vadd.xlane.f32.xlu1 %v1299_v42  ;;  %v1157_v11 = vpop.f32.mrb[88].mxu0 }
 0x30f   :  { %v1209_v27 = vmul.f32 %v5759_v30, %v1157_v11  ;;  %v4682_v17 = vpop.f32.mrb[89].mxu0  ;;  %v1302_v49 = vsel %vm340_vm3, %v1287_v25, 0.0 }
 0x310   :  { %1237 = vadd.xlane.f32.xlu0 %v1236_v14  ;;  %v1160_v29 = vpop.f32.mrb[90].mxu0  ;;  %v5188_v14 = vmov 0  }
 0x311   :  { %v5778_v20 = vadd.f32 %v1209_v27, %v5715_v32  ;;  %v1210_v34 = vmul.f32 %v5759_v30, %v1160_v29  ;;  %v4683_v22 = vpop.f32.mrb[91].mxu0  ;;  %5030 = vset.pattern.permute.xlu0 %v5188_v14  ;;  %5031 = vset.pattern.permute.xlu1 %v5188_v14 }
 0x312   :  { %1303 = vadd.xlane.f32.xlu1 %v1302_v49 }
 0x313   :  { %v5783_v37 = vadd.f32 %v1210_v34, %v5719_v35  ;;  %v1239_v38 = vsel %vm340_vm3, %v5778_v20, 0.0  ;;  %v1288_v39 = vmul.f32 %v5778_v20, %v5778_v20 }
 0x314   :  { %1240 = vadd.xlane.f32.xlu0 %v1239_v38 }
 0x315   :  { %v1242_v32 = vsel %vm340_vm3, %v5783_v37, 0.0  ;;  %v1289_v41 = vmul.f32 %v5783_v37, %v5783_v37  ;;  %v1305_v35 = vsel %vm340_vm3, %v1288_v39, 0.0 }
 0x316   :  { %1243 = vadd.xlane.f32.xlu1 %v1242_v32  ;;  %v1165_v26 = vpop.f32.mrb[92].mxu0 }
 0x317   :  { %v1211_v44 = vmul.f32 %v5759_v30, %v1165_v26  ;;  %v4686_v45 = vpop.f32.mrb[93].mxu0  ;;  %v1308_v47 = vsel %vm340_vm3, %v1289_v41, 0.0 }
 0x318   :  { %1306 = vadd.xlane.f32.xlu0 %v1305_v35  ;;  %v1168_v59 = vpop.f32.mrb[94].mxu0 }
 0x319   :  { %v5796_v31 = vadd.f32 %v1211_v44, %v5723_v51  ;;  %v1212_v46 = vmul.f32 %v5759_v30, %v1168_v59  ;;  %v4687_v48 = vpop.f32.mrb[95].mxu0 }
 0x31a   :  { %1309 = vadd.xlane.f32.xlu1 %v1308_v47 }
 0x31b   :  { %v5801_v50 = vadd.f32 %v1212_v46, %v5727_v57  ;;  %v1245_v6 = vsel %vm340_vm3, %v5796_v31, 0.0  ;;  %v1290_v53 = vmul.f32 %v5796_v31, %v5796_v31 }
 0x31c   :  { %1246 = vadd.xlane.f32.xlu0 %v1245_v6 }
 0x31d   :  { %v1248_v51 = vsel %vm340_vm3, %v5801_v50, 0.0  ;;  %v1291_v54 = vmul.f32 %v5801_v50, %v5801_v50  ;;  %v1311_v57 = vsel %vm340_vm3, %v1290_v53, 0.0 }
 0x31e   :  { %1249 = vadd.xlane.f32.xlu1 %v1248_v51  ;;  %v1173_v55 = vpop.f32.mrb[96].mxu0 }
 0x31f   :  { %v1213_v56 = vmul.f32 %v5759_v30, %v1173_v55  ;;  %v4690_v58 = vpop.f32.mrb[97].mxu0  ;;  %v1314_v63 = vsel %vm340_vm3, %v1291_v54, 0.0 }
 0x320   :  { %1312 = vadd.xlane.f32.xlu0 %v1311_v57  ;;  %v1176_v15 = vpop.f32.mrb[98].mxu0 }
 0x321   :  { %v5814_v61 = vadd.f32 %v1213_v56, %v5731_v28  ;;  %v1214_v62 = vmul.f32 %v5759_v30, %v1176_v15  ;;  %v4691_v1 = vpop.f32.mrb[99].mxu0 }
 0x322   :  { %1315 = vadd.xlane.f32.xlu1 %v1314_v63 }
 0x323   :  { %v5819_v4 = vadd.f32 %v1214_v62, %v5735_v2  ;;  %v1251_v24 = vsel %vm340_vm3, %v5814_v61, 0.0  ;;  %v1292_v3 = vmul.f32 %v5814_v61, %v5814_v61 }
 0x324   :  { %1252 = vadd.xlane.f32.xlu0 %v1251_v24 }
 0x325   :  { %v1254_v28 = vsel %vm340_vm3, %v5819_v4, 0.0  ;;  %v1293_v8 = vmul.f32 %v5819_v4, %v5819_v4  ;;  %v1317_v2 = vsel %vm340_vm3, %v1292_v3, 0.0 }
 0x326   :  { %1255 = vadd.xlane.f32.xlu1 %v1254_v28  ;;  %v1181_v5 = vpop.f32.mrb[100].mxu0 }
 0x327   :  { %v1215_v13 = vmul.f32 %v5759_v30, %v1181_v5  ;;  %v4694_v9 = vpop.f32.mrb[101].mxu0  ;;  %v1320_v40 = vsel %vm340_vm3, %v1293_v8, 0.0 }
 0x328   :  { %1318 = vadd.xlane.f32.xlu0 %v1317_v2  ;;  %v1184_v33 = vpop.f32.mrb[102].mxu0 }
 0x329   :  { %v5832_v18 = vadd.f32 %v1215_v13, %v5739_v52  ;;  %v1216_v19 = vmul.f32 %v5759_v30, %v1184_v33  ;;  %v4695_v36 = vpop.f32.mrb[103].mxu0 }
 0x32a   :  { %1321 = vadd.xlane.f32.xlu1 %v1320_v40 }
 0x32b   :  { %v5837_v42 = vadd.f32 %v1216_v19, %v5743_v12  ;;  %v1257_v25 = vsel %vm340_vm3, %v5832_v18, 0.0  ;;  %v1294_v11 = vmul.f32 %v5832_v18, %v5832_v18 }
 0x32c   :  { %1258 = vadd.xlane.f32.xlu0 %v1257_v25 }
 0x32d   :  { %v1260_v52 = vsel %vm340_vm3, %v5837_v42, 0.0  ;;  %v1295_v27 = vmul.f32 %v5837_v42, %v5837_v42  ;;  %v1323_v34 = vsel %vm340_vm3, %v1294_v11, 0.0 }
 0x32e   :  { %1261 = vadd.xlane.f32.xlu1 %v1260_v52  ;;  %v1189_v17 = vpop.f32.mrb[104].mxu0 }
 0x32f   :  { %v1217_v12 = vmul.f32 %v5759_v30, %v1189_v17  ;;  %v4698_v29 = vpop.f32.mrb[105].mxu0  ;;  %v1326_v39 = vsel %vm340_vm3, %v1295_v27, 0.0 }
 0x330   :  { %1324 = vadd.xlane.f32.xlu0 %v1323_v34  ;;  %v1192_v49 = vpop.f32.mrb[106].mxu0 }
 0x331   :  { %v5850_v22 = vadd.f32 %v1217_v12, %v5747_v60  ;;  %v1218_v38 = vmul.f32 %v5759_v30, %v1192_v49  ;;  %v4699_v32 = vpop.f32.mrb[107].mxu0  ;;  %v1377_v12 = vld [vmem:[%s6890_s10] sm:$0xff] }
 0x332   :  { %1327 = vadd.xlane.f32.xlu1 %v1326_v39 }
 0x333   :  { %v5855_v41 = vadd.f32 %v1218_v38, %v5751_v21  ;;  %v1263_v26 = vsel %vm340_vm3, %v5850_v22, 0.0  ;;  %v1296_v44 = vmul.f32 %v5850_v22, %v5850_v22 }
 0x334   :  { %1264 = vadd.xlane.f32.xlu0 %v1263_v26 }
 0x335   :  { %v1266_v60 = vsel %vm340_vm3, %v5855_v41, 0.0  ;;  %v1297_v45 = vmul.f32 %v5855_v41, %v5855_v41  ;;  %v1329_v21 = vsel %vm340_vm3, %v1296_v44, 0.0 }
 0x336   :  { %1267 = vadd.xlane.f32.xlu1 %v1266_v60  ;;  %v1197_v35 = vpop.f32.mrb[108].mxu0  ;;  %v1378_v60 = vld [vmem:[%s6890_s10 + $0x8] sm:$0xff] }
 0x337   :  { %v1219_v59 = vmul.f32 %v5759_v30, %v1197_v35  ;;  %v4702_v46 = vpop.f32.mrb[109].mxu0  ;;  %v1332_v6 = vsel %vm340_vm3, %v1297_v45, 0.0 }
 0x338   :  { %1330 = vadd.xlane.f32.xlu0 %v1329_v21  ;;  %v1200_v47 = vpop.f32.mrb[110].mxu0 }
 0x339   :  { %v5868_v48 = vadd.f32 %v1219_v59, %v5756_v7  ;;  %v4703_v53 = vpop.f32.mrb[111].mxu0 }
 0x33a   :  { %1333 = vadd.xlane.f32.xlu1 %v1332_v6 }
 0x33b   :  { %v1270_v51 = vsel %vm1269_vm4, %v5868_v48, 0.0  ;;  %v1298_v54 = vmul.f32 %v5868_v48, %v5868_v48 }
 0x33c   :  { %1271 = vadd.xlane.f32.xlu0 %v1270_v51 }
 0x33d   :  { %v1335_v55 = vsel %vm1269_vm4, %v1298_v54, 0.0 }
 0x33e   :  { %1336 = vadd.xlane.f32.xlu1 %v1335_v55 }
 0x399   :  { %v1235_v56 = vpop.xlane.xlu0 %1234 }
 0x39a   :  { %v1273_v58 = vmul.f32 0.015625, %v1235_v56  ;;  %v1429_v56 = vld [vmem:[%s6891_s4] sm:$0xff] }
 0x39b   :  { %v1301_v57 = vpop.xlane.xlu1 %1300 }
 0x39c   :  { %v1351_v15 = vmul.f32 %v1273_v58, %v1273_v58  ;;  %v1338_v62 = vmul.f32 0.015625, %v1301_v57 }
 0x39d   :  { %v1238_v63 = vpop.xlane.xlu0 %1237 }
 0x39e   :  { %v1364_v7 = vsub.f32 %v1338_v62, %v1351_v15  ;;  %v1274_v1 = vmul.f32 0.015625, %v1238_v63 }
 0x39f   :  { %v1304_v24 = vpop.xlane.xlu1 %1303 }
 0x3a0   :  { %v1390_v3 = vadd.f32 1e-05, %v1364_v7  ;;  %v1352_v28 = vmul.f32 %v1274_v1, %v1274_v1  ;;  %v1339_v8 = vmul.f32 0.015625, %v1304_v24 }
 0x3a1   :  { %v1241_v5 = vpop.xlane.xlu0 %1240 }
 0x3a2   :  { %5115 = vrsqrt.f32 %v1390_v3  ;;  %v1365_v13 = vsub.f32 %v1339_v8, %v1352_v28  ;;  %v5874_v9 = vmul.f32 0.015625, %v1241_v5  ;;  %v1430_v28 = vld [vmem:[%s6891_s4 + $0x8] sm:$0xff] }
 0x3a3   :  { %v1244_v2 = vpop.xlane.xlu1 %1243 }
 0x3a4   :  { %v1391_v33 = vadd.f32 1e-05, %v1365_v13  ;;  %v1353_v40 = vmul.f32 %v5874_v9, %v5874_v9  ;;  %v5878_v36 = vmul.f32 0.015625, %v1244_v2 }
 0x3a5   :  { %v1307_v19 = vpop.xlane.xlu0 %1306 }
 0x3a6   :  { %5117 = vrsqrt.f32 %v1391_v33  ;;  %v1340_v25 = vmul.f32 0.015625, %v1307_v19  ;;  %v1354_v14 = vmul.f32 %v5878_v36, %v5878_v36 }
 0x3a7   :  { %v1310_v11 = vpop.xlane.xlu1 %1309 }
 0x3a8   :  { %v1366_v52 = vsub.f32 %v1340_v25, %v1353_v40  ;;  %v1341_v27 = vmul.f32 0.015625, %v1310_v11 }
 0x3a9   :  { %v1247_v17 = vpop.xlane.xlu0 %1246 }
 0x3aa   :  { %v1392_v29 = vadd.f32 1e-05, %v1366_v52  ;;  %v1367_v38 = vsub.f32 %v1341_v27, %v1354_v14  ;;  %v5887_v44 = vmul.f32 0.015625, %v1247_v17  ;;  %v1379_v52 = vld [vmem:[%s6890_s10 + $0x10] sm:$0xff] }
 0x3ab   :  { %v1250_v34 = vpop.xlane.xlu1 %1249 }
 0x3ac   :  { %v5116_v49 = vpop.eup %5115  ;;  %v5885_v39 = vmul.f32 0.015625, %v1250_v34  ;;  %5119 = vrsqrt.f32 %v1392_v29  ;;  %v1393_v59 = vadd.f32 1e-05, %v1367_v38  ;;  %v1355_v54 = vmul.f32 %v5887_v44, %v5887_v44 }
 0x3ad   :  { %v1313_v32 = vpop.xlane.xlu0 %1312  ;;  %v1416_v26 = vmul.f32 %v5116_v49, %v1377_v12 }
 0x3ae   :  { %v1356_v21 = vmul.f32 %v5885_v39, %v5885_v39  ;;  %v1342_v46 = vmul.f32 0.015625, %v1313_v32  ;;  %5121 = vrsqrt.f32 %v1393_v59  ;;  %v1380_v32 = vld [vmem:[%s6890_s10 + $0x18] sm:$0xff] }
 0x3af   :  { %v1316_v45 = vpop.xlane.xlu1 %1315  ;;  %1470 = vperm.xlu0 %5030, %v1416_v26   ;;  %v1442_v51 = vmul.f32 %v1416_v26, %v1273_v58  ;;  %v1382_v26 = vld [vmem:[%s6890_s10 + $0x28] sm:$0xff] }
 0x3b0   :  { %v5118_v35 = vpop.eup %5117  ;;  %v1343_v47 = vmul.f32 0.015625, %v1316_v45  ;;  %v1368_v15 = vsub.f32 %v1342_v46, %v1355_v54 }
 0x3b1   :  { %v1253_v6 = vpop.xlane.xlu0 %1252  ;;  %v1417_v53 = vmul.f32 %v5118_v35, %v1378_v60  ;;  %v1455_v24 = vsub.f32 %v1429_v56, %v1442_v51  ;;  %v1431_v56 = vld [vmem:[%s6891_s4 + $0x10] sm:$0xff] }
 0x3b2   :  { %v1369_v55 = vsub.f32 %v1343_v47, %v1356_v21  ;;  %v5901_v58 = vmul.f32 0.015625, %v1253_v6  ;;  %v1394_v5 = vadd.f32 1e-05, %v1368_v15 }
 0x3b3   :  { %v1256_v57 = vpop.xlane.xlu1 %1255  ;;  %1475 = vperm.xlu1 %5031, %v1417_v53   ;;  %v1443_v3 = vmul.f32 %v1417_v53, %v1274_v1 }
 0x3b4   :  { %v1395_v62 = vadd.f32 1e-05, %v1369_v55  ;;  %v5899_v63 = vmul.f32 0.015625, %v1256_v57  ;;  %v1357_v1 = vmul.f32 %v5901_v58, %v5901_v58  ;;  %v1434_v57 = vld [vmem:[%s6891_s4 + $0x28] sm:$0xff] }
 0x3b5   :  { %v1319_v7 = vpop.xlane.xlu0 %1318  ;;  %v1456_v25 = vsub.f32 %v1430_v28, %v1443_v3 }
 0x3b6   :  { %5123 = vrsqrt.f32 %v1395_v62  ;;  %v1358_v13 = vmul.f32 %v5899_v63, %v5899_v63  ;;  %v1344_v2 = vmul.f32 0.015625, %v1319_v7  ;;  %v5120_v19 = vpop.eup %5119 }
 0x3b7   :  { %v1322_v8 = vpop.xlane.xlu1 %1321  ;;  %1548 = vperm.xlu1 %5031, %v1455_v24   ;;  %5125 = vrsqrt.f32 %v1394_v5  ;;  %v1418_v49 = vmul.f32 %v5120_v19, %v1379_v52  ;;  %v1381_v19 = vld [vmem:[%s6890_s10 + $0x20] sm:$0xff] }
 0x3b8   :  { %v1345_v33 = vmul.f32 0.015625, %v1322_v8  ;;  %v1370_v17 = vsub.f32 %v1344_v2, %v1357_v1  ;;  %v5122_v38 = vpop.eup %5121 }
 0x3b9   :  { %v1259_v40 = vpop.xlane.xlu0 %1258  ;;  %v1419_v53 = vmul.f32 %v5122_v38, %v1380_v32  ;;  %v1444_v54 = vmul.f32 %v1418_v49, %v5874_v9 }
 0x3ba   :  { %v1371_v11 = vsub.f32 %v1345_v33, %v1358_v13  ;;  %v5915_v29 = vmul.f32 0.015625, %v1259_v40  ;;  %v1396_v59 = vadd.f32 1e-05, %v1370_v17  ;;  %v1432_v33 = vld [vmem:[%s6891_s4 + $0x18] sm:$0xff] }
 0x3bb   :  { %v1262_v27 = vpop.xlane.xlu1 %1261  ;;  %1553 = vperm.xlu1 %5031, %v1456_v25   ;;  %v1457_v28 = vsub.f32 %v1431_v56, %v1444_v54  ;;  %v1445_v5 = vmul.f32 %v1419_v53, %v5878_v36  ;;  %v1433_v54 = vld [vmem:[%s6891_s4 + $0x20] sm:$0xff] }
 0x3bc   :  { %v1397_v14 = vadd.f32 1e-05, %v1371_v11  ;;  %v5913_v12 = vmul.f32 0.015625, %v1262_v27  ;;  %v1359_v47 = vmul.f32 %v5915_v29, %v5915_v29 }
 0x3bd   :  { %v1325_v34 = vpop.xlane.xlu0 %1324  ;;  %v1458_v17 = vsub.f32 %v1432_v33, %v1445_v5  ;;  %v1388_v33 = vld [vmem:[%s6890_s10 + $0x58] sm:$0xff] }
 0x3be   :  { %5127 = vrsqrt.f32 %v1397_v14  ;;  %v1346_v60 = vmul.f32 0.015625, %v1325_v34  ;;  %v1360_v21 = vmul.f32 %v5913_v12, %v5913_v12 }
 0x3bf   :  { %v1328_v45 = vpop.xlane.xlu1 %1327  ;;  %1480 = vperm.xlu1 %5031, %v1418_v49   ;;  %5129 = vrsqrt.f32 %v1396_v59 }
 0x3c0   :  { %v5124_v35 = vpop.eup %5123  ;;  %v1347_v46 = vmul.f32 0.015625, %v1328_v45  ;;  %v1372_v15 = vsub.f32 %v1346_v60, %v1359_v47 }
 0x3c1   :  { %v1265_v6 = vpop.xlane.xlu0 %1264  ;;  %v1421_v51 = vmul.f32 %v5124_v35, %v1382_v26  ;;  %v5126_v13 = vpop.eup %5125  ;;  %v1436_v26 = vld [vmem:[%s6891_s4 + $0x38] sm:$0xff] }
 0x3c2   :  { %v1373_v55 = vsub.f32 %v1347_v46, %v1360_v21  ;;  %v5938_v2 = vmul.f32 0.015625, %v1265_v6  ;;  %v1398_v40 = vadd.f32 1e-05, %v1372_v15  ;;  %v1420_v34 = vmul.f32 %v5126_v13, %v1381_v19  ;;  %v1435_v13 = vld [vmem:[%s6891_s4 + $0x30] sm:$0xff] }
 0x3c3   :  { %v1268_v62 = vpop.xlane.xlu1 %1267  ;;  %1485 = vperm.xlu1 %5031, %v1419_v53   ;;  %1495 = vperm.xlu0 %5030, %v1421_v51   ;;  %v1447_v7 = vmul.f32 %v1421_v51, %v5885_v39  ;;  %v1384_v39 = vld [vmem:[%s6890_s10 + $0x38] sm:$0xff] }
 0x3c4   :  { %v1399_v24 = vadd.f32 1e-05, %v1373_v55  ;;  %v5935_v3 = vmul.f32 0.015625, %v1268_v62  ;;  %v1361_v49 = vmul.f32 %v5938_v2, %v5938_v2  ;;  %v1446_v6 = vmul.f32 %v1420_v34, %v5887_v44  ;;  %v1386_v55 = vld [vmem:[%s6890_s10 + $0x48] sm:$0xff] }
 0x3c5   :  { %v1331_v9 = vpop.xlane.xlu0 %1330  ;;  %v1460_v8 = vsub.f32 %v1434_v57, %v1447_v7 }
 0x3c6   :  { %5131 = vrsqrt.f32 %v1399_v24  ;;  %v1362_v1 = vmul.f32 %v5935_v3, %v5935_v3  ;;  %v1348_v11 = vmul.f32 0.015625, %v1331_v9  ;;  %v1459_v15 = vsub.f32 %v1433_v54, %v1446_v6  ;;  %v1438_v24 = vld [vmem:[%s6891_s4 + $0x48] sm:$0xff] }
 0x3c7   :  { %v1334_v25 = vpop.xlane.xlu1 %1333  ;;  %1558 = vperm.xlu1 %5031, %v1457_v28   ;;  %1573 = vperm.xlu0 %5030, %v1460_v8   ;;  %5133 = vrsqrt.f32 %v1398_v40 }
 0x3c8   :  { %v5128_v36 = vpop.eup %5127  ;;  %v1349_v52 = vmul.f32 0.015625, %v1334_v25  ;;  %v1374_v35 = vsub.f32 %v1348_v11, %v1361_v49  ;;  %v1441_v49 = vld [vmem:[%s6891_s4 + $0x60] sm:$0xf] }
 0x3c9   :  { %v1272_v27 = vpop.xlane.xlu0 %1271  ;;  %v1423_v14 = vmul.f32 %v5128_v36, %v1384_v39  ;;  %v5130_v53 = vpop.eup %5129  ;;  %v1385_v39 = vld [vmem:[%s6890_s10 + $0x40] sm:$0xff] }
 0x3ca   :  { %v1375_v38 = vsub.f32 %v1349_v52, %v1362_v1  ;;  %v1285_v32 = vmul.f32 0.015625, %v1272_v27  ;;  %v1400_v57 = vadd.f32 1e-05, %v1374_v35  ;;  %v1389_v36 = vld [vmem:[%s6890_s10 + $0x60] sm:$0xf]  ;;  %v1439_v35 = vld [vmem:[%s6891_s4 + $0x50] sm:$0xff] }
 0x3cb   :  { %1563 = vperm.xlu1 %5031, %v1458_v17   ;;  %v1337_v60 = vpop.xlane.xlu1 %1336  ;;  %1505 = vperm.xlu0 %5030, %v1423_v14   ;;  %v1449_v45 = vmul.f32 %v1423_v14, %v5899_v63  ;;  %v1383_v63 = vld [vmem:[%s6890_s10 + $0x30] sm:$0xff] }
 0x3cc   :  { %v1401_v59 = vadd.f32 1e-05, %v1375_v38  ;;  %v1363_v21 = vmul.f32 %v1285_v32, %v1285_v32  ;;  %v1350_v46 = vmul.f32 0.015625, %v1337_v60  ;;  %v1422_v7 = vmul.f32 %v5130_v53, %v1383_v63  ;;  %v1387_v38 = vld [vmem:[%s6890_s10 + $0x50] sm:$0xff] }
 0x3cd   :  { %v1462_v47 = vsub.f32 %v1436_v26, %v1449_v45 }
 0x3ce   :  { %5135 = vrsqrt.f32 %v1401_v59  ;;  %v1376_v51 = vsub.f32 %v1350_v46, %v1363_v21  ;;  %v1448_v5 = vmul.f32 %v1422_v7, %v5901_v58  ;;  %v1440_v58 = vld [vmem:[%s6891_s4 + $0x58] sm:$0xff]  ;;  %v5072_v21 = vld [vmem:[%s6892_s2] sm:$0xff]  }
 0x3cf   :  { %1490 = vperm.xlu1 %5031, %v1420_v34   ;;  %1583 = vperm.xlu0 %5030, %v1462_v47   ;;  %v1437_v34 = vld [vmem:[%s6891_s4 + $0x40] sm:$0xff] }
 0x3d0   :  { %v5132_v56 = vpop.eup %5131  ;;  %v1402_v44 = vadd.f32 1e-05, %v1376_v51  ;;  %v1461_v19 = vsub.f32 %v1435_v13, %v1448_v5  ;;  %4718 = vmatprep.mubr.msk.bf16.mxu1 %vm1657_vm5, %v5072_v21 }
 0x3d1   :  { %v1425_v62 = vmul.f32 %v5132_v56, %v1386_v55  ;;  %v5134_v28 = vpop.eup %5133 }
 0x3d2   :  { %5137 = vrsqrt.f32 %v1402_v44  ;;  %v1424_v25 = vmul.f32 %v5134_v28, %v1385_v39 }
 0x3d3   :  { %1568 = vperm.xlu1 %5031, %v1459_v15   ;;  %1515 = vperm.xlu0 %5030, %v1425_v62   ;;  %v1451_v9 = vmul.f32 %v1425_v62, %v5913_v12  ;;  %5139 = vrsqrt.f32 %v1400_v57 }
 0x3d4   :  { %v1450_v27 = vmul.f32 %v1424_v25, %v5915_v29 }
 0x3d5   :  { %v1464_v8 = vsub.f32 %v1438_v24, %v1451_v9 }
 0x3d6   :  { %v1463_v26 = vsub.f32 %v1437_v34, %v1450_v27 }
 0x3d7   :  { %1500 = vperm.xlu1 %5031, %v1422_v7   ;;  %1593 = vperm.xlu0 %5030, %v1464_v8  }
 0x3d8   :  { %v5136_v12 = vpop.eup %5135 }
 0x3d9   :  { %v1427_v40 = vmul.f32 %v5136_v12, %v1388_v33 }
 0x3db   :  { %1578 = vperm.xlu1 %5031, %v1461_v19   ;;  %1525 = vperm.xlu0 %5030, %v1427_v40   ;;  %v1453_v1 = vmul.f32 %v1427_v40, %v5935_v3 }
 0x3dc   :  { %v5138_v11 = vpop.eup %5137 }
 0x3dd   :  { %v1466_v52 = vsub.f32 %v1440_v58, %v1453_v1  ;;  %v1428_v17 = vmul.f32 %v5138_v11, %v1389_v36  ;;  %v5140_v14 = vpop.eup %5139 }
 0x3de   :  { %v1426_v29 = vmul.f32 %v5140_v14, %v1387_v38 }
 0x3df   :  { %1510 = vperm.xlu1 %5031, %v1424_v25   ;;  %1603 = vperm.xlu0 %5030, %v1466_v52   ;;  %v1454_v3 = vmul.f32 %v1428_v17, %v1285_v32 }
 0x3e0   :  { %v1452_v45 = vmul.f32 %v1426_v29, %v5938_v2 }
 0x3e1   :  { %v1467_v60 = vsub.f32 %v1441_v49, %v1454_v3 }
 0x3e2   :  { %v1465_v59 = vsub.f32 %v1439_v35, %v1452_v45 }
 0x3e3   :  { %1588 = vperm.xlu1 %5031, %v1463_v26   ;;  %1608 = vperm.xlu0 %5030, %v1467_v60  }
 0x3e7   :  { %1520 = vperm.xlu1 %5031, %v1426_v29  }
 0x3eb   :  { %1598 = vperm.xlu1 %5031, %v1465_v59  }
 0x3ef   :  { %1530 = vperm.xlu1 %5031, %v1428_v17  }
 0x42e   :  { %v1471_v46 = vpop.permute.xlu0 %1470 }
 0x42f   :  { %v1533_v2 = vmul.f32 %v1471_v46, %v5762_v16  ;;  %v6073_v46 = vld [vmem:[%s6887_s9] sm:$0xff]  }
 0x432   :  { %v1476_v32 = vpop.permute.xlu1 %1475 }
 0x433   :  { %v1534_v6 = vmul.f32 %v1476_v32, %v5765_v23  ;;  %v5073_v32 = vld [vmem:[%s6892_s2 + $0x8] sm:$0xff]  }
 0x436   :  { %v1549_v47 = vpop.permute.xlu1 %1548 }
 0x437   :  { %v1611_v51 = vadd.f32 %v1549_v47, %v1533_v2  ;;  %v6079_v47 = vld [vmem:[%s6887_s9 + $0x20] sm:$0xff]   ;;  %v6087_v2 = vld [vmem:[%s6887_s9 + $0x8] sm:$0xff]  }
 0x43a   :  { %v1554_v53 = vpop.permute.xlu1 %1553 }
 0x43b   :  { %v1612_v54 = vadd.f32 %v1554_v53, %v1534_v6  ;;  %v6094_v6 = vld [vmem:[%s6887_s9 + $0x10] sm:$0xff]   ;;  %v6101_v53 = vld [vmem:[%s6887_s9 + $0x18] sm:$0xff]  }
 0x43d   :  { %v6008_v55 = vpack.c.bf16 %v1612_v54, %v1611_v51  ;;  %v5074_v51 = vld [vmem:[%s6893_s7] sm:$0xff]   ;;  %v5075_v54 = vld [vmem:[%s6893_s7 + $0x8] sm:$0xff]   ;;  %s6894_s7 = sld [smem:[#allocation11_spill]] }
 0x43e   :  { %v1481_v63 = vpop.permute.xlu1 %1480  ;;  %4748 = vmatprep.mubr.msk.bf16.mxu0 %vm1657_vm5, %v5074_v51 }
 0x43f   :  { %4704 = vmatprep.subr.bf16.mxu1 %v6008_v55  ;;  %4734 = vmatprep.subr.bf16.mxu0 %v6008_v55  ;;  %v1535_v23 = vmul.f32 %v1481_v63, %v5778_v20  ;;  %v6118_v63 = vld [vmem:[%s6887_s9 + $0x28] sm:$0xff]  }
 0x440   :  { %4705 = vmatpush3.bf16.msra.mxu1 %v6008_v55  ;;  %4735 = vmatpush3.bf16.msra.mxu0 %v6008_v55 }
 0x442   :  { %v1486_v56 = vpop.permute.xlu1 %1485  ;;  %v1496_v57 = vpop.permute.xlu0 %1495 }
 0x443   :  { %v1536_v15 = vmul.f32 %v1486_v56, %v5783_v37  ;;  %v1538_v20 = vmul.f32 %v1496_v57, %v5801_v50  ;;  %v6125_v56 = vld [vmem:[%s6887_s9 + $0x30] sm:$0xff]   ;;  %v6132_v57 = vld [vmem:[%s6887_s9 + $0x38] sm:$0xff]  }
 0x446   :  { %v1559_v44 = vpop.permute.xlu1 %1558  ;;  %v1574_v16 = vpop.permute.xlu0 %1573 }
 0x447   :  { %v1613_v24 = vadd.f32 %v1559_v44, %v1535_v23  ;;  %v1616_v33 = vadd.f32 %v1574_v16, %v1538_v20  ;;  %v6139_v44 = vld [vmem:[%s6887_s9 + $0x40] sm:$0xff]  }
 0x44a   :  { %v1564_v62 = vpop.permute.xlu1 %1563  ;;  %v1506_v7 = vpop.permute.xlu0 %1505 }
 0x44b   :  { %v1614_v9 = vadd.f32 %v1564_v62, %v1536_v15  ;;  %v1540_v25 = vmul.f32 %v1506_v7, %v5819_v4 }
 0x44d   :  { %v6016_v28 = vpack.c.bf16 %v1614_v9, %v1613_v24  ;;  %v5076_v9 = vld [vmem:[%s6892_s2 + $0x10] sm:$0xff]  }
 0x44e   :  { %v1491_v8 = vpop.permute.xlu1 %1490  ;;  %v1584_v5 = vpop.permute.xlu0 %1583 }
 0x44f   :  { %4706 = vmatprep.subr.bf16.mxu1 %v6016_v28  ;;  %4736 = vmatprep.subr.bf16.mxu0 %v6016_v28  ;;  %v1537_v37 = vmul.f32 %v1491_v8, %v5796_v31  ;;  %v1618_v58 = vadd.f32 %v1584_v5, %v1540_v25  ;;  %v5077_v8 = vld [vmem:[%s6892_s2 + $0x18] sm:$0xff]   ;;  %v5078_v5 = vld [vmem:[%s6892_s2 + $0x20] sm:$0xff]  }
 0x450   :  { %4707 = vmatpush3.bf16.msra.mxu1 %v6016_v28  ;;  %4737 = vmatpush3.bf16.msra.mxu0 %v6016_v28 }
 0x452   :  { %v1569_v13 = vpop.permute.xlu1 %1568  ;;  %v1516_v19 = vpop.permute.xlu0 %1515 }
 0x453   :  { %v1615_v39 = vadd.f32 %v1569_v13, %v1537_v37  ;;  %v1542_v27 = vmul.f32 %v1516_v19, %v5837_v42 }
 0x455   :  { %v6024_v12 = vpack.c.bf16 %v1616_v33, %v1615_v39 }
 0x456   :  { %v1501_v40 = vpop.permute.xlu1 %1500  ;;  %v1594_v1 = vpop.permute.xlu0 %1593 }
 0x457   :  { %4708 = vmatprep.subr.bf16.mxu1 %v6024_v12  ;;  %4738 = vmatprep.subr.bf16.mxu0 %v6024_v12  ;;  %v1539_v50 = vmul.f32 %v1501_v40, %v5814_v61  ;;  %v1620_v14 = vadd.f32 %v1594_v1, %v1542_v27 }
 0x458   :  { %4709 = vmatpush3.bf16.msra.mxu1 %v6024_v12  ;;  %4739 = vmatpush3.bf16.msra.mxu0 %v6024_v12 }
 0x45a   :  { %v1579_v31 = vpop.permute.xlu1 %1578  ;;  %v1526_v61 = vpop.permute.xlu0 %1525 }
 0x45b   :  { %v1617_v36 = vadd.f32 %v1579_v31, %v1539_v50  ;;  %v1544_v42 = vmul.f32 %v1526_v61, %v5855_v41 }
 0x45d   :  { %v6032_v11 = vpack.c.bf16 %v1618_v58, %v1617_v36 }
 0x45e   :  { %v1511_v52 = vpop.permute.xlu1 %1510  ;;  %v1604_v3 = vpop.permute.xlu0 %1603 }
 0x45f   :  { %4710 = vmatprep.subr.bf16.mxu1 %v6032_v11  ;;  %4740 = vmatprep.subr.bf16.mxu0 %v6032_v11  ;;  %v1541_v4 = vmul.f32 %v1511_v52, %v5832_v18  ;;  %v1622_v60 = vadd.f32 %v1604_v3, %v1544_v42 }
 0x460   :  { %4711 = vmatpush3.bf16.msra.mxu1 %v6032_v11  ;;  %4741 = vmatpush3.bf16.msra.mxu0 %v6032_v11 }
 0x462   :  { %v1589_v17 = vpop.permute.xlu1 %1588  ;;  %v1609_v21 = vpop.permute.xlu0 %1608 }
 0x463   :  { %v1619_v34 = vadd.f32 %v1589_v17, %v1541_v4 }
 0x465   :  { %v6040_v49 = vpack.c.bf16 %v1620_v14, %v1619_v34  ;;  %v6199_v34 = vld [vmem:[%s6887_s9 + $0x48] sm:$0xff]  }
 0x466   :  { %v1521_v38 = vpop.permute.xlu1 %1520 }
 0x467   :  { %4712 = vmatprep.subr.bf16.mxu1 %v6040_v49  ;;  %4742 = vmatprep.subr.bf16.mxu0 %v6040_v49  ;;  %v1543_v18 = vmul.f32 %v1521_v38, %v5850_v22  ;;  %v6213_v38 = vld [vmem:[%s6887_s9 + $0x58] sm:$0xff]  }
 0x468   :  { %4713 = vmatpush3.bf16.msra.mxu1 %v6040_v49  ;;  %4743 = vmatpush3.bf16.msra.mxu0 %v6040_v49 }
 0x46a   :  { %v1599_v26 = vpop.permute.xlu1 %1598 }
 0x46b   :  { %v1621_v29 = vadd.f32 %v1599_v26, %v1543_v18 }
 0x46d   :  { %v6048_v45 = vpack.c.bf16 %v1622_v60, %v1621_v29 }
 0x46e   :  { %v1531_v35 = vpop.permute.xlu1 %1530 }
 0x46f   :  { %v1545_v59 = vmul.f32 %v1531_v35, %v5868_v48  ;;  %4714 = vmatprep.subr.bf16.mxu1 %v6048_v45  ;;  %4744 = vmatprep.subr.bf16.mxu0 %v6048_v45 }
 0x470   :  { %4715 = vmatpush3.bf16.msra.mxu1 %v6048_v45  ;;  %4745 = vmatpush3.bf16.msra.mxu0 %v6048_v45 }
 0x471   :  { %v1623_v41 = vadd.f32 %v1609_v21, %v1545_v59 }
 0x473   :  { %v6055_v22 = vpack.c.bf16 %v1623_v41, %v1623_v41 }
 0x475   :  { %5022 = vmatprep.subr.msk.bf16.mxu1 %vm1664_vm6, %v6055_v22  ;;  %5023 = vmatprep.subr.msk.bf16.mxu0 %vm1664_vm6, %v6055_v22  ;;  %v6063_v48 = vsel %vm1664_vm6, %v6055_v22, 0 }
 0x476   :  { %4717 = vmatpush3.bf16.msra.mxu1 %v6063_v48  ;;  %4747 = vmatpush3.bf16.msra.mxu0 %v6063_v48 }
 0x477   :  { %4722 = vmatprep.subr.bf16.mxu1 %v6073_v46  ;;  %4770 = vmatprep.subr.bf16.mxu0 %v6079_v47 }
 0x479   :  { %4719 = vmatmul.mubr.msk.bf16.vlgmr.msra.gmra.mrb[84].mxu1 %vm1657_vm5, %v5073_v32  ;;  %4749 = vmatmul.mubr.msk.bf16.vlgmr.msra.gmra.mrb[112].mxu0 %vm1657_vm5, %v5075_v54 }
 0x47a   :  { %4723 = vmatpush3.bf16.msra.mxu1 %v6073_v46  ;;  %4771 = vmatpush3.bf16.msra.mxu0 %v6079_v47 }
 0x47b   :  { %4724 = vmatprep.subr.bf16.mxu1 %v6087_v2  ;;  %4772 = vmatprep.subr.bf16.mxu0 %v6118_v63 }
 0x47e   :  { %4725 = vmatpush3.bf16.msra.mxu1 %v6087_v2  ;;  %4773 = vmatpush3.bf16.msra.mxu0 %v6118_v63 }
 0x47f   :  { %4726 = vmatprep.subr.bf16.mxu1 %v6094_v6  ;;  %4774 = vmatprep.subr.bf16.mxu0 %v6125_v56 }
 0x482   :  { %4727 = vmatpush3.bf16.msra.mxu1 %v6094_v6  ;;  %4775 = vmatpush3.bf16.msra.mxu0 %v6125_v56 }
 0x483   :  { %4728 = vmatprep.subr.bf16.mxu1 %v6101_v53  ;;  %4776 = vmatprep.subr.bf16.mxu0 %v6132_v57 }
 0x486   :  { %4729 = vmatpush3.bf16.msra.mxu1 %v6101_v53  ;;  %4777 = vmatpush3.bf16.msra.mxu0 %v6132_v57 }
 0x487   :  { %4752 = vmatprep.subr.bf16.mxu1 %v6008_v55  ;;  %4800 = vmatprep.subr.bf16.mxu0 %v6139_v44 }
 0x54c   :  { %v4720_v16 = vpop.f32.mrb[84].mxu1 }
 0x54d   :  { %v1702_v23 = vpop.f32.mrb[85].mxu1 }
 0x54e   :  { %v4721_v15 = vpop.f32.mrb[86].mxu1 }
 0x54f   :  { %v1718_v62 = vpack.c.bf16 %v4721_v15, %v4720_v16  ;;  %v1705_v7 = vpop.f32.mrb[87].mxu1 }
 0x550   :  { %v1717_v24 = vpack.c.bf16 %v1705_v7, %v1702_v23 }
 0x552   :  { %4730 = vmatprep.mubr.msk.bf16.mxu1 %vm340_vm3, %v1717_v24 }
 0x553   :  { %4731 = vmatmul.mubr.msk.bf16.vlgmr.msra.gmra.mrb[88].mxu1 %vm340_vm3, %v1718_v62 }
 0x554   :  { %4753 = vmatpush3.bf16.msra.mxu1 %v6008_v55  ;;  %4766 = vmatprep.mubr.msk.bf16.mxu1 %vm1657_vm5, %v5076_v9 }
 0x555   :  { %4754 = vmatprep.subr.bf16.mxu1 %v6016_v28 }
 0x558   :  { %4755 = vmatpush3.bf16.msra.mxu1 %v6016_v28 }
 0x559   :  { %4756 = vmatprep.subr.bf16.mxu1 %v6024_v12 }
 0x55c   :  { %4757 = vmatpush3.bf16.msra.mxu1 %v6024_v12 }
 0x55d   :  { %4758 = vmatprep.subr.bf16.mxu1 %v6032_v11 }
 0x560   :  { %4759 = vmatpush3.bf16.msra.mxu1 %v6032_v11 }
 0x561   :  { %4760 = vmatprep.subr.bf16.mxu1 %v6040_v49 }
 0x564   :  { %4761 = vmatpush3.bf16.msra.mxu1 %v6040_v49 }
 0x565   :  { %4762 = vmatprep.subr.bf16.mxu1 %v6048_v45 }
 0x568   :  { %4763 = vmatpush3.bf16.msra.mxu1 %v6048_v45 }
 0x569   :  { %5024 = vmatprep.subr.msk.bf16.mxu1 %vm1664_vm6, %v6055_v22 }
 0x56c   :  { %4765 = vmatpush3.bf16.msra.mxu1 %v6063_v48 }
 0x56d   :  { %4782 = vmatprep.subr.bf16.mxu1 %v6008_v55 }
 0x56f   :  { %4767 = vmatmul.mubr.msk.bf16.vlgmr.msra.gmra.mrb[92].mxu1 %vm1657_vm5, %v5077_v8 }
 0x570   :  { %4783 = vmatpush3.bf16.msra.mxu1 %v6008_v55  ;;  %4796 = vmatprep.mubr.msk.bf16.mxu1 %vm1657_vm5, %v5078_v5  ;;  %v5079_v55 = vld [vmem:[%s6892_s2 + $0x28] sm:$0xff]  }
 0x571   :  { %4784 = vmatprep.subr.bf16.mxu1 %v6016_v28 }
 0x574   :  { %4785 = vmatpush3.bf16.msra.mxu1 %v6016_v28  ;;  %v4750_v28 = vpop.f32.mrb[112].mxu0 }
 0x575   :  { %4786 = vmatprep.subr.bf16.mxu1 %v6024_v12  ;;  %v1828_v20 = vpop.f32.mrb[113].mxu0 }
 0x576   :  { %v4751_v37 = vpop.f32.mrb[114].mxu0 }
 0x577   :  { %v1831_v13 = vpop.f32.mrb[115].mxu0 }
 0x578   :  { %4787 = vmatpush3.bf16.msra.mxu1 %v6024_v12 }
 0x579   :  { %4788 = vmatprep.subr.bf16.mxu1 %v6032_v11 }
 0x57c   :  { %4789 = vmatpush3.bf16.msra.mxu1 %v6032_v11 }
 0x57d   :  { %4790 = vmatprep.subr.bf16.mxu1 %v6040_v49 }
 0x580   :  { %4791 = vmatpush3.bf16.msra.mxu1 %v6040_v49  ;;  %v6206_v49 = vld [vmem:[%s6887_s9 + $0x50] sm:$0xff]  }
 0x581   :  { %4792 = vmatprep.subr.bf16.mxu1 %v6048_v45 }
 0x584   :  { %4793 = vmatpush3.bf16.msra.mxu1 %v6048_v45 }
 0x585   :  { %5025 = vmatprep.subr.msk.bf16.mxu1 %vm1664_vm6, %v6055_v22 }
 0x588   :  { %4795 = vmatpush3.bf16.msra.mxu1 %v6063_v48 }
 0x58b   :  { %4797 = vmatmul.mubr.msk.bf16.vlgmr.msra.gmra.mrb[96].mxu1 %vm1657_vm5, %v5079_v55 }
 0x626   :  { %v4732_v33 = vpop.f32.mrb[88].mxu1 }
 0x627   :  { %v1776_v39 = vmul.f32 %v4732_v33, %v5596_v43  ;;  %v1759_v12 = vpop.f32.mrb[89].mxu1 }
 0x628   :  { %v1774_v19 = vmul.f32 %v1759_v12, %v5596_v43  ;;  %v4733_v40 = vpop.f32.mrb[90].mxu1 }
 0x629   :  { %v1777_v25 = vmul.f32 %v4733_v40, %v5596_v43  ;;  %v1837_v50 = vadd.f32 %v4750_v28, %v1776_v39  ;;  %v1762_v31 = vpop.f32.mrb[91].mxu1 }
 0x62a   :  { %v1775_v58 = vmul.f32 %v1762_v31, %v5596_v43  ;;  %v1829_v36 = vadd.f32 %v1828_v20, %v1774_v19 }
 0x62b   :  { %v1840_v1 = vadd.f32 %v4751_v37, %v1777_v25 }
 0x62c   :  { %v1832_v11 = vadd.f32 %v1831_v13, %v1775_v58 }
 0x642   :  { %v4768_v52 = vpop.f32.mrb[92].mxu1 }
 0x643   :  { %v1893_v27 = vpop.f32.mrb[93].mxu1 }
 0x644   :  { %v4769_v4 = vpop.f32.mrb[94].mxu1 }
 0x645   :  { %v1909_v61 = vpack.c.bf16 %v4769_v4, %v4768_v52  ;;  %v1896_v17 = vpop.f32.mrb[95].mxu1 }
 0x646   :  { %v1908_v14 = vpack.c.bf16 %v1896_v17, %v1893_v27 }
 0x648   :  { %4778 = vmatprep.mubr.msk.bf16.mxu0 %vm340_vm3, %v1908_v14 }
 0x649   :  { %4779 = vmatmul.mubr.msk.bf16.vlgmr.msra.gmra.mrb[116].mxu0 %vm340_vm3, %v1909_v61 }
 0x64a   :  { %4801 = vmatpush3.bf16.msra.mxu0 %v6139_v44 }
 0x64b   :  { %4802 = vmatprep.subr.bf16.mxu0 %v6199_v34 }
 0x64e   :  { %4803 = vmatpush3.bf16.msra.mxu0 %v6199_v34 }
 0x64f   :  { %4804 = vmatprep.subr.bf16.mxu0 %v6206_v49 }
 0x652   :  { %4805 = vmatpush3.bf16.msra.mxu0 %v6206_v49 }
 0x653   :  { %4806 = vmatprep.subr.bf16.mxu0 %v6213_v38 }
 0x656   :  { %4807 = vmatpush3.bf16.msra.mxu0 %v6213_v38 }
 0x657   :  { %4820 = vmatprep.subr.bf16.mxu0 %v6073_v46 }
 0x65e   :  { %v4798_v3 = vpop.f32.mrb[96].mxu1 }
 0x65f   :  { %v2023_v42 = vpop.f32.mrb[97].mxu1 }
 0x660   :  { %v4799_v18 = vpop.f32.mrb[98].mxu1 }
 0x661   :  { %v2039_v26 = vpack.c.bf16 %v4799_v18, %v4798_v3  ;;  %v2026_v60 = vpop.f32.mrb[99].mxu1 }
 0x662   :  { %v2038_v29 = vpack.c.bf16 %v2026_v60, %v2023_v42 }
 0x664   :  { %4808 = vmatprep.mubr.msk.bf16.mxu0 %vm340_vm3, %v2038_v29 }
 0x665   :  { %4809 = vmatmul.mubr.msk.bf16.vlgmr.msra.gmra.mrb[120].mxu0 %vm340_vm3, %v2039_v26 }
 0x666   :  { %4821 = vmatpush3.bf16.msra.mxu0 %v6073_v46 }
 0x667   :  { %4822 = vmatprep.subr.bf16.mxu0 %v6087_v2 }
 0x66a   :  { %4823 = vmatpush3.bf16.msra.mxu0 %v6087_v2 }
 0x66b   :  { %4824 = vmatprep.subr.bf16.mxu0 %v6094_v6 }
 0x66e   :  { %4825 = vmatpush3.bf16.msra.mxu0 %v6094_v6 }
 0x66f   :  { %4826 = vmatprep.subr.bf16.mxu0 %v6101_v53 }
 0x672   :  { %4827 = vmatpush3.bf16.msra.mxu0 %v6101_v53 }
 0x673   :  { %4848 = vmatprep.subr.bf16.mxu0 %v6079_v47 }
 0x71c   :  { %v4780_v45 = vpop.f32.mrb[116].mxu0 }
 0x71d   :  { %v1967_v35 = vmul.f32 %v4780_v45, %v5707_v10  ;;  %v1950_v59 = vpop.f32.mrb[117].mxu0 }
 0x71e   :  { %v1965_v21 = vmul.f32 %v1950_v59, %v5707_v10  ;;  %v4781_v41 = vpop.f32.mrb[118].mxu0 }
 0x71f   :  { %v1971_v22 = vadd.f32 %v1967_v35, %v1837_v50  ;;  %v1968_v48 = vmul.f32 %v4781_v41, %v5707_v10  ;;  %v1953_v32 = vpop.f32.mrb[119].mxu0 }
 0x720   :  { %v1969_v46 = vadd.f32 %v1965_v21, %v1829_v36  ;;  %v1966_v2 = vmul.f32 %v1953_v32, %v5707_v10 }
 0x721   :  { %v1972_v6 = vadd.f32 %v1968_v48, %v1840_v1 }
 0x722   :  { %v1970_v51 = vadd.f32 %v1966_v2, %v1832_v11 }
 0x738   :  { %v4810_v54 = vpop.f32.mrb[120].mxu0 }
 0x739   :  { %v2097_v53 = vmul.f32 %v4810_v54, %v5759_v30  ;;  %v2080_v16 = vpop.f32.mrb[121].mxu0  ;;  %v2147_v54 = vld [vmem:[%s6894_s7] sm:$0xff] }
 0x73a   :  { %v2095_v23 = vmul.f32 %v2080_v16, %v5759_v30  ;;  %v4811_v15 = vpop.f32.mrb[122].mxu0 }
 0x73b   :  { %v6234_v62 = vadd.f32 %v2097_v53, %v1971_v22  ;;  %v2098_v7 = vmul.f32 %v4811_v15, %v5759_v30  ;;  %v2083_v24 = vpop.f32.mrb[123].mxu0  ;;  %v2148_v53 = vld [vmem:[%s6894_s7 + $0x8] sm:$0xff] }
 0x73c   :  { %v6237_v9 = vadd.f32 %v2095_v23, %v1969_v46  ;;  %v2096_v8 = vmul.f32 %v2083_v24, %v5759_v30 }
 0x73d   :  { %v6240_v5 = vadd.f32 %v2098_v7, %v1972_v6  ;;  %v2109_v55 = vsel %vm340_vm3, %v6234_v62, 0.0  ;;  %v2121_v19 = vmul.f32 %v6234_v62, %v6234_v62  ;;  %v2149_v7 = vld [vmem:[%s6894_s7 + $0x10] sm:$0xff] }
 0x73e   :  { %v6244_v28 = vadd.f32 %v2096_v8, %v1970_v51  ;;  %2110 = vadd.xlane.f32.xlu0 %v2109_v55  ;;  %v2103_v20 = vsel %vm340_vm3, %v6237_v9, 0.0  ;;  %v2119_v13 = vmul.f32 %v6237_v9, %v6237_v9  ;;  %v2150_v8 = vld [vmem:[%s6894_s7 + $0x18] sm:$0xff] }
 0x73f   :  { %2104 = vadd.xlane.f32.xlu1 %v2103_v20  ;;  %v2112_v33 = vsel %vm340_vm3, %v6240_v5, 0.0  ;;  %v2122_v25 = vmul.f32 %v6240_v5, %v6240_v5  ;;  %v2129_v50 = vsel %vm340_vm3, %v2121_v19, 0.0 }
 0x740   :  { %v2106_v37 = vsel %vm340_vm3, %v6244_v28, 0.0  ;;  %v2120_v39 = vmul.f32 %v6244_v28, %v6244_v28  ;;  %v2123_v12 = vsel %vm340_vm3, %v2119_v13, 0.0 }
 0x741   :  { %v2132_v31 = vsel %vm340_vm3, %v2122_v25, 0.0 }
 0x742   :  { %2107 = vadd.xlane.f32.xlu0 %v2106_v37  ;;  %v2126_v40 = vsel %vm340_vm3, %v2120_v39, 0.0  ;;  %v2164_v39 = vld [vmem:[%s6895_s6 + $0x8] sm:$0xff] }
 0x743   :  { %2113 = vadd.xlane.f32.xlu1 %v2112_v33 }
 0x746   :  { %2124 = vadd.xlane.f32.xlu0 %v2123_v12 }
 0x747   :  { %2127 = vadd.xlane.f32.xlu1 %v2126_v40  ;;  %v2163_v40 = vld [vmem:[%s6895_s6] sm:$0xff] }
 0x74a   :  { %2130 = vadd.xlane.f32.xlu0 %v2129_v50  ;;  %v2166_v50 = vld [vmem:[%s6895_s6 + $0x18] sm:$0xff] }
 0x74b   :  { %2133 = vadd.xlane.f32.xlu1 %v2132_v31 }
 0x7cb   :  { %v2111_v58 = vpop.xlane.xlu0 %2110 }
 0x7cc   :  { %v2105_v36 = vpop.xlane.xlu1 %2104  ;;  %v2117_v61 = vmul.f32 0.015625, %v2111_v58 }
 0x7cd   :  { %v2115_v11 = vmul.f32 0.015625, %v2105_v36 }
 0x7ce   :  { %v2141_v35 = vmul.f32 %v2117_v61, %v2117_v61 }
 0x7cf   :  { %v2108_v1 = vpop.xlane.xlu0 %2107  ;;  %v2139_v17 = vmul.f32 %v2115_v11, %v2115_v11 }
 0x7d0   :  { %v2114_v52 = vpop.xlane.xlu1 %2113  ;;  %v2116_v27 = vmul.f32 0.015625, %v2108_v1  ;;  %v2165_v1 = vld [vmem:[%s6895_s6 + $0x10] sm:$0xff] }
 0x7d1   :  { %v2118_v18 = vmul.f32 0.015625, %v2114_v52  ;;  %v5080_v52 = vld [vmem:[%s6849_s11] sm:$0xff]  }
 0x7d2   :  { %v2140_v42 = vmul.f32 %v2116_v27, %v2116_v27  ;;  %4816 = vmatprep.mubr.msk.bf16.mxu1 %vm2251_vm7, %v5080_v52 }
 0x7d3   :  { %v2125_v4 = vpop.xlane.xlu0 %2124  ;;  %v2142_v22 = vmul.f32 %v2118_v18, %v2118_v18 }
 0x7d4   :  { %v2135_v14 = vmul.f32 0.015625, %v2125_v4  ;;  %v2128_v3 = vpop.xlane.xlu1 %2127 }
 0x7d5   :  { %v2136_v26 = vmul.f32 0.015625, %v2128_v3 }
 0x7d6   :  { %v2143_v60 = vsub.f32 %v2135_v14, %v2139_v17 }
 0x7d7   :  { %v2144_v29 = vsub.f32 %v2136_v26, %v2140_v42  ;;  %v2131_v45 = vpop.xlane.xlu0 %2130 }
 0x7d8   :  { %v2151_v59 = vadd.f32 1e-05, %v2143_v60  ;;  %v2137_v21 = vmul.f32 0.015625, %v2131_v45  ;;  %v2134_v41 = vpop.xlane.xlu1 %2133 }
 0x7d9   :  { %v2152_v48 = vadd.f32 1e-05, %v2144_v29  ;;  %v2138_v32 = vmul.f32 0.015625, %v2134_v41 }
 0x7da   :  { %5141 = vrsqrt.f32 %v2151_v59  ;;  %v2145_v46 = vsub.f32 %v2137_v21, %v2141_v35 }
 0x7db   :  { %5143 = vrsqrt.f32 %v2152_v48  ;;  %v2146_v2 = vsub.f32 %v2138_v32, %v2142_v22  ;;  %v5085_v32 = vld [vmem:[%s6849_s11 + $0x18] sm:$0xff]  }
 0x7dc   :  { %v2153_v6 = vadd.f32 1e-05, %v2145_v46  ;;  %v5086_v46 = vld [vmem:[%s6849_s11 + $0x20] sm:$0xff]  }
 0x7dd   :  { %v2154_v51 = vadd.f32 1e-05, %v2146_v2  ;;  %v5087_v2 = vld [vmem:[%s6849_s11 + $0x28] sm:$0xff]  }
 0x7de   :  { %5145 = vrsqrt.f32 %v2153_v6 }
 0x7df   :  { %5147 = vrsqrt.f32 %v2154_v51 }
 0x7e4   :  { %v5142_v16 = vpop.eup %5141 }
 0x7e5   :  { %v5144_v23 = vpop.eup %5143  ;;  %v2159_v15 = vmul.f32 %v5142_v16, %v2147_v54 }
 0x7e6   :  { %v2160_v24 = vmul.f32 %v5144_v23, %v2148_v53 }
 0x7e7   :  { %2177 = vperm.xlu0 %5030, %v2159_v15   ;;  %v2167_v12 = vmul.f32 %v2159_v15, %v2115_v11 }
 0x7e8   :  { %v5146_v55 = vpop.eup %5145  ;;  %v2168_v33 = vmul.f32 %v2160_v24, %v2116_v27 }
 0x7e9   :  { %v5148_v20 = vpop.eup %5147  ;;  %v2161_v37 = vmul.f32 %v5146_v55, %v2149_v7  ;;  %v2171_v31 = vsub.f32 %v2163_v40, %v2167_v12 }
 0x7ea   :  { %v2162_v13 = vmul.f32 %v5148_v20, %v2150_v8  ;;  %v2172_v19 = vsub.f32 %v2164_v39, %v2168_v33 }
 0x7eb   :  { %2187 = vperm.xlu1 %5031, %v2161_v37   ;;  %v2169_v58 = vmul.f32 %v2161_v37, %v2117_v61 }
 0x7ec   :  { %2192 = vperm.xlu0 %5030, %v2162_v13   ;;  %v2170_v25 = vmul.f32 %v2162_v13, %v2118_v18 }
 0x7ed   :  { %v2173_v11 = vsub.f32 %v2165_v1, %v2169_v58 }
 0x7ee   :  { %v2174_v36 = vsub.f32 %v2166_v50, %v2170_v25 }
 0x7ef   :  { %2182 = vperm.xlu1 %5031, %v2160_v24  }
 0x7f0   :  { %2206 = vperm.xlu0 %5030, %v2172_v19  }
 0x7f3   :  { %2201 = vperm.xlu1 %5031, %v2171_v31  }
 0x7f4   :  { %2216 = vperm.xlu0 %5030, %v2174_v36  }
 0x7f7   :  { %2211 = vperm.xlu1 %5031, %v2173_v11  }
 0x866   :  { %v2178_v27 = vpop.permute.xlu0 %2177 }
 0x867   :  { %v2195_v42 = vmul.f32 %v2178_v27, %v6237_v9  ;;  %v5081_v9 = vld [vmem:[%s6849_s11 + $0x8] sm:$0xff]  }
 0x86a   :  { %v2188_v4 = vpop.permute.xlu1 %2187 }
 0x86b   :  { %v2193_v17 = vpop.permute.xlu0 %2192  ;;  %v2197_v45 = vmul.f32 %v2188_v4, %v6234_v62  ;;  %v5083_v62 = vld [vmem:[%s6850_s12 + $0x8] sm:$0xff]  }
 0x86c   :  { %v2198_v35 = vmul.f32 %v2193_v17, %v6240_v5  ;;  %v5084_v5 = vld [vmem:[%s6849_s11 + $0x10] sm:$0xff]  }
 0x86e   :  { %v2183_v61 = vpop.permute.xlu1 %2182 }
 0x86f   :  { %v2196_v14 = vmul.f32 %v2183_v61, %v6244_v28  ;;  %v2207_v3 = vpop.permute.xlu0 %2206  ;;  %v5082_v28 = vld [vmem:[%s6850_s12] sm:$0xff]  }
 0x871   :  { %v2220_v26 = vadd.f32 %v2207_v3, %v2196_v14 }
 0x872   :  { %v2202_v18 = vpop.permute.xlu1 %2201 }
 0x873   :  { %v2219_v60 = vadd.f32 %v2202_v18, %v2195_v42  ;;  %v2217_v29 = vpop.permute.xlu0 %2216 }
 0x874   :  { %v2222_v41 = vadd.f32 %v2217_v29, %v2198_v35 }
 0x875   :  { %v2223_v59 = vpack.c.bf16 %v2220_v26, %v2219_v60 }
 0x876   :  { %v2212_v21 = vpop.permute.xlu1 %2211 }
 0x877   :  { %v2221_v22 = vadd.f32 %v2212_v21, %v2197_v45  ;;  %4812 = vmatprep.subr.bf16.mxu1 %v2223_v59 }
 0x878   :  { %4813 = vmatpush3.bf16.msra.mxu1 %v2223_v59 }
 0x879   :  { %v2224_v48 = vpack.c.bf16 %v2222_v41, %v2221_v22 }
 0x87b   :  { %4814 = vmatprep.subr.bf16.mxu1 %v2224_v48 }
 0x87c   :  { %4815 = vmatpush3.bf16.msra.mxu1 %v2224_v48 }
 0x87d   :  { %4832 = vmatprep.subr.bf16.mxu1 %v2223_v59 }
 0x87f   :  { %4817 = vmatmul.mubr.msk.bf16.vlgmr.msra.gmra.mrb[100].mxu1 %vm2251_vm7, %v5081_v9 }
 0x880   :  { %4833 = vmatpush3.bf16.msra.mxu1 %v2223_v59  ;;  %4836 = vmatprep.mubr.msk.bf16.mxu1 %vm2251_vm7, %v5082_v28 }
 0x881   :  { %4834 = vmatprep.subr.bf16.mxu1 %v2224_v48 }
 0x884   :  { %4835 = vmatpush3.bf16.msra.mxu1 %v2224_v48 }
 0x885   :  { %4840 = vmatprep.subr.bf16.mxu1 %v2223_v59 }
 0x887   :  { %4837 = vmatmul.mubr.msk.bf16.vlgmr.msra.gmra.mrb[104].mxu1 %vm2251_vm7, %v5083_v62 }
 0x888   :  { %4841 = vmatpush3.bf16.msra.mxu1 %v2223_v59  ;;  %4844 = vmatprep.mubr.msk.bf16.mxu1 %vm2251_vm7, %v5084_v5 }
 0x889   :  { %4842 = vmatprep.subr.bf16.mxu1 %v2224_v48 }
 0x88c   :  { %4843 = vmatpush3.bf16.msra.mxu1 %v2224_v48 }
 0x88d   :  { %4860 = vmatprep.subr.bf16.mxu1 %v2223_v59 }
 0x88f   :  { %4845 = vmatmul.mubr.msk.bf16.vlgmr.msra.gmra.mrb[108].mxu1 %vm2251_vm7, %v5085_v32 }
 0x890   :  { %4861 = vmatpush3.bf16.msra.mxu1 %v2223_v59  ;;  %4864 = vmatprep.mubr.msk.bf16.mxu1 %vm2251_vm7, %v5086_v46 }
 0x891   :  { %4862 = vmatprep.subr.bf16.mxu1 %v2224_v48 }
 0x894   :  { %4863 = vmatpush3.bf16.msra.mxu1 %v2224_v48 }
 0x895   :  { %4868 = vmatprep.subr.bf16.mxu1 %v6139_v44 }
 0x897   :  { %4865 = vmatmul.mubr.msk.bf16.vlgmr.msra.gmra.mrb[112].mxu1 %vm2251_vm7, %v5087_v2 }
 0x898   :  { %4869 = vmatpush3.bf16.msra.mxu1 %v6139_v44 }
 0x899   :  { %4870 = vmatprep.subr.bf16.mxu1 %v6199_v34 }
 0x89c   :  { %4871 = vmatpush3.bf16.msra.mxu1 %v6199_v34 }
 0x89d   :  { %4872 = vmatprep.subr.bf16.mxu1 %v6206_v49 }
 0x8a0   :  { %4873 = vmatpush3.bf16.msra.mxu1 %v6206_v49 }
 0x8a1   :  { %4874 = vmatprep.subr.bf16.mxu1 %v6213_v38 }
 0x8a4   :  { %4875 = vmatpush3.bf16.msra.mxu1 %v6213_v38 }
 0x952   :  { %v4818_v6 = vpop.f32.mrb[100].mxu1 }
 0x953   :  { %v2292_v51 = vpop.f32.mrb[101].mxu1 }
 0x954   :  { %v4819_v54 = vpop.f32.mrb[102].mxu1 }
 0x955   :  { %v2308_v53 = vpack.c.bf16 %v4819_v54, %v4818_v6  ;;  %v2295_v16 = vpop.f32.mrb[103].mxu1 }
 0x956   :  { %v2307_v23 = vpack.c.bf16 %v2295_v16, %v2292_v51 }
 0x958   :  { %4828 = vmatprep.mubr.msk.bf16.mxu0 %vm340_vm3, %v2307_v23 }
 0x959   :  { %4829 = vmatmul.mubr.msk.bf16.vlgmr.msra.gmra.mrb[124].mxu0 %vm340_vm3, %v2308_v53 }
 0x95a   :  { %4849 = vmatpush3.bf16.msra.mxu0 %v6079_v47  ;;  %v4838_v15 = vpop.f32.mrb[104].mxu1 }
 0x95b   :  { %4850 = vmatprep.subr.bf16.mxu0 %v6118_v63  ;;  %v2418_v7 = vpop.f32.mrb[105].mxu1 }
 0x95c   :  { %v4839_v24 = vpop.f32.mrb[106].mxu1 }
 0x95d   :  { %v2421_v8 = vpop.f32.mrb[107].mxu1 }
 0x95e   :  { %4851 = vmatpush3.bf16.msra.mxu0 %v6118_v63 }
 0x95f   :  { %4852 = vmatprep.subr.bf16.mxu0 %v6125_v56 }
 0x962   :  { %v4846_v55 = vpop.f32.mrb[108].mxu1  ;;  %4853 = vmatpush3.bf16.msra.mxu0 %v6125_v56 }
 0x963   :  { %v2483_v20 = vpop.f32.mrb[109].mxu1  ;;  %4854 = vmatprep.subr.bf16.mxu0 %v6132_v57 }
 0x964   :  { %v4847_v37 = vpop.f32.mrb[110].mxu1 }
 0x965   :  { %v2499_v13 = vpack.c.bf16 %v4847_v37, %v4846_v55  ;;  %v2486_v33 = vpop.f32.mrb[111].mxu1 }
 0x966   :  { %v2498_v47 = vpack.c.bf16 %v2486_v33, %v2483_v20  ;;  %4855 = vmatpush3.bf16.msra.mxu0 %v6132_v57 }
 0x968   :  { %4856 = vmatprep.mubr.msk.bf16.mxu0 %vm340_vm3, %v2498_v47 }
 0x969   :  { %4857 = vmatmul.mubr.msk.bf16.vlgmr.msra.gmra.mrb[128].mxu0 %vm340_vm3, %v2499_v13 }
 0x96a   :  { %v4866_v39 = vpop.f32.mrb[112].mxu1 }
 0x96b   :  { %v2613_v63 = vpop.f32.mrb[113].mxu1 }
 0x96c   :  { %v4867_v12 = vpop.f32.mrb[114].mxu1 }
 0x96d   :  { %v2629_v19 = vpack.c.bf16 %v4867_v12, %v4866_v39  ;;  %v2616_v40 = vpop.f32.mrb[115].mxu1 }
 0x96e   :  { %v2628_v25 = vpack.c.bf16 %v2616_v40, %v2613_v63 }
 0x970   :  { %4876 = vmatprep.mubr.msk.bf16.mxu1 %vm340_vm3, %v2628_v25 }
 0x971   :  { %4877 = vmatmul.mubr.msk.bf16.vlgmr.msra.gmra.mrb[116].mxu1 %vm340_vm3, %v2629_v19 }
 0xa2c   :  { %v4830_v56 = vpop.f32.mrb[124].mxu0 }
 0xa2d   :  { %v2366_v50 = vmul.f32 %v4830_v56, %v5596_v43  ;;  %v2349_v31 = vpop.f32.mrb[125].mxu0 }
 0xa2e   :  { %v2364_v57 = vmul.f32 %v2349_v31, %v5596_v43  ;;  %v4831_v58 = vpop.f32.mrb[126].mxu0 }
 0xa2f   :  { %v2427_v36 = vadd.f32 %v4838_v15, %v2366_v50  ;;  %v2367_v1 = vmul.f32 %v4831_v58, %v5596_v43  ;;  %v2352_v11 = vpop.f32.mrb[127].mxu0 }
 0xa30   :  { %v2419_v52 = vadd.f32 %v2418_v7, %v2364_v57  ;;  %v2365_v27 = vmul.f32 %v2352_v11, %v5596_v43 }
 0xa31   :  { %v2430_v4 = vadd.f32 %v4839_v24, %v2367_v1 }
 0xa32   :  { %v2422_v17 = vadd.f32 %v2421_v8, %v2365_v27 }
 0xa3c   :  { %v4858_v61 = vpop.f32.mrb[128].mxu0 }
 0xa3d   :  { %v2557_v14 = vmul.f32 %v4858_v61, %v5707_v10  ;;  %v2540_v3 = vpop.f32.mrb[129].mxu0 }
 0xa3e   :  { %v2555_v42 = vmul.f32 %v2540_v3, %v5707_v10  ;;  %v4859_v18 = vpop.f32.mrb[130].mxu0 }
 0xa3f   :  { %v2561_v26 = vadd.f32 %v2557_v14, %v2427_v36  ;;  %v2558_v60 = vmul.f32 %v4859_v18, %v5707_v10  ;;  %v2543_v29 = vpop.f32.mrb[131].mxu0 }
 0xa40   :  { %v2559_v45 = vadd.f32 %v2555_v42, %v2419_v52  ;;  %v2556_v35 = vmul.f32 %v2543_v29, %v5707_v10 }
 0xa41   :  { %v2562_v59 = vadd.f32 %v2558_v60, %v2430_v4 }
 0xa42   :  { %v2560_v21 = vadd.f32 %v2556_v35, %v2422_v17  ;;  %v2738_v35 = vld [vmem:[%s6851_s13 + $0x8] sm:$0xff] }
 0xa44   :  { %v4878_v41 = vpop.f32.mrb[116].mxu1 }
 0xa45   :  { %v2687_v22 = vmul.f32 %v4878_v41, %v5759_v30  ;;  %v2670_v48 = vpop.f32.mrb[117].mxu1 }
 0xa46   :  { %v2685_v9 = vmul.f32 %v2670_v48, %v5759_v30  ;;  %v4879_v28 = vpop.f32.mrb[118].mxu1 }
 0xa47   :  { %v6355_v62 = vadd.f32 %v2687_v22, %v2561_v26  ;;  %v2688_v5 = vmul.f32 %v4879_v28, %v5759_v30  ;;  %v2673_v32 = vpop.f32.mrb[119].mxu1  ;;  %v2739_v22 = vld [vmem:[%s6851_s13 + $0x10] sm:$0xff] }
 0xa48   :  { %v6358_v46 = vadd.f32 %v2685_v9, %v2559_v45  ;;  %v2686_v2 = vmul.f32 %v2673_v32, %v5759_v30  ;;  %v2737_v45 = vld [vmem:[%s6851_s13] sm:$0xff]  ;;  %v2740_v9 = vld [vmem:[%s6851_s13 + $0x18] sm:$0xff] }
 0xa49   :  { %v6361_v6 = vadd.f32 %v2688_v5, %v2562_v59  ;;  %v2699_v51 = vsel %vm340_vm3, %v6355_v62, 0.0  ;;  %v2711_v8 = vmul.f32 %v6355_v62, %v6355_v62 }
 0xa4a   :  { %v6365_v54 = vadd.f32 %v2686_v2, %v2560_v21  ;;  %2700 = vadd.xlane.f32.xlu0 %v2699_v51  ;;  %v2693_v53 = vsel %vm340_vm3, %v6358_v46, 0.0  ;;  %v2709_v23 = vmul.f32 %v6358_v46, %v6358_v46 }
 0xa4b   :  { %2694 = vadd.xlane.f32.xlu1 %v2693_v53  ;;  %v2702_v15 = vsel %vm340_vm3, %v6361_v6, 0.0  ;;  %v2712_v20 = vmul.f32 %v6361_v6, %v6361_v6  ;;  %v2719_v37 = vsel %vm340_vm3, %v2711_v8, 0.0  ;;  %v2754_v53 = vld [vmem:[%s6852_s14 + $0x8] sm:$0xff] }
 0xa4c   :  { %v2696_v16 = vsel %vm340_vm3, %v6365_v54, 0.0  ;;  %v2710_v7 = vmul.f32 %v6365_v54, %v6365_v54  ;;  %v2713_v24 = vsel %vm340_vm3, %v2709_v23, 0.0 }
 0xa4d   :  { %v2722_v13 = vsel %vm340_vm3, %v2712_v20, 0.0 }
 0xa4e   :  { %2697 = vadd.xlane.f32.xlu0 %v2696_v16  ;;  %v2716_v55 = vsel %vm340_vm3, %v2710_v7, 0.0 }
 0xa4f   :  { %2703 = vadd.xlane.f32.xlu1 %v2702_v15  ;;  %v2753_v15 = vld [vmem:[%s6852_s14] sm:$0xff] }
 0xa52   :  { %2714 = vadd.xlane.f32.xlu0 %v2713_v24  ;;  %v2756_v24 = vld [vmem:[%s6852_s14 + $0x18] sm:$0xff] }
 0xa53   :  { %2717 = vadd.xlane.f32.xlu1 %v2716_v55 }
 0xa56   :  { %2720 = vadd.xlane.f32.xlu0 %v2719_v37  ;;  %v2755_v37 = vld [vmem:[%s6852_s14 + $0x10] sm:$0xff] }
 0xa57   :  { %2723 = vadd.xlane.f32.xlu1 %v2722_v13 }
 0xad7   :  { %v2701_v33 = vpop.xlane.xlu0 %2700 }
 0xad8   :  { %v2695_v47 = vpop.xlane.xlu1 %2694  ;;  %v2707_v25 = vmul.f32 0.015625, %v2701_v33  ;;  %v5088_v33 = vld [vmem:[%s6853_s15] sm:$0xff]  }
 0xad9   :  { %v2705_v63 = vmul.f32 0.015625, %v2695_v47  ;;  %v5089_v47 = vld [vmem:[%s6854_s16] sm:$0xff]   ;;  %4884 = vmatprep.mubr.msk.bf16.mxu0 %vm2251_vm7, %v5088_v33 }
 0xada   :  { %v2731_v27 = vmul.f32 %v2707_v25, %v2707_v25  ;;  %4904 = vmatprep.mubr.msk.bf16.mxu1 %vm2251_vm7, %v5089_v47 }
 0xadb   :  { %v2698_v39 = vpop.xlane.xlu0 %2697  ;;  %v2729_v56 = vmul.f32 %v2705_v63, %v2705_v63 }
 0xadc   :  { %v2704_v12 = vpop.xlane.xlu1 %2703  ;;  %v2706_v19 = vmul.f32 0.015625, %v2698_v39 }
 0xadd   :  { %v2708_v58 = vmul.f32 0.015625, %v2704_v12 }
 0xade   :  { %v2730_v57 = vmul.f32 %v2706_v19, %v2706_v19 }
 0xadf   :  { %v2715_v40 = vpop.xlane.xlu0 %2714  ;;  %v2732_v14 = vmul.f32 %v2708_v58, %v2708_v58 }
 0xae0   :  { %v2725_v50 = vmul.f32 0.015625, %v2715_v40  ;;  %v2718_v31 = vpop.xlane.xlu1 %2717 }
 0xae1   :  { %v2726_v36 = vmul.f32 0.015625, %v2718_v31 }
 0xae2   :  { %v2733_v1 = vsub.f32 %v2725_v50, %v2729_v56 }
 0xae3   :  { %v2734_v11 = vsub.f32 %v2726_v36, %v2730_v57  ;;  %v2721_v52 = vpop.xlane.xlu0 %2720 }
 0xae4   :  { %v2741_v4 = vadd.f32 1e-05, %v2733_v1  ;;  %v2727_v17 = vmul.f32 0.015625, %v2721_v52  ;;  %v2724_v61 = vpop.xlane.xlu1 %2723 }
 0xae5   :  { %v2742_v3 = vadd.f32 1e-05, %v2734_v11  ;;  %v2728_v42 = vmul.f32 0.015625, %v2724_v61  ;;  %v5178_v61 = vld [vmem:[%s6887_s9 + $0x8] sm:$0xff]  }
 0xae6   :  { %5149 = vrsqrt.f32 %v2741_v4  ;;  %v2735_v18 = vsub.f32 %v2727_v17, %v2731_v27  ;;  %v5177_v17 = vld [vmem:[%s6887_s9] sm:$0xff]  }
 0xae7   :  { %5151 = vrsqrt.f32 %v2742_v3  ;;  %v2736_v26 = vsub.f32 %v2728_v42, %v2732_v14  ;;  %v5093_v14 = vld [vmem:[%s6853_s15 + $0x18] sm:$0xff]   ;;  %v5094_v3 = vld [vmem:[%s6853_s15 + $0x20] sm:$0xff]   ;;  %v5179_v42 = vld [vmem:[%s6887_s9 + $0x10] sm:$0xff]  }
 0xae8   :  { %v2743_v60 = vadd.f32 1e-05, %v2735_v18  ;;  %v5180_v18 = vld [vmem:[%s6887_s9 + $0x18] sm:$0xff]  }
 0xae9   :  { %v2744_v29 = vadd.f32 1e-05, %v2736_v26  ;;  %v5095_v26 = vld [vmem:[%s6853_s15 + $0x28] sm:$0xff]  }
 0xaea   :  { %5153 = vrsqrt.f32 %v2743_v60  ;;  %v5181_v60 = vld [vmem:[%s6887_s9 + $0x20] sm:$0xff]  }
 0xaeb   :  { %5155 = vrsqrt.f32 %v2744_v29  ;;  %v5182_v29 = vld [vmem:[%s6887_s9 + $0x40] sm:$0xff]  }
 0xaf0   :  { %v5150_v59 = vpop.eup %5149 }
 0xaf1   :  { %v5152_v21 = vpop.eup %5151  ;;  %v2749_v41 = vmul.f32 %v5150_v59, %v2737_v45 }
 0xaf2   :  { %v2750_v48 = vmul.f32 %v5152_v21, %v2738_v35 }
 0xaf3   :  { %2767 = vperm.xlu0 %5030, %v2749_v41   ;;  %v2757_v16 = vmul.f32 %v2749_v41, %v2705_v63 }
 0xaf4   :  { %v5154_v28 = vpop.eup %5153  ;;  %v2758_v51 = vmul.f32 %v2750_v48, %v2706_v19 }
 0xaf5   :  { %v5156_v5 = vpop.eup %5155  ;;  %v2751_v32 = vmul.f32 %v5154_v28, %v2739_v22  ;;  %v2761_v8 = vsub.f32 %v2753_v15, %v2757_v16  ;;  %v5185_v15 = vld [vmem:[%s6887_s9 + $0x38] sm:$0xff]  }
 0xaf6   :  { %v2752_v2 = vmul.f32 %v5156_v5, %v2740_v9  ;;  %v2762_v23 = vsub.f32 %v2754_v53, %v2758_v51  ;;  %v5184_v53 = vld [vmem:[%s6887_s9 + $0x30] sm:$0xff]  }
 0xaf7   :  { %2777 = vperm.xlu1 %5031, %v2751_v32   ;;  %v2759_v55 = vmul.f32 %v2751_v32, %v2707_v25 }
 0xaf8   :  { %2782 = vperm.xlu0 %5030, %v2752_v2   ;;  %v2760_v7 = vmul.f32 %v2752_v2, %v2708_v58 }
 0xaf9   :  { %v2763_v13 = vsub.f32 %v2755_v37, %v2759_v55 }
 0xafa   :  { %v2764_v20 = vsub.f32 %v2756_v24, %v2760_v7 }
 0xafb   :  { %2772 = vperm.xlu1 %5031, %v2750_v48  }
 0xafc   :  { %2796 = vperm.xlu0 %5030, %v2762_v23  }
 0xaff   :  { %2791 = vperm.xlu1 %5031, %v2761_v8  }
 0xb00   :  { %2806 = vperm.xlu0 %5030, %v2764_v20  }
 0xb03   :  { %2801 = vperm.xlu1 %5031, %v2763_v13  }
 0xb72   :  { %v2768_v39 = vpop.permute.xlu0 %2767 }
 0xb73   :  { %v2785_v56 = vmul.f32 %v2768_v39, %v6358_v46  ;;  %v5090_v46 = vld [vmem:[%s6853_s15 + $0x8] sm:$0xff]  }
 0xb76   :  { %v2778_v63 = vpop.permute.xlu1 %2777 }
 0xb77   :  { %v2783_v12 = vpop.permute.xlu0 %2782  ;;  %v2787_v36 = vmul.f32 %v2778_v63, %v6355_v62  ;;  %v5091_v62 = vld [vmem:[%s6854_s16 + $0x8] sm:$0xff]  }
 0xb78   :  { %v2788_v1 = vmul.f32 %v2783_v12, %v6361_v6  ;;  %v5092_v6 = vld [vmem:[%s6853_s15 + $0x10] sm:$0xff]  }
 0xb7a   :  { %v2773_v19 = vpop.permute.xlu1 %2772 }
 0xb7b   :  { %v2786_v40 = vmul.f32 %v2773_v19, %v6365_v54  ;;  %v2797_v25 = vpop.permute.xlu0 %2796 }
 0xb7d   :  { %v2810_v31 = vadd.f32 %v2797_v25, %v2786_v40 }
 0xb7e   :  { %v2792_v50 = vpop.permute.xlu1 %2791 }
 0xb7f   :  { %v2809_v57 = vadd.f32 %v2792_v50, %v2785_v56  ;;  %v2807_v58 = vpop.permute.xlu0 %2806 }
 0xb80   :  { %v2812_v27 = vadd.f32 %v2807_v58, %v2788_v1 }
 0xb81   :  { %v2813_v11 = vpack.c.bf16 %v2810_v31, %v2809_v57 }
 0xb82   :  { %v2802_v52 = vpop.permute.xlu1 %2801 }
 0xb83   :  { %v2811_v4 = vadd.f32 %v2802_v52, %v2787_v36  ;;  %4880 = vmatprep.subr.bf16.mxu0 %v2813_v11  ;;  %4900 = vmatprep.subr.bf16.mxu1 %v2813_v11 }
 0xb84   :  { %4881 = vmatpush3.bf16.msra.mxu0 %v2813_v11  ;;  %4901 = vmatpush3.bf16.msra.mxu1 %v2813_v11 }
 0xb85   :  { %v2814_v54 = vpack.c.bf16 %v2812_v27, %v2811_v4 }
 0xb87   :  { %4882 = vmatprep.subr.bf16.mxu0 %v2814_v54  ;;  %4902 = vmatprep.subr.bf16.mxu1 %v2814_v54 }
 0xb88   :  { %4883 = vmatpush3.bf16.msra.mxu0 %v2814_v54  ;;  %4903 = vmatpush3.bf16.msra.mxu1 %v2814_v54 }
 0xb89   :  { %4908 = vmatprep.subr.bf16.mxu1 %v2813_v11  ;;  %4888 = vmatprep.subr.bf16.mxu0 %v5177_v17 }
 0xb8b   :  { %4885 = vmatmul.mubr.msk.bf16.vlgmr.msra.gmra.mrb[132].mxu0 %vm2251_vm7, %v5090_v46  ;;  %4905 = vmatmul.mubr.msk.bf16.vlgmr.msra.gmra.mrb[120].mxu1 %vm2251_vm7, %v5091_v62 }
 0xb8c   :  { %4909 = vmatpush3.bf16.msra.mxu1 %v2813_v11  ;;  %4912 = vmatprep.mubr.msk.bf16.mxu1 %vm2251_vm7, %v5092_v6 }
 0xb8d   :  { %4910 = vmatprep.subr.bf16.mxu1 %v2814_v54  ;;  %4889 = vmatpush3.bf16.msra.mxu0 %v5177_v17 }
 0xb8e   :  { %4890 = vmatprep.subr.bf16.mxu0 %v5178_v61 }
 0xb90   :  { %4911 = vmatpush3.bf16.msra.mxu1 %v2814_v54 }
 0xb91   :  { %4928 = vmatprep.subr.bf16.mxu1 %v2813_v11  ;;  %4891 = vmatpush3.bf16.msra.mxu0 %v5178_v61 }
 0xb92   :  { %4892 = vmatprep.subr.bf16.mxu0 %v5179_v42 }
 0xb93   :  { %4913 = vmatmul.mubr.msk.bf16.vlgmr.msra.gmra.mrb[124].mxu1 %vm2251_vm7, %v5093_v14 }
 0xb94   :  { %4929 = vmatpush3.bf16.msra.mxu1 %v2813_v11  ;;  %4932 = vmatprep.mubr.msk.bf16.mxu1 %vm2251_vm7, %v5094_v3 }
 0xb95   :  { %4930 = vmatprep.subr.bf16.mxu1 %v2814_v54  ;;  %4893 = vmatpush3.bf16.msra.mxu0 %v5179_v42 }
 0xb96   :  { %4894 = vmatprep.subr.bf16.mxu0 %v5180_v18 }
 0xb98   :  { %4931 = vmatpush3.bf16.msra.mxu1 %v2814_v54 }
 0xb99   :  { %4895 = vmatpush3.bf16.msra.mxu0 %v5180_v18  ;;  %4936 = vmatprep.subr.bf16.mxu1 %v6139_v44 }
 0xb9a   :  { %4916 = vmatprep.subr.bf16.mxu0 %v5181_v60 }
 0xb9b   :  { %4933 = vmatmul.mubr.msk.bf16.vlgmr.msra.gmra.mrb[128].mxu1 %vm2251_vm7, %v5095_v26 }
 0xb9c   :  { %4937 = vmatpush3.bf16.msra.mxu1 %v5182_v29 }
 0xb9d   :  { %4938 = vmatprep.subr.bf16.mxu1 %v6199_v34 }
 0xba0   :  { %4939 = vmatpush3.bf16.msra.mxu1 %v6199_v34 }
 0xba1   :  { %4940 = vmatprep.subr.bf16.mxu1 %v6206_v49 }
 0xba4   :  { %4941 = vmatpush3.bf16.msra.mxu1 %v6206_v49 }
 0xba5   :  { %4942 = vmatprep.subr.bf16.mxu1 %v6213_v38 }
 0xba8   :  { %4943 = vmatpush3.bf16.msra.mxu1 %v6213_v38  ;;  %v5183_v38 = vld [vmem:[%s6887_s9 + $0x28] sm:$0xff]  }
 0xba9   :  { %4960 = vmatprep.subr.bf16.mxu1 %v5186_v0 }
 0xc5e   :  { %v4886_v44 = vpop.f32.mrb[132].mxu0  ;;  %v4906_v45 = vpop.f32.mrb[120].mxu1 }
 0xc5f   :  { %v2881_v35 = vpop.f32.mrb[133].mxu0  ;;  %v3007_v59 = vpop.f32.mrb[121].mxu1 }
 0xc60   :  { %v4887_v21 = vpop.f32.mrb[134].mxu0  ;;  %v4907_v41 = vpop.f32.mrb[122].mxu1 }
 0xc61   :  { %v2897_v22 = vpack.c.bf16 %v4887_v21, %v4886_v44  ;;  %v2884_v48 = vpop.f32.mrb[135].mxu0  ;;  %v3010_v9 = vpop.f32.mrb[123].mxu1 }
 0xc62   :  { %v2896_v34 = vpack.c.bf16 %v2884_v48, %v2881_v35 }
 0xc64   :  { %4896 = vmatprep.mubr.msk.bf16.mxu0 %vm340_vm3, %v2896_v34 }
 0xc65   :  { %4897 = vmatmul.mubr.msk.bf16.vlgmr.msra.gmra.mrb[136].mxu0 %vm340_vm3, %v2897_v22 }
 0xc66   :  { %4917 = vmatpush3.bf16.msra.mxu0 %v5181_v60  ;;  %v4914_v49 = vpop.f32.mrb[124].mxu1 }
 0xc67   :  { %4918 = vmatprep.subr.bf16.mxu0 %v5183_v38  ;;  %v3072_v28 = vpop.f32.mrb[125].mxu1 }
 0xc68   :  { %v4915_v5 = vpop.f32.mrb[126].mxu1 }
 0xc69   :  { %v3088_v32 = vpack.c.bf16 %v4915_v5, %v4914_v49  ;;  %v3075_v2 = vpop.f32.mrb[127].mxu1 }
 0xc6a   :  { %4919 = vmatpush3.bf16.msra.mxu0 %v5183_v38  ;;  %v3087_v51 = vpack.c.bf16 %v3075_v2, %v3072_v28 }
 0xc6b   :  { %4920 = vmatprep.subr.bf16.mxu0 %v5184_v53 }
 0xc6c   :  { %4924 = vmatprep.mubr.msk.bf16.mxu0 %vm340_vm3, %v3087_v51 }
 0xc6e   :  { %4921 = vmatpush3.bf16.msra.mxu0 %v5184_v53  ;;  %v4934_v16 = vpop.f32.mrb[128].mxu1 }
 0xc6f   :  { %v3202_v23 = vpop.f32.mrb[129].mxu1  ;;  %4922 = vmatprep.subr.bf16.mxu0 %v5185_v15 }
 0xc70   :  { %v4935_v7 = vpop.f32.mrb[130].mxu1 }
 0xc71   :  { %v3218_v24 = vpack.c.bf16 %v4935_v7, %v4934_v16  ;;  %v3205_v8 = vpop.f32.mrb[131].mxu1 }
 0xc72   :  { %4923 = vmatpush3.bf16.msra.mxu0 %v5185_v15  ;;  %v3217_v55 = vpack.c.bf16 %v3205_v8, %v3202_v23 }
 0xc74   :  { %4944 = vmatprep.mubr.msk.bf16.mxu1 %vm340_vm3, %v3217_v55 }
 0xc75   :  { %4925 = vmatmul.mubr.msk.bf16.vlgmr.msra.gmra.mrb[140].mxu0 %vm340_vm3, %v3088_v32  ;;  %4945 = vmatmul.mubr.msk.bf16.vlgmr.msra.gmra.mrb[132].mxu1 %vm340_vm3, %v3218_v24 }
 0xc76   :  { %4964 = vmatprep.mubr.msk.bf16.mxu1 %vm5187_vm1, %v5186_v0 }
 0xd38   :  { %v4898_v20 = vpop.f32.mrb[136].mxu0 }
 0xd39   :  { %v2955_v37 = vmul.f32 %v4898_v20, %v5596_v43  ;;  %v2938_v13 = vpop.f32.mrb[137].mxu0 }
 0xd3a   :  { %v2953_v33 = vmul.f32 %v2938_v13, %v5596_v43  ;;  %v4899_v47 = vpop.f32.mrb[138].mxu0 }
 0xd3b   :  { %v3016_v39 = vadd.f32 %v4906_v45, %v2955_v37  ;;  %v2956_v63 = vmul.f32 %v4899_v47, %v5596_v43  ;;  %v2941_v12 = vpop.f32.mrb[139].mxu0 }
 0xd3c   :  { %v3008_v19 = vadd.f32 %v3007_v59, %v2953_v33  ;;  %v2954_v40 = vmul.f32 %v2941_v12, %v5596_v43 }
 0xd3d   :  { %v3019_v25 = vadd.f32 %v4907_v41, %v2956_v63 }
 0xd3e   :  { %v3011_v56 = vadd.f32 %v3010_v9, %v2954_v40 }
 0xd48   :  { %v4926_v50 = vpop.f32.mrb[140].mxu0  ;;  %v4946_v31 = vpop.f32.mrb[132].mxu1 }
 0xd49   :  { %v3146_v57 = vmul.f32 %v4926_v50, %v5707_v10  ;;  %v3129_v58 = vpop.f32.mrb[141].mxu0  ;;  %v3276_v36 = vmul.f32 %v4946_v31, %v5759_v30  ;;  %v3259_v1 = vpop.f32.mrb[133].mxu1  ;;  %v3326_v31 = vld [vmem:[%s6855_s17] sm:$0xff] }
 0xd4a   :  { %v3144_v11 = vmul.f32 %v3129_v58, %v5707_v10  ;;  %v4927_v52 = vpop.f32.mrb[142].mxu0  ;;  %v3274_v27 = vmul.f32 %v3259_v1, %v5759_v30  ;;  %v4947_v4 = vpop.f32.mrb[134].mxu1 }
 0xd4b   :  { %v3150_v54 = vadd.f32 %v3146_v57, %v3016_v39  ;;  %v3147_v46 = vmul.f32 %v4927_v52, %v5707_v10  ;;  %v3132_v43 = vpop.f32.mrb[143].mxu0  ;;  %v3277_v62 = vmul.f32 %v4947_v4, %v5759_v30  ;;  %v3262_v6 = vpop.f32.mrb[135].mxu1  ;;  %v3327_v57 = vld [vmem:[%s6855_s17 + $0x8] sm:$0xff] }
 0xd4c   :  { %v3148_v17 = vadd.f32 %v3144_v11, %v3008_v19  ;;  %v3145_v61 = vmul.f32 %v3132_v43, %v5707_v10  ;;  %v3275_v14 = vmul.f32 %v3262_v6, %v5759_v30  ;;  %v3328_v11 = vld [vmem:[%s6855_s17 + $0x10] sm:$0xff]  ;;  %v3343_v43 = vld [vmem:[%s6856_s18 + $0x8] sm:$0xff] }
 0xd4d   :  { %v6500_v3 = vadd.f32 %v3276_v36, %v3150_v54  ;;  %v3151_v42 = vadd.f32 %v3147_v46, %v3019_v25 }
 0xd4e   :  { %v6502_v18 = vadd.f32 %v3274_v27, %v3148_v17  ;;  %v3149_v26 = vadd.f32 %v3145_v61, %v3011_v56  ;;  %v3329_v27 = vld [vmem:[%s6855_s17 + $0x18] sm:$0xff] }
 0xd4f   :  { %v6504_v60 = vadd.f32 %v3277_v62, %v3151_v42  ;;  %v3288_v29 = vsel %vm340_vm3, %v6500_v3, 0.0  ;;  %v3300_v41 = vmul.f32 %v6500_v3, %v6500_v3  ;;  %v5096_v62 = vld [vmem:[%s6857_s19] sm:$0xff]  }
 0xd50   :  { %v6508_v44 = vadd.f32 %v3275_v14, %v3149_v26  ;;  %3289 = vadd.xlane.f32.xlu0 %v3288_v29  ;;  %v3282_v45 = vsel %vm340_vm3, %v6502_v18, 0.0  ;;  %v3298_v30 = vmul.f32 %v6502_v18, %v6502_v18  ;;  %4948 = vmatprep.subr.bf16.mxu0 %v5096_v62  ;;  %v5097_v14 = vld [vmem:[%s6857_s19 + $0x8] sm:$0xff]   ;;  %v3342_v26 = vld [vmem:[%s6856_s18] sm:$0xff] }
 0xd51   :  { %3283 = vadd.xlane.f32.xlu1 %v3282_v45  ;;  %v3291_v35 = vsel %vm340_vm3, %v6504_v60, 0.0  ;;  %v3301_v48 = vmul.f32 %v6504_v60, %v6504_v60  ;;  %v3308_v9 = vsel %vm340_vm3, %v3300_v41, 0.0  ;;  %4949 = vmatpush3.bf16.msra.mxu0 %v5096_v62  ;;  %v3345_v45 = vld [vmem:[%s6856_s18 + $0x18] sm:$0xff] }
 0xd52   :  { %v3285_v10 = vsel %vm340_vm3, %v6508_v44, 0.0  ;;  %v3299_v59 = vmul.f32 %v6508_v44, %v6508_v44  ;;  %v3302_v21 = vsel %vm340_vm3, %v3298_v30, 0.0  ;;  %4950 = vmatprep.subr.bf16.mxu0 %v5097_v14 }
 0xd53   :  { %v3311_v34 = vsel %vm340_vm3, %v3301_v48, 0.0  ;;  %v5099_v48 = vld [vmem:[%s6857_s19 + $0x18] sm:$0xff]  }
 0xd54   :  { %3286 = vadd.xlane.f32.xlu0 %v3285_v10  ;;  %v3305_v22 = vsel %vm340_vm3, %v3299_v59, 0.0 }
 0xd55   :  { %3292 = vadd.xlane.f32.xlu1 %v3291_v35  ;;  %4951 = vmatpush3.bf16.msra.mxu0 %v5097_v14  ;;  %v5098_v35 = vld [vmem:[%s6857_s19 + $0x10] sm:$0xff]  }
 0xd56   :  { %4952 = vmatprep.subr.bf16.mxu0 %v5098_v35 }
 0xd58   :  { %3303 = vadd.xlane.f32.xlu0 %v3302_v21  ;;  %v3344_v21 = vld [vmem:[%s6856_s18 + $0x10] sm:$0xff] }
 0xd59   :  { %3306 = vadd.xlane.f32.xlu1 %v3305_v22  ;;  %4953 = vmatpush3.bf16.msra.mxu0 %v5098_v35  ;;  %v3518_v22 = vld [vmem:[%s6858_s22 + $0x8] sm:$0xff]  ;;  %v5100_v35 = vld [vmem:[%s6860_s21] sm:$0xff]  }
 0xd5a   :  { %4954 = vmatprep.subr.bf16.mxu0 %v5099_v48 }
 0xd5c   :  { %3309 = vadd.xlane.f32.xlu0 %v3308_v9  ;;  %v3517_v9 = vld [vmem:[%s6858_s22] sm:$0xff] }
 0xd5d   :  { %3312 = vadd.xlane.f32.xlu1 %v3311_v34  ;;  %4955 = vmatpush3.bf16.msra.mxu0 %v5099_v48  ;;  %v3520_v34 = vld [vmem:[%s6858_s22 + $0x18] sm:$0xff]  ;;  %v5105_v48 = vld [vmem:[%s6860_s21 + $0x28] sm:$0xff]  }
 0xddd   :  { %v3290_v49 = vpop.xlane.xlu0 %3289 }
 0xdde   :  { %v3284_v38 = vpop.xlane.xlu1 %3283  ;;  %v3296_v53 = vmul.f32 0.015625, %v3290_v49  ;;  %v3519_v49 = vld [vmem:[%s6858_s22 + $0x10] sm:$0xff] }
 0xddf   :  { %v3294_v5 = vmul.f32 0.015625, %v3284_v38  ;;  %v3522_v38 = vld [vmem:[%s6858_s22 + $0x28] sm:$0xff] }
 0xde0   :  { %v3320_v13 = vmul.f32 %v3296_v53, %v3296_v53 }
 0xde1   :  { %v3287_v28 = vpop.xlane.xlu0 %3286  ;;  %v3318_v16 = vmul.f32 %v3294_v5, %v3294_v5 }
 0xde2   :  { %v3293_v32 = vpop.xlane.xlu1 %3292  ;;  %v3295_v2 = vmul.f32 0.015625, %v3287_v28  ;;  %v3521_v28 = vld [vmem:[%s6858_s22 + $0x20] sm:$0xff] }
 0xde3   :  { %v3297_v24 = vmul.f32 0.015625, %v3293_v32  ;;  %v3523_v32 = vld [vmem:[%s6858_s22 + $0x30] sm:$0xff] }
 0xde4   :  { %v3319_v7 = vmul.f32 %v3295_v2, %v3295_v2 }
 0xde5   :  { %v3304_v51 = vpop.xlane.xlu0 %3303  ;;  %v3321_v63 = vmul.f32 %v3297_v24, %v3297_v24 }
 0xde6   :  { %v3314_v23 = vmul.f32 0.015625, %v3304_v51  ;;  %v3307_v15 = vpop.xlane.xlu1 %3306  ;;  %v3525_v51 = vld [vmem:[%s6858_s22 + $0x40] sm:$0xff] }
 0xde7   :  { %v3315_v8 = vmul.f32 0.015625, %v3307_v15  ;;  %v3529_v15 = vld [vmem:[%s6858_s22 + $0x60] sm:$0xf] }
 0xde8   :  { %v3322_v55 = vsub.f32 %v3314_v23, %v3318_v16  ;;  %v3527_v16 = vld [vmem:[%s6858_s22 + $0x50] sm:$0xff]  ;;  %v3786_v23 = vld [vmem:[%s6859_s25] sm:$0xff] }
 0xde9   :  { %v3323_v20 = vsub.f32 %v3315_v8, %v3319_v7  ;;  %v3310_v37 = vpop.xlane.xlu0 %3309  ;;  %v3788_v7 = vld [vmem:[%s6859_s25 + $0x10] sm:$0xff]  ;;  %v3790_v8 = vld [vmem:[%s6859_s25 + $0x20] sm:$0xff] }
 0xdea   :  { %v3330_v33 = vadd.f32 1e-05, %v3322_v55  ;;  %v3316_v47 = vmul.f32 0.015625, %v3310_v37  ;;  %v3313_v39 = vpop.xlane.xlu1 %3312  ;;  %v3789_v55 = vld [vmem:[%s6859_s25 + $0x18] sm:$0xff]  ;;  %v3791_v37 = vld [vmem:[%s6859_s25 + $0x28] sm:$0xff] }
 0xdeb   :  { %v3331_v12 = vadd.f32 1e-05, %v3323_v20  ;;  %v3317_v19 = vmul.f32 0.015625, %v3313_v39  ;;  %v3792_v20 = vld [vmem:[%s6859_s25 + $0x30] sm:$0xff]  ;;  %v3795_v39 = vld [vmem:[%s6859_s25 + $0x48] sm:$0xff] }
 0xdec   :  { %5157 = vrsqrt.f32 %v3330_v33  ;;  %v3324_v40 = vsub.f32 %v3316_v47, %v3320_v13  ;;  %v3794_v13 = vld [vmem:[%s6859_s25 + $0x40] sm:$0xff]  ;;  %v3793_v33 = vld [vmem:[%s6859_s25 + $0x38] sm:$0xff]  ;;  %v3796_v47 = vld [vmem:[%s6859_s25 + $0x50] sm:$0xff] }
 0xded   :  { %5159 = vrsqrt.f32 %v3331_v12  ;;  %v3325_v25 = vsub.f32 %v3317_v19, %v3321_v63  ;;  %v3798_v63 = vld [vmem:[%s6859_s25 + $0x60] sm:$0xff]  ;;  %v3797_v12 = vld [vmem:[%s6859_s25 + $0x58] sm:$0xff]  ;;  %v3800_v19 = vld [vmem:[%s6859_s25 + $0x70] sm:$0xff] }
 0xdee   :  { %v3332_v56 = vadd.f32 1e-05, %v3324_v40  ;;  %v3799_v40 = vld [vmem:[%s6859_s25 + $0x68] sm:$0xff] }
 0xdef   :  { %v3333_v50 = vadd.f32 1e-05, %v3325_v25  ;;  %v3801_v25 = vld [vmem:[%s6859_s25 + $0x78] sm:$0xff] }
 0xdf0   :  { %5161 = vrsqrt.f32 %v3332_v56 }
 0xdf1   :  { %5163 = vrsqrt.f32 %v3333_v50 }
 0xdf6   :  { %v5158_v58 = vpop.eup %5157 }
 0xdf7   :  { %v5160_v36 = vpop.eup %5159  ;;  %v3338_v1 = vmul.f32 %v5158_v58, %v3326_v31 }
 0xdf8   :  { %v3339_v52 = vmul.f32 %v5160_v36, %v3327_v57 }
 0xdf9   :  { %3356 = vperm.xlu0 %5030, %v3338_v1   ;;  %v3346_v61 = vmul.f32 %v3338_v1, %v3294_v5  ;;  %v3524_v5 = vld [vmem:[%s6858_s22 + $0x38] sm:$0xff] }
 0xdfa   :  { %v5162_v4 = vpop.eup %5161  ;;  %v3347_v17 = vmul.f32 %v3339_v52, %v3295_v2  ;;  %v3526_v2 = vld [vmem:[%s6858_s22 + $0x48] sm:$0xff] }
 0xdfb   :  { %v5164_v54 = vpop.eup %5163  ;;  %v3340_v46 = vmul.f32 %v5162_v4, %v3328_v11  ;;  %v3350_v10 = vsub.f32 %v3342_v26, %v3346_v61 }
 0xdfc   :  { %v3341_v6 = vmul.f32 %v5164_v54, %v3329_v27  ;;  %v3351_v42 = vsub.f32 %v3343_v43, %v3347_v17 }
 0xdfd   :  { %3366 = vperm.xlu1 %5031, %v3340_v46   ;;  %v3348_v30 = vmul.f32 %v3340_v46, %v3296_v53  ;;  %v3528_v53 = vld [vmem:[%s6858_s22 + $0x58] sm:$0xff] }
 0xdfe   :  { %3371 = vperm.xlu0 %5030, %v3341_v6   ;;  %v3349_v29 = vmul.f32 %v3341_v6, %v3297_v24  ;;  %v3787_v24 = vld [vmem:[%s6859_s25 + $0x8] sm:$0xff] }
 0xdff   :  { %v3352_v41 = vsub.f32 %v3344_v21, %v3348_v30  ;;  %v5102_v21 = vld [vmem:[%s6860_s21 + $0x10] sm:$0xff]  }
 0xe00   :  { %v3353_v59 = vsub.f32 %v3345_v45, %v3349_v29 }
 0xe01   :  { %3361 = vperm.xlu1 %5031, %v3339_v52  }
 0xe02   :  { %3385 = vperm.xlu0 %5030, %v3351_v42  }
 0xe05   :  { %3380 = vperm.xlu1 %5031, %v3350_v10  }
 0xe06   :  { %3395 = vperm.xlu0 %5030, %v3353_v59   ;;  %v5101_v59 = vld [vmem:[%s6860_s21 + $0x8] sm:$0xff]  }
 0xe09   :  { %3390 = vperm.xlu1 %5031, %v3352_v41   ;;  %v5103_v41 = vld [vmem:[%s6860_s21 + $0x18] sm:$0xff]  }
 0xe0a   :  { %3537 = vperm.xlu0 %5030, %v3518_v22   ;;  %v5104_v22 = vld [vmem:[%s6860_s21 + $0x20] sm:$0xff]  }
 0xe0d   :  { %3532 = vperm.xlu1 %5031, %v3517_v9   ;;  %v5106_v9 = vld [vmem:[%s6860_s21 + $0x30] ss:$0 sps:$4 sm:$0x33]  }
 0xe0e   :  { %3547 = vperm.xlu0 %5030, %v3520_v34   ;;  %v5107_v34 = vld [vmem:[%s6862_s24] sm:$0xff]  }
 0xe11   :  { %3542 = vperm.xlu1 %5031, %v3519_v49  }
 0xe12   :  { %3557 = vperm.xlu0 %5030, %v3522_v38  }
 0xe15   :  { %3552 = vperm.xlu1 %5031, %v3521_v28  }
 0xe16   :  { %3567 = vperm.xlu0 %5030, %v3524_v5  }
 0xe19   :  { %3562 = vperm.xlu1 %5031, %v3523_v32  }
 0xe1a   :  { %3577 = vperm.xlu0 %5030, %v3526_v2  }
 0xe1d   :  { %3572 = vperm.xlu1 %5031, %v3525_v51   ;;  %v3738_v51 = vld [vmem:[%s6863_s23 + $0x8] sm:$0xff] }
 0xe1e   :  { %3587 = vperm.xlu0 %5030, %v3528_v53  }
 0xe21   :  { %3582 = vperm.xlu1 %5031, %v3527_v16  }
 0xe22   :  { %3804 = vperm.xlu0 %5030, %v3786_v23  }
 0xe25   :  { %3592 = vperm.xlu1 %5031, %v3529_v15  }
 0xe26   :  { %3814 = vperm.xlu0 %5030, %v3788_v7  }
 0xe29   :  { %3809 = vperm.xlu1 %5031, %v3787_v24  }
 0xe2a   :  { %3824 = vperm.xlu0 %5030, %v3790_v8  }
 0xe2d   :  { %3819 = vperm.xlu1 %5031, %v3789_v55  }
 0xe2e   :  { %3834 = vperm.xlu0 %5030, %v3792_v20  }
 0xe31   :  { %3829 = vperm.xlu1 %5031, %v3791_v37  }
 0xe32   :  { %3844 = vperm.xlu0 %5030, %v3794_v13   ;;  %v3739_v13 = vld [vmem:[%s6863_s23 + $0x10] sm:$0xff] }
 0xe35   :  { %3839 = vperm.xlu1 %5031, %v3793_v33  }
 0xe36   :  { %3854 = vperm.xlu0 %5030, %v3796_v47   ;;  %v3740_v47 = vld [vmem:[%s6863_s23 + $0x18] sm:$0xff] }
 0xe39   :  { %3849 = vperm.xlu1 %5031, %v3795_v39  }
 0xe3a   :  { %3864 = vperm.xlu0 %5030, %v3798_v63  }
 0xe3d   :  { %3859 = vperm.xlu1 %5031, %v3797_v12  }
 0xe3e   :  { %3874 = vperm.xlu0 %5030, %v3800_v19  }
 0xe41   :  { %3869 = vperm.xlu1 %5031, %v3799_v40  }
 0xe45   :  { %3879 = vperm.xlu1 %5031, %v3801_v25  }
 0xe78   :  { %v3357_v56 = vpop.permute.xlu0 %3356 }
 0xe79   :  { %v3374_v1 = vmul.f32 %v3357_v56, %v6502_v18  ;;  %v4228_v18 = vld [vmem:[%s6861_s20] ss:$0 sm:$0xff] }
 0xe7c   :  { %v3367_v50 = vpop.permute.xlu1 %3366 }
 0xe7d   :  { %v3372_v31 = vpop.permute.xlu0 %3371  ;;  %v3376_v54 = vmul.f32 %v3367_v50, %v6500_v3 }
 0xe7e   :  { %v3377_v46 = vmul.f32 %v3372_v31, %v6504_v60 }
 0xe80   :  { %v3362_v57 = vpop.permute.xlu1 %3361 }
 0xe81   :  { %v3375_v58 = vmul.f32 %v3362_v57, %v6508_v44  ;;  %v3386_v36 = vpop.permute.xlu0 %3385 }
 0xe83   :  { %v3399_v52 = vadd.f32 %v3386_v36, %v3375_v58  ;;  %v3741_v58 = vld [vmem:[%s6863_s23 + $0x20] sm:$0xff] }
 0xe84   :  { %v3381_v11 = vpop.permute.xlu1 %3380 }
 0xe85   :  { %v3398_v27 = vadd.f32 %v3381_v11, %v3374_v1  ;;  %v3396_v4 = vpop.permute.xlu0 %3395  ;;  %v3742_v1 = vld [vmem:[%s6863_s23 + $0x28] sm:$0xff] }
 0xe86   :  { %v3401_v6 = vadd.f32 %v3396_v4, %v3377_v46 }
 0xe87   :  { %v3402_v43 = vpack.c.bf16 %v3399_v52, %v3398_v27 }
 0xe88   :  { %v3391_v62 = vpop.permute.xlu1 %3390 }
 0xe89   :  { %v3400_v17 = vadd.f32 %v3391_v62, %v3376_v54  ;;  %4956 = vmatprep.mubr.msk.bf16.mxu0 %vm340_vm3, %v3402_v43  ;;  %v3538_v32 = vpop.permute.xlu0 %3537 }
 0xe8b   :  { %v3403_v61 = vpack.c.bf16 %v3401_v6, %v3400_v17 }
 0xe8c   :  { %v3533_v49 = vpop.permute.xlu1 %3532 }
 0xe8d   :  { %4957 = vmatmul.mubr.msk.bf16.vlgmr.msra.gmra.mrb[144].mxu0 %vm340_vm3, %v3403_v61  ;;  %v3548_v37 = vpop.permute.xlu0 %3547  ;;  %v3743_v61 = vld [vmem:[%s6863_s23 + $0x30] sm:$0xff] }
 0xe8e   :  { %5006 = vmatprep.mubr.msk.bf16.mxu0 %vm1657_vm5, %v5107_v34 }
 0xe90   :  { %v3543_v24 = vpop.permute.xlu1 %3542 }
 0xe91   :  { %v3558_v57 = vpop.permute.xlu0 %3557 }
 0xe94   :  { %v3553_v25 = vpop.permute.xlu1 %3552 }
 0xe95   :  { %v3568_v17 = vpop.permute.xlu0 %3567 }
 0xe98   :  { %v3563_v46 = vpop.permute.xlu1 %3562 }
 0xf60   :  { %v4958_v44 = vpop.f32.mrb[144].mxu0 }
 0xf61   :  { %v3476_v14 = vpop.f32.mrb[145].mxu0  ;;  %v3500_v26 = vmul.f32 %v4958_v44, %v4228_v18 }
 0xf62   :  { %v4959_v42 = vpop.f32.mrb[146].mxu0  ;;  %v3498_v60 = vmul.f32 %v4228_v18, %v3476_v14 }
 0xf63   :  { %v3501_v3 = vmul.f32 %v4959_v42, %v4228_v18  ;;  %v3479_v29 = vpop.f32.mrb[147].mxu0 }
 0xf64   :  { %v3499_v45 = vmul.f32 %v4228_v18, %v3479_v29  ;;  %v3744_v18 = vld [vmem:[%s6863_s23 + $0x38] sm:$0xff] }
 0xf65   :  { %v3516_v10 = vpack.c.bf16 %v3501_v3, %v3500_v26 }
 0xf66   :  { %v3515_v30 = vpack.c.bf16 %v3499_v45, %v3498_v60  ;;  %v3573_v60 = vpop.permute.xlu1 %3572 }
 0xf68   :  { %4961 = vmatpush3.bf16.msra.mxu1 %v3515_v30 }
 0xf69   :  { %4962 = vmatprep.subr.bf16.mxu1 %v5186_v0 }
 0xf6c   :  { %4963 = vmatpush3.bf16.msra.mxu1 %v3516_v10 }
 0xf6f   :  { %4965 = vmatmul.mubr.msk.bf16.vlgmr.msra.gmra.mrb[136].mxu1 %vm2251_vm7, %v5100_v35  ;;  %v3578_v35 = vpop.permute.xlu0 %3577 }
 0xf70   :  { %4968 = vmatprep.mubr.msk.bf16.mxu1 %vm5187_vm1, %v5186_v0 }
 0xf77   :  { %4969 = vmatmul.mubr.msk.bf16.gmra.mrb[140].mxu1 %vm2251_vm7, %v5101_v59  ;;  %v3745_v59 = vld [vmem:[%s6863_s23 + $0x40] sm:$0xff] }
 0xf78   :  { %4972 = vmatprep.mubr.msk.bf16.mxu1 %vm5187_vm1, %v5186_v0 }
 0xf7f   :  { %4973 = vmatmul.mubr.msk.bf16.gmra.mrb[144].mxu1 %vm2251_vm7, %v5102_v21 }
 0xf80   :  { %4976 = vmatprep.mubr.msk.bf16.mxu1 %vm5187_vm1, %v5186_v0 }
 0xf87   :  { %4977 = vmatmul.mubr.msk.bf16.gmra.mrb[148].mxu1 %vm2251_vm7, %v5103_v41  ;;  %v3746_v41 = vld [vmem:[%s6863_s23 + $0x48] sm:$0xff] }
 0xf88   :  { %4980 = vmatprep.mubr.msk.bf16.mxu1 %vm5187_vm1, %v5186_v0 }
 0xf8f   :  { %4981 = vmatmul.mubr.msk.bf16.gmra.mrb[152].mxu1 %vm2251_vm7, %v5104_v22 }
 0xf90   :  { %4984 = vmatprep.mubr.msk.bf16.mxu1 %vm5187_vm1, %v5186_v0 }
 0xf97   :  { %4985 = vmatmul.mubr.msk.bf16.gmra.mrb[156].mxu1 %vm2251_vm7, %v5105_v48 }
 0xf98   :  { %4988 = vmatprep.mubr.msk.bf16.mxu1 %vm5187_vm1, %v5186_v0  ;;  %v3737_v0 = vld [vmem:[%s6863_s23] sm:$0xff] }
 0xf9f   :  { %4989 = vmatmul.mubr.msk.bf16.gmra.mrb[160].mxu1 %vm2251_vm7, %v5106_v9 }
0x1042   :  { %v3683_v38 = vpop.f32.mrb[136].mxu1 }
0x1043   :  { %v3684_v28 = vadd.f32 %v3683_v38, %v3533_v49  ;;  %v4966_v5 = vpop.f32.mrb[137].mxu1  ;;  %v3583_v38 = vpop.permute.xlu1 %3582 }
0x1044   :  { %v3686_v2 = vpop.f32.mrb[138].mxu1 }
0x1045   :  { %v3687_v53 = vadd.f32 %v3686_v2, %v3538_v32  ;;  %v4967_v16 = vpop.f32.mrb[139].mxu1  ;;  %v3750_v23 = vmul.f32 %v3737_v0, %v3684_v28  ;;  %v3588_v0 = vpop.permute.xlu0 %3587  ;;  %v3747_v2 = vld [vmem:[%s6863_s23 + $0x50] sm:$0xff] }
0x1047   :  { %v3751_v15 = vmul.f32 %v3738_v51, %v3687_v53  ;;  %v3748_v53 = vld [vmem:[%s6863_s23 + $0x58] sm:$0xff] }
0x1049   :  { %v3779_v7 = vpack.c.bf16 %v3751_v15, %v3750_v23 }
0x104a   :  { %v3691_v8 = vpop.f32.mrb[140].mxu1 }
0x104b   :  { %v3692_v55 = vadd.f32 %v3691_v8, %v3543_v24  ;;  %v4970_v20 = vpop.f32.mrb[141].mxu1  ;;  %4992 = vmatprep.subr.bf16.mxu0 %v3779_v7  ;;  %v3593_v8 = vpop.permute.xlu1 %3592 }
0x104c   :  { %v3694_v33 = vpop.f32.mrb[142].mxu1  ;;  %4993 = vmatpush3.bf16.msra.mxu0 %v3779_v7  ;;  %v3749_v20 = vld [vmem:[%s6863_s23 + $0x60] sm:$0xf] }
0x104d   :  { %v3695_v39 = vadd.f32 %v3694_v33, %v3548_v37  ;;  %v4971_v63 = vpop.f32.mrb[143].mxu1  ;;  %v3752_v12 = vmul.f32 %v3739_v13, %v3692_v55 }
0x104f   :  { %v3753_v19 = vmul.f32 %v3740_v47, %v3695_v39 }
0x1051   :  { %v3780_v40 = vpack.c.bf16 %v3753_v19, %v3752_v12  ;;  %v5108_v19 = vld [vmem:[%s6862_s24 + $0x8] sm:$0xff]  }
0x1052   :  { %v3699_v56 = vpop.f32.mrb[144].mxu1 }
0x1053   :  { %v3700_v50 = vadd.f32 %v3699_v56, %v3553_v25  ;;  %v4974_v31 = vpop.f32.mrb[145].mxu1  ;;  %4994 = vmatprep.subr.bf16.mxu0 %v3780_v40  ;;  %v5110_v25 = vld [vmem:[%s6862_s24 + $0x18] sm:$0xff]   ;;  %v5111_v56 = vld [vmem:[%s6862_s24 + $0x20] sm:$0xff]  }
0x1054   :  { %v3702_v36 = vpop.f32.mrb[146].mxu1  ;;  %4995 = vmatpush3.bf16.msra.mxu0 %v3780_v40  ;;  %v5109_v40 = vld [vmem:[%s6862_s24 + $0x10] sm:$0xff]  }
0x1055   :  { %v3703_v11 = vadd.f32 %v3702_v36, %v3558_v57  ;;  %v4975_v52 = vpop.f32.mrb[147].mxu1  ;;  %v3754_v27 = vmul.f32 %v3741_v58, %v3700_v50  ;;  %v5112_v50 = vld [vmem:[%s6862_s24 + $0x28] sm:$0xff]   ;;  %v5113_v31 = vld [vmem:[%s6862_s24 + $0x30] sm:$0xff]   ;;  %v5114_v57 = vld [vmem:[%s6862_s24 + $0x38] sm:$0xff]   ;;  %v3805_v58 = vpop.permute.xlu0 %3804 }
0x1056   :  { %v3810_v36 = vpop.permute.xlu1 %3809 }
0x1057   :  { %v3755_v4 = vmul.f32 %v3742_v1, %v3703_v11 }
0x1059   :  { %v3781_v54 = vpack.c.bf16 %v3755_v4, %v3754_v27  ;;  %v3815_v1 = vpop.permute.xlu0 %3814 }
0x105a   :  { %v3707_v43 = vpop.f32.mrb[148].mxu1  ;;  %v3820_v11 = vpop.permute.xlu1 %3819 }
0x105b   :  { %v3708_v62 = vadd.f32 %v3707_v43, %v3563_v46  ;;  %v4978_v6 = vpop.f32.mrb[149].mxu1  ;;  %4996 = vmatprep.subr.bf16.mxu0 %v3781_v54 }
0x105c   :  { %v3710_v44 = vpop.f32.mrb[150].mxu1  ;;  %4997 = vmatpush3.bf16.msra.mxu0 %v3781_v54 }
0x105d   :  { %v3711_v14 = vadd.f32 %v3710_v44, %v3568_v17  ;;  %v4979_v42 = vpop.f32.mrb[151].mxu1  ;;  %v3756_v26 = vmul.f32 %v3743_v61, %v3708_v62  ;;  %v3825_v52 = vpop.permute.xlu0 %3824 }
0x105e   :  { %v3830_v27 = vpop.permute.xlu1 %3829 }
0x105f   :  { %v3757_v3 = vmul.f32 %v3744_v18, %v3711_v14 }
0x1061   :  { %v3782_v29 = vpack.c.bf16 %v3757_v3, %v3756_v26  ;;  %v3835_v4 = vpop.permute.xlu0 %3834 }
0x1062   :  { %v3715_v45 = vpop.f32.mrb[152].mxu1  ;;  %v3840_v62 = vpop.permute.xlu1 %3839 }
0x1063   :  { %v3716_v10 = vadd.f32 %v3715_v45, %v3573_v60  ;;  %v4982_v30 = vpop.f32.mrb[153].mxu1  ;;  %4998 = vmatprep.subr.bf16.mxu0 %v3782_v29 }
0x1064   :  { %v3718_v21 = vpop.f32.mrb[154].mxu1  ;;  %4999 = vmatpush3.bf16.msra.mxu0 %v3782_v29 }
0x1065   :  { %v3719_v22 = vadd.f32 %v3718_v21, %v3578_v35  ;;  %v4983_v48 = vpop.f32.mrb[155].mxu1  ;;  %v3758_v9 = vmul.f32 %v3745_v59, %v3716_v10  ;;  %v3845_v14 = vpop.permute.xlu0 %3844 }
0x1066   :  { %v3850_v42 = vpop.permute.xlu1 %3849 }
0x1067   :  { %v3759_v34 = vmul.f32 %v3746_v41, %v3719_v22 }
0x1069   :  { %v3783_v49 = vpack.c.bf16 %v3759_v34, %v3758_v9  ;;  %v3855_v35 = vpop.permute.xlu0 %3854 }
0x106a   :  { %v3723_v28 = vpop.f32.mrb[156].mxu1  ;;  %v3860_v21 = vpop.permute.xlu1 %3859 }
0x106b   :  { %v3724_v5 = vadd.f32 %v3723_v28, %v3583_v38  ;;  %v4986_v32 = vpop.f32.mrb[157].mxu1  ;;  %5000 = vmatprep.subr.bf16.mxu0 %v3783_v49 }
0x106c   :  { %v3726_v51 = vpop.f32.mrb[158].mxu1  ;;  %5001 = vmatpush3.bf16.msra.mxu0 %v3783_v49 }
0x106d   :  { %v3727_v16 = vadd.f32 %v3726_v51, %v3588_v0  ;;  %v4987_v23 = vpop.f32.mrb[159].mxu1  ;;  %v3760_v15 = vmul.f32 %v3747_v2, %v3724_v5  ;;  %v3865_v9 = vpop.permute.xlu0 %3864 }
0x106e   :  { %v3870_v5 = vpop.permute.xlu1 %3869 }
0x106f   :  { %v3761_v7 = vmul.f32 %v3748_v53, %v3727_v16 }
0x1071   :  { %v3784_v24 = vpack.c.bf16 %v3761_v7, %v3760_v15  ;;  %v3875_v0 = vpop.permute.xlu0 %3874 }
0x1072   :  { %v3731_v55 = vpop.f32.mrb[160].mxu1  ;;  %v3880_v16 = vpop.permute.xlu1 %3879 }
0x1073   :  { %v3732_v37 = vadd.f32 %v3731_v55, %v3593_v8  ;;  %5002 = vmatprep.subr.bf16.mxu0 %v3784_v24  ;;  %v4990_v13 = vpop.f32.mrb[161].mxu1 }
0x1074   :  { %5003 = vmatpush3.bf16.msra.mxu0 %v3784_v24  ;;  %v3734_v33 = vpop.f32.mrb[162].mxu1 }
0x1075   :  { %v3762_v47 = vmul.f32 %v3749_v20, %v3732_v37  ;;  %v4991_v39 = vpop.f32.mrb[163].mxu1 }
0x1077   :  { %v3785_v63 = vpack.c.bf16 %v3762_v47, %v3762_v47 }
0x1079   :  { %5026 = vmatprep.subr.msk.bf16.mxu0 %vm1664_vm6, %v3785_v63  ;;  %v3947_v12 = vsel %vm1664_vm6, %v3785_v63, 0 }
0x107a   :  { %5005 = vmatpush3.bf16.msra.mxu0 %v3947_v12 }
0x107d   :  { %5007 = vmatmul.mubr.msk.bf16.vlgmr.msra.gmra.mrb[148].mxu0 %vm1657_vm5, %v5108_v19 }
0x107e   :  { %5010 = vmatprep.mubr.msk.bf16.mxu0 %vm1657_vm5, %v5109_v40 }
0x1085   :  { %5011 = vmatmul.mubr.msk.bf16.gmra.mrb[152].mxu0 %vm1657_vm5, %v5110_v25 }
0x1086   :  { %5014 = vmatprep.mubr.msk.bf16.mxu0 %vm1657_vm5, %v5111_v56 }
0x108d   :  { %5015 = vmatmul.mubr.msk.bf16.gmra.mrb[156].mxu0 %vm1657_vm5, %v5112_v50 }
0x108e   :  { %5018 = vmatprep.mubr.msk.bf16.mxu0 %vm1657_vm5, %v5113_v31 }
0x1095   :  { %5019 = vmatmul.mubr.msk.bf16.gmra.mrb[160].mxu0 %vm1657_vm5, %v5114_v57 }
0x1150   :  { %v5008_v54 = vpop.f32.mrb[148].mxu0 }
0x1151   :  { %v3992_v46 = vadd.f32 %v5008_v54, %v3815_v1  ;;  %v3983_v43 = vpop.f32.mrb[149].mxu0 }
0x1152   :  { %v3984_v6 = vadd.f32 %v3983_v43, %v3805_v58  ;;  %v5009_v17 = vpop.f32.mrb[150].mxu0 }
0x1153   :  { %4049 = vst.msk [vmem:[%s6864_s26 + $0x10] sm:$0xff] %vm4046_vm8, %v3992_v46  ;;  %v3995_v61 = vadd.f32 %v5009_v17, %v3820_v11  ;;  %v3986_v44 = vpop.f32.mrb[151].mxu0 }
0x1154   :  { %4047 = vst.msk [vmem:[%s6864_s26] sm:$0xff] %vm4046_vm8, %v3984_v6  ;;  %v3987_v18 = vadd.f32 %v3986_v44, %v3810_v36 }
0x1155   :  { %4050 = vst.msk [vmem:[%s6864_s26 + $0x18] sm:$0xff] %vm4046_vm8, %v3995_v61 }
0x1156   :  { %4048 = vst.msk [vmem:[%s6864_s26 + $0x8] sm:$0xff] %vm4046_vm8, %v3987_v18 }
0x1158   :  { %v5012_v26 = vpop.f32.mrb[152].mxu0 }
0x1159   :  { %v4008_v3 = vadd.f32 %v5012_v26, %v3835_v4  ;;  %v3999_v29 = vpop.f32.mrb[153].mxu0 }
0x115a   :  { %v4000_v60 = vadd.f32 %v3999_v29, %v3825_v52  ;;  %v5013_v45 = vpop.f32.mrb[154].mxu0 }
0x115b   :  { %4053 = vst.msk [vmem:[%s6864_s26 + $0x30] sm:$0xff] %vm4046_vm8, %v4008_v3  ;;  %v4011_v10 = vadd.f32 %v5013_v45, %v3840_v62  ;;  %v4002_v30 = vpop.f32.mrb[155].mxu0 }
0x115c   :  { %4051 = vst.msk [vmem:[%s6864_s26 + $0x20] sm:$0xff] %vm4046_vm8, %v4000_v60  ;;  %v4003_v59 = vadd.f32 %v4002_v30, %v3830_v27 }
0x115d   :  { %4054 = vst.msk [vmem:[%s6864_s26 + $0x38] sm:$0xff] %vm4046_vm8, %v4011_v10 }
0x115e   :  { %4052 = vst.msk [vmem:[%s6864_s26 + $0x28] sm:$0xff] %vm4046_vm8, %v4003_v59 }
0x1160   :  { %v5016_v41 = vpop.f32.mrb[156].mxu0 }
0x1161   :  { %v4024_v22 = vadd.f32 %v5016_v41, %v3855_v35  ;;  %v4015_v48 = vpop.f32.mrb[157].mxu0 }
0x1162   :  { %v4016_v34 = vadd.f32 %v4015_v48, %v3845_v14  ;;  %v5017_v49 = vpop.f32.mrb[158].mxu0 }
0x1163   :  { %4057 = vst.msk [vmem:[%s6864_s26 + $0x50] sm:$0xff] %vm4046_vm8, %v4024_v22  ;;  %v4027_v38 = vadd.f32 %v5017_v49, %v3860_v21  ;;  %v4018_v28 = vpop.f32.mrb[159].mxu0 }
0x1164   :  { %4055 = vst.msk [vmem:[%s6864_s26 + $0x40] sm:$0xff] %vm4046_vm8, %v4016_v34  ;;  %v4019_v32 = vadd.f32 %v4018_v28, %v3850_v42 }
0x1165   :  { %4058 = vst.msk [vmem:[%s6864_s26 + $0x58] sm:$0xff] %vm4046_vm8, %v4027_v38 }
0x1166   :  { %4056 = vst.msk [vmem:[%s6864_s26 + $0x48] sm:$0xff] %vm4046_vm8, %v4019_v32 }
0x1168   :  { %v5020_v2 = vpop.f32.mrb[160].mxu0 }
0x1169   :  { %v4040_v51 = vadd.f32 %v5020_v2, %v3875_v0  ;;  %v4031_v53 = vpop.f32.mrb[161].mxu0 }
0x116a   :  { %v4032_v23 = vadd.f32 %v4031_v53, %v3865_v9  ;;  %v5021_v15 = vpop.f32.mrb[162].mxu0 }
0x116b   :  { %4061 = vst.msk [vmem:[%s6864_s26 + $0x70] sm:$0xff] %vm4046_vm8, %v4040_v51  ;;  %v4043_v7 = vadd.f32 %v5021_v15, %v3880_v16  ;;  %v4034_v24 = vpop.f32.mrb[163].mxu0 }
0x116c   :  { %4059 = vst.msk [vmem:[%s6864_s26 + $0x60] sm:$0xff] %vm4046_vm8, %v4032_v23  ;;  %v4035_v8 = vadd.f32 %v4034_v24, %v3870_v5 }
0x116d   :  { %4062 = vst.msk [vmem:[%s6864_s26 + $0x78] sm:$0xff] %vm4046_vm8, %v4043_v7 }
0x116e   :  { %4060 = vst.msk [vmem:[%s6864_s26 + $0x68] sm:$0xff] %vm4046_vm8, %v4035_v8 }

</bundles_post_ra>
